<compile_context>
chip_gen: v7x
topology: tpu7x:2x2x1
jax: 0.10.0
libtpu: 0.0.40
codegen_flags: <defaults>
</compile_context>

<pallas_src>
import functools
import math

import jax
import jax.numpy as jnp
from jax.experimental import pallas as pl
from jax.experimental.pallas import tpu as pltpu

# ----------------------------- model config ---------------------------------
INPUT_DIM = 8        # node feature dim
EDGE_DIM = 4         # edge attr dim
GLOBAL_SIZE = 4      # global attr dim per graph
EMB = 16             # embedding_size (= per-head out channels)
HEADS = 2
HC = EMB * HEADS     # concatenated hidden size (32)
CONV_LAYERS = 2      # extra conv layers after the initial one
NUM_LAYERS = CONV_LAYERS + 1
LIN_LAYERS = 2
BN_EPS = 1e-5
MASK_NEG = 1e30


def _elu(x):
    return jnp.where(x > 0, x, jnp.exp(jnp.minimum(x, 0.0)) - 1.0)


def _dot_t(a, b):
    """a @ b.T (contract last dim of both) on the MXU, no transpose copy."""
    return jax.lax.dot_general(a, b, (((1,), (1,)), ((), ())),
                               preferred_element_type=jnp.float32)


# ------------------------- Pallas kernel body --------------------------------
def conv_pool_kernel(x_ref, ea_ref, mb_ref, pool_ref, w_ref, b_ref, we_ref,
                     gamma_ref, beta_ref, pooled_ref, *,
                     heads, layers, edge_dim):
    """TransformerConv -> ELU -> BatchNorm stack + mean-pool for one branch."""
    h = x_ref[0]                               # [N, HC] (layer-0 feats zero-padded)
    ea = ea_ref[0]                             # [EDGE_DIM, N, N] bf16 dense edge attrs
    mask_bias = mb_ref[0].astype(jnp.float32)  # [N, N] additive mask (0 / -1e30)
    n, hc = h.shape
    c = hc // heads
    scale = 1.0 / math.sqrt(c)

    # 1.0 for nodes with >=1 incoming edge (PyG: isolated nodes aggregate 0).
    row_valid = (jnp.max(mask_bias, axis=1, keepdims=True) > -0.5).astype(jnp.float32)
    ones_row = jnp.ones((1, n), jnp.float32)   # hoisted: BN stats via MXU
    inv_n = 1.0 / n
    lane = jax.lax.broadcasted_iota(jnp.int32, (1, hc), 1)
    head_masks = [((lane >= hd * c) & (lane < (hd + 1) * c)).astype(jnp.float32)
                  for hd in range(heads)]      # hoisted 32-lane head selectors

    # TODO(synk): for N >~ 900 on v7x (64 MiB VMEM/TC) add a grid axis tiling the
    # target-node rows and switch this static unroll to lax.fori_loop over the
    # stacked per-layer weights to bound vreg live ranges; unnecessary here.
    for l in range(layers):                    # static unroll (3 layers)
        w = w_ref[0, l]                        # [HC, 4*HC] fused (q|k|v|skip)
        b = b_ref[0, l]                        # [1, 4*HC]
        we = we_ref[0, l]                      # [EDGE_DIM, HC]

        # single 128-lane-wide MXU projection for q, k, v and skip
        proj = jnp.dot(h, w, preferred_element_type=jnp.float32) + b
        q = proj[:, 0 * hc:1 * hc]
        k = proj[:, 1 * hc:2 * hc]
        v = proj[:, 2 * hc:3 * hc]
        out = proj[:, 3 * hc:4 * hc]           # skip/root term; heads add onto it

        for hd in range(heads):                # static unroll (2 heads)
            sl = slice(hd * c, (hd + 1) * c)
            hm = head_masks[hd]                # [1, HC], 1.0 on this head's lanes
            qh, kh = q[:, sl], k[:, sl]
            we_h = we[:, sl]                   # [EDGE_DIM, C]
            we_wide = we * hm                  # [EDGE_DIM, HC], zero off-head lanes

            scores = _dot_t(qh, kh)            # MXU: q @ k.T    -> [N, N]
            qe = _dot_t(qh, we_h)              # MXU: q @ We_h.T -> [N, EDGE_DIM]
            for d in range(edge_dim):          # bf16 ea * f32 scalar col -> f32 FMA
                scores = scores + ea[d] * qe[:, d:d + 1]
            scores = scores * scale + mask_bias

            m = jnp.max(scores, axis=1, keepdims=True)
            p = jnp.exp(scores - m)            # masked entries underflow to 0 in f32
            denom = jnp.sum(p, axis=1, keepdims=True)
            # approx reciprocal: ~2^-12 rel. error vs torch reference (documented).
            alpha = p * (pl.reciprocal(denom, approx=True) * row_valid)

            # masked-value trick: 32-lane matmul output lands directly in this
            # head's lanes of the concatenated output -- no concat relayout.
            out = out + jnp.dot(alpha, v * hm, preferred_element_type=jnp.float32)
            # edge contribution to values, offloaded to the (idle) MXU:
            # (alpha*ea_d) @ rank1([N,HC] of we row) == rowsum(alpha*ea_d) * we_d
            for d in range(edge_dim):
                prod = alpha * ea[d]                                   # [N, N] f32
                r = jnp.broadcast_to(we_wide[d:d + 1, :], (n, hc))     # rank-1 [N, HC]
                out = out + jnp.dot(prod, r, preferred_element_type=jnp.float32)

        h_new = _elu(out)                      # [N, HC]

        # BatchNorm (training-mode batch stats, biased variance): one ones-row
        # MXU matmul over [h | h*h]; var = E[x^2] - mean^2 clamped >= 0.
        stacked = jnp.concatenate([h_new, h_new * h_new], axis=1)      # [N, 2*HC]
        stats = jnp.dot(ones_row, stacked,
                        preferred_element_type=jnp.float32) * inv_n    # [1, 2*HC]
        mean = stats[:, :hc]
        var = jnp.maximum(stats[:, hc:] - mean * mean, 0.0)
        h = (gamma_ref[0, l] * ((h_new - mean) * jax.lax.rsqrt(var + BN_EPS))
             + beta_ref[0, l])

    # fused global_mean_pool: pooled hidden is the only HBM writeback.
    pooled_ref[0] = jnp.dot(pool_ref[0], h, preferred_element_type=jnp.float32)


# ----------------------------- wrapper ---------------------------------------
def conv_pool(x_stack, ea_stack, mb_stack, pool_stack, conv_params):
    nb, n, hc = x_stack.shape
    bgraphs = pool_stack.shape[1]
    layers = conv_params["w"].shape[1]
    kernel = functools.partial(conv_pool_kernel, heads=HEADS, layers=layers,
                               edge_dim=EDGE_DIM)

    # advisory cost estimate so XLA schedules the densify scatters around us
    c = hc // HEADS
    flops = nb * layers * (
        2 * n * hc * 4 * hc
        + HEADS * (2 * n * n * c + 2 * n * c * EDGE_DIM
                   + 2 * n * n * hc + EDGE_DIM * 2 * n * n * hc)
        + 2 * n * 2 * hc) + nb * 2 * bgraphs * n * hc
    transcendentals = nb * layers * (HEADS * n * n + n * hc)
    args = (x_stack, ea_stack, mb_stack, pool_stack, conv_params["w"],
            conv_params["b"], conv_params["we"], conv_params["gamma"],
            conv_params["beta"])
    bytes_accessed = (sum(a.size * a.dtype.itemsize for a in args)
                      + nb * bgraphs * hc * 4)

    return pl.pallas_call(
        kernel,
        out_shape=jax.ShapeDtypeStruct((nb, bgraphs, hc), jnp.float32),
        grid=(nb,),
        in_specs=[
            pl.BlockSpec((1, n, hc), lambda i: (i, 0, 0)),
            pl.BlockSpec((1, EDGE_DIM, n, n), lambda i: (i, 0, 0, 0)),
            pl.BlockSpec((1, n, n), lambda i: (i, 0, 0)),
            pl.BlockSpec((1, bgraphs, n), lambda i: (i, 0, 0)),
            pl.BlockSpec((1, layers, hc, 4 * hc), lambda i: (i, 0, 0, 0)),
            pl.BlockSpec((1, layers, 1, 4 * hc), lambda i: (i, 0, 0, 0)),
            pl.BlockSpec((1, layers, EDGE_DIM, hc), lambda i: (i, 0, 0, 0)),
            pl.BlockSpec((1, layers, 1, hc), lambda i: (i, 0, 0, 0)),
            pl.BlockSpec((1, layers, 1, hc), lambda i: (i, 0, 0, 0)),
        ],
        out_specs=pl.BlockSpec((1, bgraphs, hc), lambda i: (i, 0, 0)),
        compiler_params=pltpu.CompilerParams(
            dimension_semantics=("parallel",),
            vmem_limit_bytes=32 * 1024 * 1024),
        cost_estimate=pl.CostEstimate(flops=int(flops),
                                      transcendentals=int(transcendentals),
                                      bytes_accessed=int(bytes_accessed)),
    )(*args)


# ------------------------- glue: densify graph -------------------------------
def densify_edges(edge_index, edge_attr, num_nodes):
    # TODO(synk): duplicate (multi-)edges collapse (last write wins); PyG would
    # treat each as a separate softmax term.
    src, dst = edge_index[0], edge_index[1]
    adj = jnp.zeros((num_nodes, num_nodes), jnp.float32).at[dst, src].set(1.0)
    # scatter directly into [EDGE_DIM, N_tgt, N_src] bf16 (no transpose copy)
    ea_t = jnp.zeros((edge_attr.shape[1], num_nodes, num_nodes), jnp.bfloat16)
    ea_t = ea_t.at[:, dst, src].set(edge_attr.T.astype(jnp.bfloat16))
    mask_bias = ((adj - 1.0) * MASK_NEG).astype(jnp.bfloat16)   # 0 / -1e30
    return ea_t, mask_bias


def pool_matrix(batch, num_graphs):
    oh = jax.nn.one_hot(batch, num_graphs, dtype=jnp.float32).T   # [B, N]
    counts = jnp.sum(oh, axis=1, keepdims=True)
    return oh / jnp.maximum(counts, 1.0)


# --------------------------- parameter init ----------------------------------
def _init_conv_layer(key, fin, hc, edge_dim):
    ks = jax.random.split(key, 5)
    s = 0.15
    return dict(
        wq=jax.random.normal(ks[0], (fin, hc), jnp.float32) * s,
        wk=jax.random.normal(ks[1], (fin, hc), jnp.float32) * s,
        wv=jax.random.normal(ks[2], (fin, hc), jnp.float32) * s,
        wskip=jax.random.normal(ks[3], (fin, hc), jnp.float32) * s,
        we=jax.random.normal(ks[4], (edge_dim, hc), jnp.float32) * s,  # lin_edge: no bias
        bq=jnp.zeros((1, hc), jnp.float32),
        bk=jnp.zeros((1, hc), jnp.float32),
        bv=jnp.zeros((1, hc), jnp.float32),
        bskip=jnp.zeros((1, hc), jnp.float32),
        gamma=jnp.ones((1, hc), jnp.float32),
        beta=jnp.zeros((1, hc), jnp.float32),
    )


def _pack_branch(layer_list, fin_pad):
    """Fuse q|k|v|skip weights into [Fin,4*HC], zero-pad layer-0 Fin, stack layers."""
    ws, bs, wes, gs, bts = [], [], [], [], []
    for p in layer_list:
        w = jnp.concatenate([p["wq"], p["wk"], p["wv"], p["wskip"]], axis=1)
        if w.shape[0] < fin_pad:
            w = jnp.pad(w, ((0, fin_pad - w.shape[0]), (0, 0)))
        ws.append(w)
        bs.append(jnp.concatenate([p["bq"], p["bk"], p["bv"], p["bskip"]], axis=1))
        wes.append(p["we"])
        gs.append(p["gamma"])
        bts.append(p["beta"])
    return dict(w=jnp.stack(ws), b=jnp.stack(bs), we=jnp.stack(wes),
                gamma=jnp.stack(gs), beta=jnp.stack(bts))


def init_params(key):
    keys = jax.random.split(key, 12)
    ki = iter(keys)
    conv_d = [_init_conv_layer(next(ki), INPUT_DIM, HC, EDGE_DIM)]
    conv_d += [_init_conv_layer(next(ki), HC, HC, EDGE_DIM) for _ in range(CONV_LAYERS)]
    conv_p = [_init_conv_layer(next(ki), INPUT_DIM, HC, EDGE_DIM)]
    conv_p += [_init_conv_layer(next(ki), HC, HC, EDGE_DIM) for _ in range(CONV_LAYERS)]
    packed_d = _pack_branch(conv_d, HC)
    packed_p = _pack_branch(conv_p, HC)
    # stack branches: leading dim 2 = (deprot, prot)
    conv = jax.tree_util.tree_map(lambda a, b: jnp.stack([a, b]), packed_d, packed_p)

    s = 0.15
    lin1_in = 2 * HC + 2 * GLOBAL_SIZE          # d_energy=False
    tail_p = dict(
        w1=jax.random.normal(next(ki), (lin1_in, EMB), jnp.float32) * s,
        b1=jnp.zeros((EMB,), jnp.float32),
        wl=jnp.stack([jax.random.normal(next(ki), (EMB, EMB), jnp.float32) * s
                      for _ in range(LIN_LAYERS)]),
        bl=jnp.zeros((LIN_LAYERS, EMB), jnp.float32),
        wo=jax.random.normal(next(ki), (EMB, 1), jnp.float32) * s,
        bo=jnp.zeros((1,), jnp.float32),
    )
    return dict(conv=conv, tail=tail_p)


# ------------------------------- forward --------------------------------------
def transformer4_forward(params,
                         x_deprot, edge_index_deprot, edge_attr_deprot,
                         x_prot, edge_index_prot, edge_attr_prot,
                         global_attr_prot, global_attr_deprot,
                         x_prot_batch, x_deprot_batch):
    num_graphs = global_attr_prot.shape[0]
    n = x_deprot.shape[0]
    assert x_prot.shape[0] == n, "branches are stacked; node counts must match"

    ea_d, mb_d = densify_edges(edge_index_deprot, edge_attr_deprot, n)
    ea_p, mb_p = densify_edges(edge_index_prot, edge_attr_prot, n)

    pad = HC - INPUT_DIM
    x_stack = jnp.stack([jnp.pad(x_deprot, ((0, 0), (0, pad))),
                         jnp.pad(x_prot, ((0, 0), (0, pad)))])      # [2, N, HC]
    ea_stack = jnp.stack([ea_d, ea_p])                               # [2, EDGE_DIM, N, N] bf16
    mb_stack = jnp.stack([mb_d, mb_p])                               # [2, N, N] bf16
    pool_stack = jnp.stack([pool_matrix(x_deprot_batch, num_graphs),
                            pool_matrix(x_prot_batch, num_graphs)])  # [2, B, N]

    # single Pallas kernel: conv stack + pooling for both branches
    pooled = conv_pool(x_stack, ea_stack, mb_stack, pool_stack, params["conv"])

    # Tail MLP (concat + lin1 + lins + out) left to plain XLA per perf review:
    # a few [B,16]-wide matmuls, a second pallas_call is pure launch overhead.
    tp = params["tail"]
    hidden = jnp.concatenate([pooled[0], global_attr_deprot,
                              pooled[1], global_attr_prot], axis=1)
    h = jax.nn.elu(hidden @ tp["w1"] + tp["b1"])
    for l in range(LIN_LAYERS):
        h = jax.nn.elu(h @ tp["wl"][l] + tp["bl"][l])
    return jax.nn.relu(h @ tp["wo"] + tp["bo"]).reshape(-1, 1)


# -------------------------------- main -----------------------------------------
def _ring_edges(num_graphs, nodes_per_graph):
    src, dst = [], []
    for g in range(num_graphs):
        base = g * nodes_per_graph
        for k in range(nodes_per_graph):
            a = base + k
            b = base + (k + 1) % nodes_per_graph
            src += [a, b]
            dst += [b, a]
    return jnp.array([src, dst], dtype=jnp.int32)


if __name__ == "__main__":
    key = jax.random.PRNGKey(0)
    k_par, k_xd, k_xp, k_ed, k_ep, k_gd, k_gp = jax.random.split(key, 7)

    params = init_params(k_par)

    num_graphs = 2
    nodes_per_graph = 4
    n_nodes = num_graphs * nodes_per_graph

    x_deprot = jax.random.normal(k_xd, (n_nodes, INPUT_DIM), jnp.float32)
    x_prot = jax.random.normal(k_xp, (n_nodes, INPUT_DIM), jnp.float32)

    edge_index_deprot = _ring_edges(num_graphs, nodes_per_graph)   # [2, 16]
    edge_index_prot = _ring_edges(num_graphs, nodes_per_graph)     # [2, 16]
    n_edges = edge_index_deprot.shape[1]
    edge_attr_deprot = jax.random.normal(k_ed, (n_edges, EDGE_DIM), jnp.float32)
    edge_attr_prot = jax.random.normal(k_ep, (n_edges, EDGE_DIM), jnp.float32)

    global_attr_deprot = jax.random.normal(k_gd, (num_graphs, GLOBAL_SIZE), jnp.float32)
    global_attr_prot = jax.random.normal(k_gp, (num_graphs, GLOBAL_SIZE), jnp.float32)

    x_deprot_batch = jnp.repeat(jnp.arange(num_graphs, dtype=jnp.int32), nodes_per_graph)
    x_prot_batch = jnp.repeat(jnp.arange(num_graphs, dtype=jnp.int32), nodes_per_graph)

    fwd = jax.jit(transformer4_forward)
    out = fwd(params,
              x_deprot, edge_index_deprot, edge_attr_deprot,
              x_prot, edge_index_prot, edge_attr_prot,
              global_attr_prot, global_attr_deprot,
              x_prot_batch, x_deprot_batch)
    out = jax.block_until_ready(out)

    assert out.shape == (num_graphs, 1)
    assert bool(jnp.all(jnp.isfinite(out)))
    print("KERNEL_OK")
</pallas_src>

<mosaic_0001>
module attributes {stable_mosaic.version = 11 : i64} {
  func.func @conv_pool_kernel(%arg0: i32, %arg1: memref<1x8x32xf32, #tpu.memory_space<vmem>>, %arg2: memref<1x4x8x8xbf16, #tpu.memory_space<vmem>>, %arg3: memref<1x8x8xbf16, #tpu.memory_space<vmem>>, %arg4: memref<1x2x8xf32, #tpu.memory_space<vmem>>, %arg5: memref<1x3x32x128xf32, #tpu.memory_space<vmem>>, %arg6: memref<1x3x1x128xf32, #tpu.memory_space<vmem>>, %arg7: memref<1x3x4x32xf32, #tpu.memory_space<vmem>>, %arg8: memref<1x3x1x32xf32, #tpu.memory_space<vmem>>, %arg9: memref<1x3x1x32xf32, #tpu.memory_space<vmem>>, %arg10: memref<1x2x32xf32, #tpu.memory_space<vmem>>) attributes {dimension_semantics = [#tpu.dimension_semantics<parallel>], iteration_bounds = array<i64: 2>, scalar_prefetch = 0 : i64, scratch_operands = 0 : i64, tpu.core_type = #tpu.core_type<tc>, window_params = [{transform_indices = @transform_0, window_bounds = array<i64: 1, 8, 32>}, {transform_indices = @transform_1, window_bounds = array<i64: 1, 4, 8, 8>}, {transform_indices = @transform_2, window_bounds = array<i64: 1, 8, 8>}, {transform_indices = @transform_3, window_bounds = array<i64: 1, 2, 8>}, {transform_indices = @transform_4, window_bounds = array<i64: 1, 3, 32, 128>}, {transform_indices = @transform_5, window_bounds = array<i64: 1, 3, 1, 128>}, {transform_indices = @transform_6, window_bounds = array<i64: 1, 3, 4, 32>}, {transform_indices = @transform_7, window_bounds = array<i64: 1, 3, 1, 32>}, {transform_indices = @transform_8, window_bounds = array<i64: 1, 3, 1, 32>}, {transform_indices = @transform_9, window_bounds = array<i64: 1, 2, 32>}]} {
    %c0 = arith.constant 0 : index
    %c0_0 = arith.constant 0 : index
    %c0_1 = arith.constant 0 : index
    %0 = vector.load %arg1[%c0, %c0_0, %c0_1] : memref<1x8x32xf32, #tpu.memory_space<vmem>>, vector<1x8x32xf32>
    %1 = vector.shape_cast %0 : vector<1x8x32xf32> to vector<8x32xf32>
    %c0_2 = arith.constant 0 : index
    %c0_3 = arith.constant 0 : index
    %c0_4 = arith.constant 0 : index
    %c0_5 = arith.constant 0 : index
    %2 = vector.load %arg2[%c0_2, %c0_3, %c0_4, %c0_5] : memref<1x4x8x8xbf16, #tpu.memory_space<vmem>>, vector<1x4x8x8xbf16>
    %3 = vector.shape_cast %2 : vector<1x4x8x8xbf16> to vector<4x8x8xbf16>
    %c0_6 = arith.constant 0 : index
    %c0_7 = arith.constant 0 : index
    %c0_8 = arith.constant 0 : index
    %4 = vector.load %arg3[%c0_6, %c0_7, %c0_8] : memref<1x8x8xbf16, #tpu.memory_space<vmem>>, vector<1x8x8xbf16>
    %5 = vector.shape_cast %4 : vector<1x8x8xbf16> to vector<8x8xbf16>
    %6 = arith.extf %5 : vector<8x8xbf16> to vector<8x8xf32>
    %cst = arith.constant dense<0xFF800000> : vector<8xf32>
    %7 = vector.multi_reduction <maximumf>, %6, %cst [1] : vector<8x8xf32> to vector<8xf32>
    %8 = vector.shape_cast %7 : vector<8xf32> to vector<8x1xf32>
    %cst_9 = arith.constant -5.000000e-01 : f32
    %9 = vector.broadcast %cst_9 : f32 to vector<8x1xf32>
    %10 = arith.cmpf ogt, %8, %9 : vector<8x1xf32>
    %11 = arith.extui %10 : vector<8x1xi1> to vector<8x1xi32>
    %12 = arith.sitofp %11 : vector<8x1xi32> to vector<8x1xf32>
    %cst_10 = arith.constant 1.000000e+00 : f32
    %13 = vector.broadcast %cst_10 : f32 to vector<1x8xf32>
    %14 = tpu.iota {dimensions = array<i32: 1>} : vector<1x32xi32>
    %c0_i32 = arith.constant 0 : i32
    %15 = vector.broadcast %c0_i32 : i32 to vector<1x32xi32>
    %16 = arith.cmpi sge, %14, %15 : vector<1x32xi32>
    %c16_i32 = arith.constant 16 : i32
    %17 = vector.broadcast %c16_i32 : i32 to vector<1x32xi32>
    %18 = arith.cmpi slt, %14, %17 : vector<1x32xi32>
    %19 = arith.andi %16, %18 : vector<1x32xi1>
    %20 = arith.extui %19 : vector<1x32xi1> to vector<1x32xi32>
    %21 = arith.sitofp %20 : vector<1x32xi32> to vector<1x32xf32>
    %c16_i32_11 = arith.constant 16 : i32
    %22 = vector.broadcast %c16_i32_11 : i32 to vector<1x32xi32>
    %23 = arith.cmpi sge, %14, %22 : vector<1x32xi32>
    %c32_i32 = arith.constant 32 : i32
    %24 = vector.broadcast %c32_i32 : i32 to vector<1x32xi32>
    %25 = arith.cmpi slt, %14, %24 : vector<1x32xi32>
    %26 = arith.andi %23, %25 : vector<1x32xi1>
    %27 = arith.extui %26 : vector<1x32xi1> to vector<1x32xi32>
    %28 = arith.sitofp %27 : vector<1x32xi32> to vector<1x32xf32>
    %c0_12 = arith.constant 0 : index
    %c0_13 = arith.constant 0 : index
    %c0_14 = arith.constant 0 : index
    %c0_15 = arith.constant 0 : index
    %29 = vector.load %arg5[%c0_12, %c0_13, %c0_14, %c0_15] : memref<1x3x32x128xf32, #tpu.memory_space<vmem>>, vector<1x1x32x128xf32>
    %30 = vector.shape_cast %29 : vector<1x1x32x128xf32> to vector<32x128xf32>
    %c0_16 = arith.constant 0 : index
    %c0_17 = arith.constant 0 : index
    %c0_18 = arith.constant 0 : index
    %c0_19 = arith.constant 0 : index
    %31 = vector.load %arg6[%c0_16, %c0_17, %c0_18, %c0_19] : memref<1x3x1x128xf32, #tpu.memory_space<vmem>>, vector<1x1x1x128xf32>
    %32 = vector.shape_cast %31 : vector<1x1x1x128xf32> to vector<1x128xf32>
    %c0_20 = arith.constant 0 : index
    %c0_21 = arith.constant 0 : index
    %c0_22 = arith.constant 0 : index
    %c0_23 = arith.constant 0 : index
    %33 = vector.load %arg7[%c0_20, %c0_21, %c0_22, %c0_23] : memref<1x3x4x32xf32, #tpu.memory_space<vmem>>, vector<1x1x4x32xf32>
    %34 = vector.shape_cast %33 : vector<1x1x4x32xf32> to vector<4x32xf32>
    %cst_24 = arith.constant dense<0.000000e+00> : vector<8x128xf32>
    %35 = tpu.matmul %1, %30, %cst_24 {dimension_numbers = #tpu.dot_dimension_numbers<[1], [0], [0], [1], [0, 0, 1, 1], [], []>} : vector<8x32xf32>, vector<32x128xf32>, vector<8x128xf32> -> vector<8x128xf32>
    %36 = vector.broadcast %32 : vector<1x128xf32> to vector<8x128xf32>
    %37 = arith.addf %35, %36 : vector<8x128xf32>
    %38 = vector.extract_strided_slice %37 {offsets = [0, 0], sizes = [8, 32], strides = [1, 1]} : vector<8x128xf32> to vector<8x32xf32>
    %39 = vector.extract_strided_slice %37 {offsets = [0, 32], sizes = [8, 32], strides = [1, 1]} : vector<8x128xf32> to vector<8x32xf32>
    %40 = vector.extract_strided_slice %37 {offsets = [0, 64], sizes = [8, 32], strides = [1, 1]} : vector<8x128xf32> to vector<8x32xf32>
    %41 = vector.extract_strided_slice %37 {offsets = [0, 96], sizes = [8, 32], strides = [1, 1]} : vector<8x128xf32> to vector<8x32xf32>
    %42 = vector.extract_strided_slice %38 {offsets = [0, 0], sizes = [8, 16], strides = [1, 1]} : vector<8x32xf32> to vector<8x16xf32>
    %43 = vector.extract_strided_slice %39 {offsets = [0, 0], sizes = [8, 16], strides = [1, 1]} : vector<8x32xf32> to vector<8x16xf32>
    %44 = vector.extract_strided_slice %34 {offsets = [0, 0], sizes = [4, 16], strides = [1, 1]} : vector<4x32xf32> to vector<4x16xf32>
    %45 = vector.broadcast %21 : vector<1x32xf32> to vector<4x32xf32>
    %46 = arith.mulf %34, %45 : vector<4x32xf32>
    %cst_25 = arith.constant dense<0.000000e+00> : vector<8x8xf32>
    %47 = tpu.matmul %42, %43, %cst_25 {dimension_numbers = #tpu.dot_dimension_numbers<[1], [1], [0], [0], [0, 0, 1, 0], [], []>} : vector<8x16xf32>, vector<8x16xf32>, vector<8x8xf32> -> vector<8x8xf32>
    %cst_26 = arith.constant dense<0.000000e+00> : vector<8x4xf32>
    %48 = tpu.matmul %42, %44, %cst_26 {dimension_numbers = #tpu.dot_dimension_numbers<[1], [1], [0], [0], [0, 0, 1, 0], [], []>} : vector<8x16xf32>, vector<4x16xf32>, vector<8x4xf32> -> vector<8x4xf32>
    %49 = vector.extract_strided_slice %3 {offsets = [0, 0, 0], sizes = [1, 8, 8], strides = [1, 1, 1]} : vector<4x8x8xbf16> to vector<1x8x8xbf16>
    %50 = vector.shape_cast %49 : vector<1x8x8xbf16> to vector<8x8xbf16>
    %51 = vector.extract_strided_slice %48 {offsets = [0, 0], sizes = [8, 1], strides = [1, 1]} : vector<8x4xf32> to vector<8x1xf32>
    %52 = arith.extf %50 : vector<8x8xbf16> to vector<8x8xf32>
    %53 = vector.broadcast %51 : vector<8x1xf32> to vector<8x8xf32>
    %54 = arith.mulf %52, %53 : vector<8x8xf32>
    %55 = arith.addf %47, %54 : vector<8x8xf32>
    %56 = vector.extract_strided_slice %3 {offsets = [1, 0, 0], sizes = [1, 8, 8], strides = [1, 1, 1]} : vector<4x8x8xbf16> to vector<1x8x8xbf16>
    %57 = vector.shape_cast %56 : vector<1x8x8xbf16> to vector<8x8xbf16>
    %58 = vector.extract_strided_slice %48 {offsets = [0, 1], sizes = [8, 1], strides = [1, 1]} : vector<8x4xf32> to vector<8x1xf32>
    %59 = arith.extf %57 : vector<8x8xbf16> to vector<8x8xf32>
    %60 = vector.broadcast %58 : vector<8x1xf32> to vector<8x8xf32>
    %61 = arith.mulf %59, %60 : vector<8x8xf32>
    %62 = arith.addf %55, %61 : vector<8x8xf32>
    %63 = vector.extract_strided_slice %3 {offsets = [2, 0, 0], sizes = [1, 8, 8], strides = [1, 1, 1]} : vector<4x8x8xbf16> to vector<1x8x8xbf16>
    %64 = vector.shape_cast %63 : vector<1x8x8xbf16> to vector<8x8xbf16>
    %65 = vector.extract_strided_slice %48 {offsets = [0, 2], sizes = [8, 1], strides = [1, 1]} : vector<8x4xf32> to vector<8x1xf32>
    %66 = arith.extf %64 : vector<8x8xbf16> to vector<8x8xf32>
    %67 = vector.broadcast %65 : vector<8x1xf32> to vector<8x8xf32>
    %68 = arith.mulf %66, %67 : vector<8x8xf32>
    %69 = arith.addf %62, %68 : vector<8x8xf32>
    %70 = vector.extract_strided_slice %3 {offsets = [3, 0, 0], sizes = [1, 8, 8], strides = [1, 1, 1]} : vector<4x8x8xbf16> to vector<1x8x8xbf16>
    %71 = vector.shape_cast %70 : vector<1x8x8xbf16> to vector<8x8xbf16>
    %72 = vector.extract_strided_slice %48 {offsets = [0, 3], sizes = [8, 1], strides = [1, 1]} : vector<8x4xf32> to vector<8x1xf32>
    %73 = arith.extf %71 : vector<8x8xbf16> to vector<8x8xf32>
    %74 = vector.broadcast %72 : vector<8x1xf32> to vector<8x8xf32>
    %75 = arith.mulf %73, %74 : vector<8x8xf32>
    %76 = arith.addf %69, %75 : vector<8x8xf32>
    %cst_27 = arith.constant 2.500000e-01 : f32
    %77 = vector.broadcast %cst_27 : f32 to vector<8x8xf32>
    %78 = arith.mulf %76, %77 : vector<8x8xf32>
    %79 = arith.addf %78, %6 : vector<8x8xf32>
    %cst_28 = arith.constant dense<0xFF800000> : vector<8xf32>
    %80 = vector.multi_reduction <maximumf>, %79, %cst_28 [1] : vector<8x8xf32> to vector<8xf32>
    %81 = vector.shape_cast %80 : vector<8xf32> to vector<8x1xf32>
    %82 = vector.broadcast %81 : vector<8x1xf32> to vector<8x8xf32>
    %83 = arith.subf %79, %82 : vector<8x8xf32>
    %84 = math.exp %83 : vector<8x8xf32>
    %cst_29 = arith.constant dense<0.000000e+00> : vector<8xf32>
    %85 = vector.multi_reduction <add>, %84, %cst_29 [1] : vector<8x8xf32> to vector<8xf32>
    %86 = vector.shape_cast %85 : vector<8xf32> to vector<8x1xf32>
    %87 = tpu.reciprocal %86 {approx = true} : vector<8x1xf32> -> vector<8x1xf32>
    %88 = arith.mulf %87, %12 : vector<8x1xf32>
    %89 = vector.broadcast %88 : vector<8x1xf32> to vector<8x8xf32>
    %90 = arith.mulf %84, %89 : vector<8x8xf32>
    %91 = vector.broadcast %21 : vector<1x32xf32> to vector<8x32xf32>
    %92 = arith.mulf %40, %91 : vector<8x32xf32>
    %cst_30 = arith.constant dense<0.000000e+00> : vector<8x32xf32>
    %93 = tpu.matmul %90, %92, %cst_30 {dimension_numbers = #tpu.dot_dimension_numbers<[1], [0], [0], [1], [0, 0, 1, 1], [], []>} : vector<8x8xf32>, vector<8x32xf32>, vector<8x32xf32> -> vector<8x32xf32>
    %94 = arith.addf %41, %93 : vector<8x32xf32>
    %95 = vector.extract_strided_slice %3 {offsets = [0, 0, 0], sizes = [1, 8, 8], strides = [1, 1, 1]} : vector<4x8x8xbf16> to vector<1x8x8xbf16>
    %96 = vector.shape_cast %95 : vector<1x8x8xbf16> to vector<8x8xbf16>
    %97 = arith.extf %96 : vector<8x8xbf16> to vector<8x8xf32>
    %98 = arith.mulf %90, %97 : vector<8x8xf32>
    %99 = vector.extract_strided_slice %46 {offsets = [0, 0], sizes = [1, 32], strides = [1, 1]} : vector<4x32xf32> to vector<1x32xf32>
    %100 = vector.shape_cast %99 : vector<1x32xf32> to vector<1x32xf32>
    %101 = vector.broadcast %100 : vector<1x32xf32> to vector<8x32xf32>
    %cst_31 = arith.constant dense<0.000000e+00> : vector<8x32xf32>
    %102 = tpu.matmul %98, %101, %cst_31 {dimension_numbers = #tpu.dot_dimension_numbers<[1], [0], [0], [1], [0, 0, 1, 1], [], []>} : vector<8x8xf32>, vector<8x32xf32>, vector<8x32xf32> -> vector<8x32xf32>
    %103 = arith.addf %94, %102 : vector<8x32xf32>
    %104 = vector.extract_strided_slice %3 {offsets = [1, 0, 0], sizes = [1, 8, 8], strides = [1, 1, 1]} : vector<4x8x8xbf16> to vector<1x8x8xbf16>
    %105 = vector.shape_cast %104 : vector<1x8x8xbf16> to vector<8x8xbf16>
    %106 = arith.extf %105 : vector<8x8xbf16> to vector<8x8xf32>
    %107 = arith.mulf %90, %106 : vector<8x8xf32>
    %108 = vector.extract_strided_slice %46 {offsets = [1, 0], sizes = [1, 32], strides = [1, 1]} : vector<4x32xf32> to vector<1x32xf32>
    %109 = vector.shape_cast %108 : vector<1x32xf32> to vector<1x32xf32>
    %110 = vector.broadcast %109 : vector<1x32xf32> to vector<8x32xf32>
    %cst_32 = arith.constant dense<0.000000e+00> : vector<8x32xf32>
    %111 = tpu.matmul %107, %110, %cst_32 {dimension_numbers = #tpu.dot_dimension_numbers<[1], [0], [0], [1], [0, 0, 1, 1], [], []>} : vector<8x8xf32>, vector<8x32xf32>, vector<8x32xf32> -> vector<8x32xf32>
    %112 = arith.addf %103, %111 : vector<8x32xf32>
    %113 = vector.extract_strided_slice %3 {offsets = [2, 0, 0], sizes = [1, 8, 8], strides = [1, 1, 1]} : vector<4x8x8xbf16> to vector<1x8x8xbf16>
    %114 = vector.shape_cast %113 : vector<1x8x8xbf16> to vector<8x8xbf16>
    %115 = arith.extf %114 : vector<8x8xbf16> to vector<8x8xf32>
    %116 = arith.mulf %90, %115 : vector<8x8xf32>
    %117 = vector.extract_strided_slice %46 {offsets = [2, 0], sizes = [1, 32], strides = [1, 1]} : vector<4x32xf32> to vector<1x32xf32>
    %118 = vector.shape_cast %117 : vector<1x32xf32> to vector<1x32xf32>
    %119 = vector.broadcast %118 : vector<1x32xf32> to vector<8x32xf32>
    %cst_33 = arith.constant dense<0.000000e+00> : vector<8x32xf32>
    %120 = tpu.matmul %116, %119, %cst_33 {dimension_numbers = #tpu.dot_dimension_numbers<[1], [0], [0], [1], [0, 0, 1, 1], [], []>} : vector<8x8xf32>, vector<8x32xf32>, vector<8x32xf32> -> vector<8x32xf32>
    %121 = arith.addf %112, %120 : vector<8x32xf32>
    %122 = vector.extract_strided_slice %3 {offsets = [3, 0, 0], sizes = [1, 8, 8], strides = [1, 1, 1]} : vector<4x8x8xbf16> to vector<1x8x8xbf16>
    %123 = vector.shape_cast %122 : vector<1x8x8xbf16> to vector<8x8xbf16>
    %124 = arith.extf %123 : vector<8x8xbf16> to vector<8x8xf32>
    %125 = arith.mulf %90, %124 : vector<8x8xf32>
    %126 = vector.extract_strided_slice %46 {offsets = [3, 0], sizes = [1, 32], strides = [1, 1]} : vector<4x32xf32> to vector<1x32xf32>
    %127 = vector.shape_cast %126 : vector<1x32xf32> to vector<1x32xf32>
    %128 = vector.broadcast %127 : vector<1x32xf32> to vector<8x32xf32>
    %cst_34 = arith.constant dense<0.000000e+00> : vector<8x32xf32>
    %129 = tpu.matmul %125, %128, %cst_34 {dimension_numbers = #tpu.dot_dimension_numbers<[1], [0], [0], [1], [0, 0, 1, 1], [], []>} : vector<8x8xf32>, vector<8x32xf32>, vector<8x32xf32> -> vector<8x32xf32>
    %130 = arith.addf %121, %129 : vector<8x32xf32>
    %131 = vector.extract_strided_slice %38 {offsets = [0, 16], sizes = [8, 16], strides = [1, 1]} : vector<8x32xf32> to vector<8x16xf32>
    %132 = vector.extract_strided_slice %39 {offsets = [0, 16], sizes = [8, 16], strides = [1, 1]} : vector<8x32xf32> to vector<8x16xf32>
    %133 = vector.extract_strided_slice %34 {offsets = [0, 16], sizes = [4, 16], strides = [1, 1]} : vector<4x32xf32> to vector<4x16xf32>
    %134 = vector.broadcast %28 : vector<1x32xf32> to vector<4x32xf32>
    %135 = arith.mulf %34, %134 : vector<4x32xf32>
    %cst_35 = arith.constant dense<0.000000e+00> : vector<8x8xf32>
    %136 = tpu.matmul %131, %132, %cst_35 {dimension_numbers = #tpu.dot_dimension_numbers<[1], [1], [0], [0], [0, 0, 1, 0], [], []>} : vector<8x16xf32>, vector<8x16xf32>, vector<8x8xf32> -> vector<8x8xf32>
    %cst_36 = arith.constant dense<0.000000e+00> : vector<8x4xf32>
    %137 = tpu.matmul %131, %133, %cst_36 {dimension_numbers = #tpu.dot_dimension_numbers<[1], [1], [0], [0], [0, 0, 1, 0], [], []>} : vector<8x16xf32>, vector<4x16xf32>, vector<8x4xf32> -> vector<8x4xf32>
    %138 = vector.extract_strided_slice %3 {offsets = [0, 0, 0], sizes = [1, 8, 8], strides = [1, 1, 1]} : vector<4x8x8xbf16> to vector<1x8x8xbf16>
    %139 = vector.shape_cast %138 : vector<1x8x8xbf16> to vector<8x8xbf16>
    %140 = vector.extract_strided_slice %137 {offsets = [0, 0], sizes = [8, 1], strides = [1, 1]} : vector<8x4xf32> to vector<8x1xf32>
    %141 = arith.extf %139 : vector<8x8xbf16> to vector<8x8xf32>
    %142 = vector.broadcast %140 : vector<8x1xf32> to vector<8x8xf32>
    %143 = arith.mulf %141, %142 : vector<8x8xf32>
    %144 = arith.addf %136, %143 : vector<8x8xf32>
    %145 = vector.extract_strided_slice %3 {offsets = [1, 0, 0], sizes = [1, 8, 8], strides = [1, 1, 1]} : vector<4x8x8xbf16> to vector<1x8x8xbf16>
    %146 = vector.shape_cast %145 : vector<1x8x8xbf16> to vector<8x8xbf16>
    %147 = vector.extract_strided_slice %137 {offsets = [0, 1], sizes = [8, 1], strides = [1, 1]} : vector<8x4xf32> to vector<8x1xf32>
    %148 = arith.extf %146 : vector<8x8xbf16> to vector<8x8xf32>
    %149 = vector.broadcast %147 : vector<8x1xf32> to vector<8x8xf32>
    %150 = arith.mulf %148, %149 : vector<8x8xf32>
    %151 = arith.addf %144, %150 : vector<8x8xf32>
    %152 = vector.extract_strided_slice %3 {offsets = [2, 0, 0], sizes = [1, 8, 8], strides = [1, 1, 1]} : vector<4x8x8xbf16> to vector<1x8x8xbf16>
    %153 = vector.shape_cast %152 : vector<1x8x8xbf16> to vector<8x8xbf16>
    %154 = vector.extract_strided_slice %137 {offsets = [0, 2], sizes = [8, 1], strides = [1, 1]} : vector<8x4xf32> to vector<8x1xf32>
    %155 = arith.extf %153 : vector<8x8xbf16> to vector<8x8xf32>
    %156 = vector.broadcast %154 : vector<8x1xf32> to vector<8x8xf32>
    %157 = arith.mulf %155, %156 : vector<8x8xf32>
    %158 = arith.addf %151, %157 : vector<8x8xf32>
    %159 = vector.extract_strided_slice %3 {offsets = [3, 0, 0], sizes = [1, 8, 8], strides = [1, 1, 1]} : vector<4x8x8xbf16> to vector<1x8x8xbf16>
    %160 = vector.shape_cast %159 : vector<1x8x8xbf16> to vector<8x8xbf16>
    %161 = vector.extract_strided_slice %137 {offsets = [0, 3], sizes = [8, 1], strides = [1, 1]} : vector<8x4xf32> to vector<8x1xf32>
    %162 = arith.extf %160 : vector<8x8xbf16> to vector<8x8xf32>
    %163 = vector.broadcast %161 : vector<8x1xf32> to vector<8x8xf32>
    %164 = arith.mulf %162, %163 : vector<8x8xf32>
    %165 = arith.addf %158, %164 : vector<8x8xf32>
    %cst_37 = arith.constant 2.500000e-01 : f32
    %166 = vector.broadcast %cst_37 : f32 to vector<8x8xf32>
    %167 = arith.mulf %165, %166 : vector<8x8xf32>
    %168 = arith.addf %167, %6 : vector<8x8xf32>
    %cst_38 = arith.constant dense<0xFF800000> : vector<8xf32>
    %169 = vector.multi_reduction <maximumf>, %168, %cst_38 [1] : vector<8x8xf32> to vector<8xf32>
    %170 = vector.shape_cast %169 : vector<8xf32> to vector<8x1xf32>
    %171 = vector.broadcast %170 : vector<8x1xf32> to vector<8x8xf32>
    %172 = arith.subf %168, %171 : vector<8x8xf32>
    %173 = math.exp %172 : vector<8x8xf32>
    %cst_39 = arith.constant dense<0.000000e+00> : vector<8xf32>
    %174 = vector.multi_reduction <add>, %173, %cst_39 [1] : vector<8x8xf32> to vector<8xf32>
    %175 = vector.shape_cast %174 : vector<8xf32> to vector<8x1xf32>
    %176 = tpu.reciprocal %175 {approx = true} : vector<8x1xf32> -> vector<8x1xf32>
    %177 = arith.mulf %176, %12 : vector<8x1xf32>
    %178 = vector.broadcast %177 : vector<8x1xf32> to vector<8x8xf32>
    %179 = arith.mulf %173, %178 : vector<8x8xf32>
    %180 = vector.broadcast %28 : vector<1x32xf32> to vector<8x32xf32>
    %181 = arith.mulf %40, %180 : vector<8x32xf32>
    %cst_40 = arith.constant dense<0.000000e+00> : vector<8x32xf32>
    %182 = tpu.matmul %179, %181, %cst_40 {dimension_numbers = #tpu.dot_dimension_numbers<[1], [0], [0], [1], [0, 0, 1, 1], [], []>} : vector<8x8xf32>, vector<8x32xf32>, vector<8x32xf32> -> vector<8x32xf32>
    %183 = arith.addf %130, %182 : vector<8x32xf32>
    %184 = vector.extract_strided_slice %3 {offsets = [0, 0, 0], sizes = [1, 8, 8], strides = [1, 1, 1]} : vector<4x8x8xbf16> to vector<1x8x8xbf16>
    %185 = vector.shape_cast %184 : vector<1x8x8xbf16> to vector<8x8xbf16>
    %186 = arith.extf %185 : vector<8x8xbf16> to vector<8x8xf32>
    %187 = arith.mulf %179, %186 : vector<8x8xf32>
    %188 = vector.extract_strided_slice %135 {offsets = [0, 0], sizes = [1, 32], strides = [1, 1]} : vector<4x32xf32> to vector<1x32xf32>
    %189 = vector.shape_cast %188 : vector<1x32xf32> to vector<1x32xf32>
    %190 = vector.broadcast %189 : vector<1x32xf32> to vector<8x32xf32>
    %cst_41 = arith.constant dense<0.000000e+00> : vector<8x32xf32>
    %191 = tpu.matmul %187, %190, %cst_41 {dimension_numbers = #tpu.dot_dimension_numbers<[1], [0], [0], [1], [0, 0, 1, 1], [], []>} : vector<8x8xf32>, vector<8x32xf32>, vector<8x32xf32> -> vector<8x32xf32>
    %192 = arith.addf %183, %191 : vector<8x32xf32>
    %193 = vector.extract_strided_slice %3 {offsets = [1, 0, 0], sizes = [1, 8, 8], strides = [1, 1, 1]} : vector<4x8x8xbf16> to vector<1x8x8xbf16>
    %194 = vector.shape_cast %193 : vector<1x8x8xbf16> to vector<8x8xbf16>
    %195 = arith.extf %194 : vector<8x8xbf16> to vector<8x8xf32>
    %196 = arith.mulf %179, %195 : vector<8x8xf32>
    %197 = vector.extract_strided_slice %135 {offsets = [1, 0], sizes = [1, 32], strides = [1, 1]} : vector<4x32xf32> to vector<1x32xf32>
    %198 = vector.shape_cast %197 : vector<1x32xf32> to vector<1x32xf32>
    %199 = vector.broadcast %198 : vector<1x32xf32> to vector<8x32xf32>
    %cst_42 = arith.constant dense<0.000000e+00> : vector<8x32xf32>
    %200 = tpu.matmul %196, %199, %cst_42 {dimension_numbers = #tpu.dot_dimension_numbers<[1], [0], [0], [1], [0, 0, 1, 1], [], []>} : vector<8x8xf32>, vector<8x32xf32>, vector<8x32xf32> -> vector<8x32xf32>
    %201 = arith.addf %192, %200 : vector<8x32xf32>
    %202 = vector.extract_strided_slice %3 {offsets = [2, 0, 0], sizes = [1, 8, 8], strides = [1, 1, 1]} : vector<4x8x8xbf16> to vector<1x8x8xbf16>
    %203 = vector.shape_cast %202 : vector<1x8x8xbf16> to vector<8x8xbf16>
    %204 = arith.extf %203 : vector<8x8xbf16> to vector<8x8xf32>
    %205 = arith.mulf %179, %204 : vector<8x8xf32>
    %206 = vector.extract_strided_slice %135 {offsets = [2, 0], sizes = [1, 32], strides = [1, 1]} : vector<4x32xf32> to vector<1x32xf32>
    %207 = vector.shape_cast %206 : vector<1x32xf32> to vector<1x32xf32>
    %208 = vector.broadcast %207 : vector<1x32xf32> to vector<8x32xf32>
    %cst_43 = arith.constant dense<0.000000e+00> : vector<8x32xf32>
    %209 = tpu.matmul %205, %208, %cst_43 {dimension_numbers = #tpu.dot_dimension_numbers<[1], [0], [0], [1], [0, 0, 1, 1], [], []>} : vector<8x8xf32>, vector<8x32xf32>, vector<8x32xf32> -> vector<8x32xf32>
    %210 = arith.addf %201, %209 : vector<8x32xf32>
    %211 = vector.extract_strided_slice %3 {offsets = [3, 0, 0], sizes = [1, 8, 8], strides = [1, 1, 1]} : vector<4x8x8xbf16> to vector<1x8x8xbf16>
    %212 = vector.shape_cast %211 : vector<1x8x8xbf16> to vector<8x8xbf16>
    %213 = arith.extf %212 : vector<8x8xbf16> to vector<8x8xf32>
    %214 = arith.mulf %179, %213 : vector<8x8xf32>
    %215 = vector.extract_strided_slice %135 {offsets = [3, 0], sizes = [1, 32], strides = [1, 1]} : vector<4x32xf32> to vector<1x32xf32>
    %216 = vector.shape_cast %215 : vector<1x32xf32> to vector<1x32xf32>
    %217 = vector.broadcast %216 : vector<1x32xf32> to vector<8x32xf32>
    %cst_44 = arith.constant dense<0.000000e+00> : vector<8x32xf32>
    %218 = tpu.matmul %214, %217, %cst_44 {dimension_numbers = #tpu.dot_dimension_numbers<[1], [0], [0], [1], [0, 0, 1, 1], [], []>} : vector<8x8xf32>, vector<8x32xf32>, vector<8x32xf32> -> vector<8x32xf32>
    %219 = arith.addf %210, %218 : vector<8x32xf32>
    %cst_45 = arith.constant 0.000000e+00 : f32
    %220 = vector.broadcast %cst_45 : f32 to vector<8x32xf32>
    %221 = arith.cmpf ogt, %219, %220 : vector<8x32xf32>
    %cst_46 = arith.constant 0.000000e+00 : f32
    %222 = vector.broadcast %cst_46 : f32 to vector<8x32xf32>
    %223 = arith.minimumf %219, %222 : vector<8x32xf32>
    %224 = math.exp %223 : vector<8x32xf32>
    %cst_47 = arith.constant 1.000000e+00 : f32
    %225 = vector.broadcast %cst_47 : f32 to vector<8x32xf32>
    %226 = arith.subf %224, %225 : vector<8x32xf32>
    %227 = arith.select %221, %219, %226 : vector<8x32xi1>, vector<8x32xf32>
    %228 = arith.mulf %227, %227 : vector<8x32xf32>
    %229 = tpu.concatenate %227, %228 in 1 : vector<8x32xf32>, vector<8x32xf32> -> vector<8x64xf32>
    %cst_48 = arith.constant dense<0.000000e+00> : vector<1x64xf32>
    %230 = tpu.matmul %13, %229, %cst_48 {dimension_numbers = #tpu.dot_dimension_numbers<[1], [0], [0], [1], [0, 0, 1, 1], [], []>} : vector<1x8xf32>, vector<8x64xf32>, vector<1x64xf32> -> vector<1x64xf32>
    %cst_49 = arith.constant 1.250000e-01 : f32
    %231 = vector.broadcast %cst_49 : f32 to vector<1x64xf32>
    %232 = arith.mulf %230, %231 : vector<1x64xf32>
    %233 = vector.extract_strided_slice %232 {offsets = [0, 0], sizes = [1, 32], strides = [1, 1]} : vector<1x64xf32> to vector<1x32xf32>
    %234 = vector.extract_strided_slice %232 {offsets = [0, 32], sizes = [1, 32], strides = [1, 1]} : vector<1x64xf32> to vector<1x32xf32>
    %235 = arith.mulf %233, %233 : vector<1x32xf32>
    %236 = arith.subf %234, %235 : vector<1x32xf32>
    %cst_50 = arith.constant 0.000000e+00 : f32
    %237 = vector.broadcast %cst_50 : f32 to vector<1x32xf32>
    %238 = arith.maximumf %236, %237 : vector<1x32xf32>
    %c0_51 = arith.constant 0 : index
    %c0_52 = arith.constant 0 : index
    %c0_53 = arith.constant 0 : index
    %c0_54 = arith.constant 0 : index
    %239 = vector.load %arg8[%c0_51, %c0_52, %c0_53, %c0_54] : memref<1x3x1x32xf32, #tpu.memory_space<vmem>>, vector<1x1x1x32xf32>
    %240 = vector.shape_cast %239 : vector<1x1x1x32xf32> to vector<1x32xf32>
    %241 = vector.broadcast %233 : vector<1x32xf32> to vector<8x32xf32>
    %242 = arith.subf %227, %241 : vector<8x32xf32>
    %cst_55 = arith.constant 9.99999974E-6 : f32
    %243 = vector.broadcast %cst_55 : f32 to vector<1x32xf32>
    %244 = arith.addf %238, %243 : vector<1x32xf32>
    %245 = math.rsqrt %244 : vector<1x32xf32>
    %246 = vector.broadcast %245 : vector<1x32xf32> to vector<8x32xf32>
    %247 = arith.mulf %242, %246 : vector<8x32xf32>
    %248 = vector.broadcast %240 : vector<1x32xf32> to vector<8x32xf32>
    %249 = arith.mulf %248, %247 : vector<8x32xf32>
    %c0_56 = arith.constant 0 : index
    %c0_57 = arith.constant 0 : index
    %c0_58 = arith.constant 0 : index
    %c0_59 = arith.constant 0 : index
    %250 = vector.load %arg9[%c0_56, %c0_57, %c0_58, %c0_59] : memref<1x3x1x32xf32, #tpu.memory_space<vmem>>, vector<1x1x1x32xf32>
    %251 = vector.shape_cast %250 : vector<1x1x1x32xf32> to vector<1x32xf32>
    %252 = vector.broadcast %251 : vector<1x32xf32> to vector<8x32xf32>
    %253 = arith.addf %249, %252 : vector<8x32xf32>
    %c0_60 = arith.constant 0 : index
    %c1 = arith.constant 1 : index
    %c0_61 = arith.constant 0 : index
    %c0_62 = arith.constant 0 : index
    %254 = vector.load %arg5[%c0_60, %c1, %c0_61, %c0_62] : memref<1x3x32x128xf32, #tpu.memory_space<vmem>>, vector<1x1x32x128xf32>
    %255 = vector.shape_cast %254 : vector<1x1x32x128xf32> to vector<32x128xf32>
    %c0_63 = arith.constant 0 : index
    %c1_64 = arith.constant 1 : index
    %c0_65 = arith.constant 0 : index
    %c0_66 = arith.constant 0 : index
    %256 = vector.load %arg6[%c0_63, %c1_64, %c0_65, %c0_66] : memref<1x3x1x128xf32, #tpu.memory_space<vmem>>, vector<1x1x1x128xf32>
    %257 = vector.shape_cast %256 : vector<1x1x1x128xf32> to vector<1x128xf32>
    %c0_67 = arith.constant 0 : index
    %c1_68 = arith.constant 1 : index
    %c0_69 = arith.constant 0 : index
    %c0_70 = arith.constant 0 : index
    %258 = vector.load %arg7[%c0_67, %c1_68, %c0_69, %c0_70] : memref<1x3x4x32xf32, #tpu.memory_space<vmem>>, vector<1x1x4x32xf32>
    %259 = vector.shape_cast %258 : vector<1x1x4x32xf32> to vector<4x32xf32>
    %cst_71 = arith.constant dense<0.000000e+00> : vector<8x128xf32>
    %260 = tpu.matmul %253, %255, %cst_71 {dimension_numbers = #tpu.dot_dimension_numbers<[1], [0], [0], [1], [0, 0, 1, 1], [], []>} : vector<8x32xf32>, vector<32x128xf32>, vector<8x128xf32> -> vector<8x128xf32>
    %261 = vector.broadcast %257 : vector<1x128xf32> to vector<8x128xf32>
    %262 = arith.addf %260, %261 : vector<8x128xf32>
    %263 = vector.extract_strided_slice %262 {offsets = [0, 0], sizes = [8, 32], strides = [1, 1]} : vector<8x128xf32> to vector<8x32xf32>
    %264 = vector.extract_strided_slice %262 {offsets = [0, 32], sizes = [8, 32], strides = [1, 1]} : vector<8x128xf32> to vector<8x32xf32>
    %265 = vector.extract_strided_slice %262 {offsets = [0, 64], sizes = [8, 32], strides = [1, 1]} : vector<8x128xf32> to vector<8x32xf32>
    %266 = vector.extract_strided_slice %262 {offsets = [0, 96], sizes = [8, 32], strides = [1, 1]} : vector<8x128xf32> to vector<8x32xf32>
    %267 = vector.extract_strided_slice %263 {offsets = [0, 0], sizes = [8, 16], strides = [1, 1]} : vector<8x32xf32> to vector<8x16xf32>
    %268 = vector.extract_strided_slice %264 {offsets = [0, 0], sizes = [8, 16], strides = [1, 1]} : vector<8x32xf32> to vector<8x16xf32>
    %269 = vector.extract_strided_slice %259 {offsets = [0, 0], sizes = [4, 16], strides = [1, 1]} : vector<4x32xf32> to vector<4x16xf32>
    %270 = vector.broadcast %21 : vector<1x32xf32> to vector<4x32xf32>
    %271 = arith.mulf %259, %270 : vector<4x32xf32>
    %cst_72 = arith.constant dense<0.000000e+00> : vector<8x8xf32>
    %272 = tpu.matmul %267, %268, %cst_72 {dimension_numbers = #tpu.dot_dimension_numbers<[1], [1], [0], [0], [0, 0, 1, 0], [], []>} : vector<8x16xf32>, vector<8x16xf32>, vector<8x8xf32> -> vector<8x8xf32>
    %cst_73 = arith.constant dense<0.000000e+00> : vector<8x4xf32>
    %273 = tpu.matmul %267, %269, %cst_73 {dimension_numbers = #tpu.dot_dimension_numbers<[1], [1], [0], [0], [0, 0, 1, 0], [], []>} : vector<8x16xf32>, vector<4x16xf32>, vector<8x4xf32> -> vector<8x4xf32>
    %274 = vector.extract_strided_slice %3 {offsets = [0, 0, 0], sizes = [1, 8, 8], strides = [1, 1, 1]} : vector<4x8x8xbf16> to vector<1x8x8xbf16>
    %275 = vector.shape_cast %274 : vector<1x8x8xbf16> to vector<8x8xbf16>
    %276 = vector.extract_strided_slice %273 {offsets = [0, 0], sizes = [8, 1], strides = [1, 1]} : vector<8x4xf32> to vector<8x1xf32>
    %277 = arith.extf %275 : vector<8x8xbf16> to vector<8x8xf32>
    %278 = vector.broadcast %276 : vector<8x1xf32> to vector<8x8xf32>
    %279 = arith.mulf %277, %278 : vector<8x8xf32>
    %280 = arith.addf %272, %279 : vector<8x8xf32>
    %281 = vector.extract_strided_slice %3 {offsets = [1, 0, 0], sizes = [1, 8, 8], strides = [1, 1, 1]} : vector<4x8x8xbf16> to vector<1x8x8xbf16>
    %282 = vector.shape_cast %281 : vector<1x8x8xbf16> to vector<8x8xbf16>
    %283 = vector.extract_strided_slice %273 {offsets = [0, 1], sizes = [8, 1], strides = [1, 1]} : vector<8x4xf32> to vector<8x1xf32>
    %284 = arith.extf %282 : vector<8x8xbf16> to vector<8x8xf32>
    %285 = vector.broadcast %283 : vector<8x1xf32> to vector<8x8xf32>
    %286 = arith.mulf %284, %285 : vector<8x8xf32>
    %287 = arith.addf %280, %286 : vector<8x8xf32>
    %288 = vector.extract_strided_slice %3 {offsets = [2, 0, 0], sizes = [1, 8, 8], strides = [1, 1, 1]} : vector<4x8x8xbf16> to vector<1x8x8xbf16>
    %289 = vector.shape_cast %288 : vector<1x8x8xbf16> to vector<8x8xbf16>
    %290 = vector.extract_strided_slice %273 {offsets = [0, 2], sizes = [8, 1], strides = [1, 1]} : vector<8x4xf32> to vector<8x1xf32>
    %291 = arith.extf %289 : vector<8x8xbf16> to vector<8x8xf32>
    %292 = vector.broadcast %290 : vector<8x1xf32> to vector<8x8xf32>
    %293 = arith.mulf %291, %292 : vector<8x8xf32>
    %294 = arith.addf %287, %293 : vector<8x8xf32>
    %295 = vector.extract_strided_slice %3 {offsets = [3, 0, 0], sizes = [1, 8, 8], strides = [1, 1, 1]} : vector<4x8x8xbf16> to vector<1x8x8xbf16>
    %296 = vector.shape_cast %295 : vector<1x8x8xbf16> to vector<8x8xbf16>
    %297 = vector.extract_strided_slice %273 {offsets = [0, 3], sizes = [8, 1], strides = [1, 1]} : vector<8x4xf32> to vector<8x1xf32>
    %298 = arith.extf %296 : vector<8x8xbf16> to vector<8x8xf32>
    %299 = vector.broadcast %297 : vector<8x1xf32> to vector<8x8xf32>
    %300 = arith.mulf %298, %299 : vector<8x8xf32>
    %301 = arith.addf %294, %300 : vector<8x8xf32>
    %cst_74 = arith.constant 2.500000e-01 : f32
    %302 = vector.broadcast %cst_74 : f32 to vector<8x8xf32>
    %303 = arith.mulf %301, %302 : vector<8x8xf32>
    %304 = arith.addf %303, %6 : vector<8x8xf32>
    %cst_75 = arith.constant dense<0xFF800000> : vector<8xf32>
    %305 = vector.multi_reduction <maximumf>, %304, %cst_75 [1] : vector<8x8xf32> to vector<8xf32>
    %306 = vector.shape_cast %305 : vector<8xf32> to vector<8x1xf32>
    %307 = vector.broadcast %306 : vector<8x1xf32> to vector<8x8xf32>
    %308 = arith.subf %304, %307 : vector<8x8xf32>
    %309 = math.exp %308 : vector<8x8xf32>
    %cst_76 = arith.constant dense<0.000000e+00> : vector<8xf32>
    %310 = vector.multi_reduction <add>, %309, %cst_76 [1] : vector<8x8xf32> to vector<8xf32>
    %311 = vector.shape_cast %310 : vector<8xf32> to vector<8x1xf32>
    %312 = tpu.reciprocal %311 {approx = true} : vector<8x1xf32> -> vector<8x1xf32>
    %313 = arith.mulf %312, %12 : vector<8x1xf32>
    %314 = vector.broadcast %313 : vector<8x1xf32> to vector<8x8xf32>
    %315 = arith.mulf %309, %314 : vector<8x8xf32>
    %316 = vector.broadcast %21 : vector<1x32xf32> to vector<8x32xf32>
    %317 = arith.mulf %265, %316 : vector<8x32xf32>
    %cst_77 = arith.constant dense<0.000000e+00> : vector<8x32xf32>
    %318 = tpu.matmul %315, %317, %cst_77 {dimension_numbers = #tpu.dot_dimension_numbers<[1], [0], [0], [1], [0, 0, 1, 1], [], []>} : vector<8x8xf32>, vector<8x32xf32>, vector<8x32xf32> -> vector<8x32xf32>
    %319 = arith.addf %266, %318 : vector<8x32xf32>
    %320 = vector.extract_strided_slice %3 {offsets = [0, 0, 0], sizes = [1, 8, 8], strides = [1, 1, 1]} : vector<4x8x8xbf16> to vector<1x8x8xbf16>
    %321 = vector.shape_cast %320 : vector<1x8x8xbf16> to vector<8x8xbf16>
    %322 = arith.extf %321 : vector<8x8xbf16> to vector<8x8xf32>
    %323 = arith.mulf %315, %322 : vector<8x8xf32>
    %324 = vector.extract_strided_slice %271 {offsets = [0, 0], sizes = [1, 32], strides = [1, 1]} : vector<4x32xf32> to vector<1x32xf32>
    %325 = vector.shape_cast %324 : vector<1x32xf32> to vector<1x32xf32>
    %326 = vector.broadcast %325 : vector<1x32xf32> to vector<8x32xf32>
    %cst_78 = arith.constant dense<0.000000e+00> : vector<8x32xf32>
    %327 = tpu.matmul %323, %326, %cst_78 {dimension_numbers = #tpu.dot_dimension_numbers<[1], [0], [0], [1], [0, 0, 1, 1], [], []>} : vector<8x8xf32>, vector<8x32xf32>, vector<8x32xf32> -> vector<8x32xf32>
    %328 = arith.addf %319, %327 : vector<8x32xf32>
    %329 = vector.extract_strided_slice %3 {offsets = [1, 0, 0], sizes = [1, 8, 8], strides = [1, 1, 1]} : vector<4x8x8xbf16> to vector<1x8x8xbf16>
    %330 = vector.shape_cast %329 : vector<1x8x8xbf16> to vector<8x8xbf16>
    %331 = arith.extf %330 : vector<8x8xbf16> to vector<8x8xf32>
    %332 = arith.mulf %315, %331 : vector<8x8xf32>
    %333 = vector.extract_strided_slice %271 {offsets = [1, 0], sizes = [1, 32], strides = [1, 1]} : vector<4x32xf32> to vector<1x32xf32>
    %334 = vector.shape_cast %333 : vector<1x32xf32> to vector<1x32xf32>
    %335 = vector.broadcast %334 : vector<1x32xf32> to vector<8x32xf32>
    %cst_79 = arith.constant dense<0.000000e+00> : vector<8x32xf32>
    %336 = tpu.matmul %332, %335, %cst_79 {dimension_numbers = #tpu.dot_dimension_numbers<[1], [0], [0], [1], [0, 0, 1, 1], [], []>} : vector<8x8xf32>, vector<8x32xf32>, vector<8x32xf32> -> vector<8x32xf32>
    %337 = arith.addf %328, %336 : vector<8x32xf32>
    %338 = vector.extract_strided_slice %3 {offsets = [2, 0, 0], sizes = [1, 8, 8], strides = [1, 1, 1]} : vector<4x8x8xbf16> to vector<1x8x8xbf16>
    %339 = vector.shape_cast %338 : vector<1x8x8xbf16> to vector<8x8xbf16>
    %340 = arith.extf %339 : vector<8x8xbf16> to vector<8x8xf32>
    %341 = arith.mulf %315, %340 : vector<8x8xf32>
    %342 = vector.extract_strided_slice %271 {offsets = [2, 0], sizes = [1, 32], strides = [1, 1]} : vector<4x32xf32> to vector<1x32xf32>
    %343 = vector.shape_cast %342 : vector<1x32xf32> to vector<1x32xf32>
    %344 = vector.broadcast %343 : vector<1x32xf32> to vector<8x32xf32>
    %cst_80 = arith.constant dense<0.000000e+00> : vector<8x32xf32>
    %345 = tpu.matmul %341, %344, %cst_80 {dimension_numbers = #tpu.dot_dimension_numbers<[1], [0], [0], [1], [0, 0, 1, 1], [], []>} : vector<8x8xf32>, vector<8x32xf32>, vector<8x32xf32> -> vector<8x32xf32>
    %346 = arith.addf %337, %345 : vector<8x32xf32>
    %347 = vector.extract_strided_slice %3 {offsets = [3, 0, 0], sizes = [1, 8, 8], strides = [1, 1, 1]} : vector<4x8x8xbf16> to vector<1x8x8xbf16>
    %348 = vector.shape_cast %347 : vector<1x8x8xbf16> to vector<8x8xbf16>
    %349 = arith.extf %348 : vector<8x8xbf16> to vector<8x8xf32>
    %350 = arith.mulf %315, %349 : vector<8x8xf32>
    %351 = vector.extract_strided_slice %271 {offsets = [3, 0], sizes = [1, 32], strides = [1, 1]} : vector<4x32xf32> to vector<1x32xf32>
    %352 = vector.shape_cast %351 : vector<1x32xf32> to vector<1x32xf32>
    %353 = vector.broadcast %352 : vector<1x32xf32> to vector<8x32xf32>
    %cst_81 = arith.constant dense<0.000000e+00> : vector<8x32xf32>
    %354 = tpu.matmul %350, %353, %cst_81 {dimension_numbers = #tpu.dot_dimension_numbers<[1], [0], [0], [1], [0, 0, 1, 1], [], []>} : vector<8x8xf32>, vector<8x32xf32>, vector<8x32xf32> -> vector<8x32xf32>
    %355 = arith.addf %346, %354 : vector<8x32xf32>
    %356 = vector.extract_strided_slice %263 {offsets = [0, 16], sizes = [8, 16], strides = [1, 1]} : vector<8x32xf32> to vector<8x16xf32>
    %357 = vector.extract_strided_slice %264 {offsets = [0, 16], sizes = [8, 16], strides = [1, 1]} : vector<8x32xf32> to vector<8x16xf32>
    %358 = vector.extract_strided_slice %259 {offsets = [0, 16], sizes = [4, 16], strides = [1, 1]} : vector<4x32xf32> to vector<4x16xf32>
    %359 = vector.broadcast %28 : vector<1x32xf32> to vector<4x32xf32>
    %360 = arith.mulf %259, %359 : vector<4x32xf32>
    %cst_82 = arith.constant dense<0.000000e+00> : vector<8x8xf32>
    %361 = tpu.matmul %356, %357, %cst_82 {dimension_numbers = #tpu.dot_dimension_numbers<[1], [1], [0], [0], [0, 0, 1, 0], [], []>} : vector<8x16xf32>, vector<8x16xf32>, vector<8x8xf32> -> vector<8x8xf32>
    %cst_83 = arith.constant dense<0.000000e+00> : vector<8x4xf32>
    %362 = tpu.matmul %356, %358, %cst_83 {dimension_numbers = #tpu.dot_dimension_numbers<[1], [1], [0], [0], [0, 0, 1, 0], [], []>} : vector<8x16xf32>, vector<4x16xf32>, vector<8x4xf32> -> vector<8x4xf32>
    %363 = vector.extract_strided_slice %3 {offsets = [0, 0, 0], sizes = [1, 8, 8], strides = [1, 1, 1]} : vector<4x8x8xbf16> to vector<1x8x8xbf16>
    %364 = vector.shape_cast %363 : vector<1x8x8xbf16> to vector<8x8xbf16>
    %365 = vector.extract_strided_slice %362 {offsets = [0, 0], sizes = [8, 1], strides = [1, 1]} : vector<8x4xf32> to vector<8x1xf32>
    %366 = arith.extf %364 : vector<8x8xbf16> to vector<8x8xf32>
    %367 = vector.broadcast %365 : vector<8x1xf32> to vector<8x8xf32>
    %368 = arith.mulf %366, %367 : vector<8x8xf32>
    %369 = arith.addf %361, %368 : vector<8x8xf32>
    %370 = vector.extract_strided_slice %3 {offsets = [1, 0, 0], sizes = [1, 8, 8], strides = [1, 1, 1]} : vector<4x8x8xbf16> to vector<1x8x8xbf16>
    %371 = vector.shape_cast %370 : vector<1x8x8xbf16> to vector<8x8xbf16>
    %372 = vector.extract_strided_slice %362 {offsets = [0, 1], sizes = [8, 1], strides = [1, 1]} : vector<8x4xf32> to vector<8x1xf32>
    %373 = arith.extf %371 : vector<8x8xbf16> to vector<8x8xf32>
    %374 = vector.broadcast %372 : vector<8x1xf32> to vector<8x8xf32>
    %375 = arith.mulf %373, %374 : vector<8x8xf32>
    %376 = arith.addf %369, %375 : vector<8x8xf32>
    %377 = vector.extract_strided_slice %3 {offsets = [2, 0, 0], sizes = [1, 8, 8], strides = [1, 1, 1]} : vector<4x8x8xbf16> to vector<1x8x8xbf16>
    %378 = vector.shape_cast %377 : vector<1x8x8xbf16> to vector<8x8xbf16>
    %379 = vector.extract_strided_slice %362 {offsets = [0, 2], sizes = [8, 1], strides = [1, 1]} : vector<8x4xf32> to vector<8x1xf32>
    %380 = arith.extf %378 : vector<8x8xbf16> to vector<8x8xf32>
    %381 = vector.broadcast %379 : vector<8x1xf32> to vector<8x8xf32>
    %382 = arith.mulf %380, %381 : vector<8x8xf32>
    %383 = arith.addf %376, %382 : vector<8x8xf32>
    %384 = vector.extract_strided_slice %3 {offsets = [3, 0, 0], sizes = [1, 8, 8], strides = [1, 1, 1]} : vector<4x8x8xbf16> to vector<1x8x8xbf16>
    %385 = vector.shape_cast %384 : vector<1x8x8xbf16> to vector<8x8xbf16>
    %386 = vector.extract_strided_slice %362 {offsets = [0, 3], sizes = [8, 1], strides = [1, 1]} : vector<8x4xf32> to vector<8x1xf32>
    %387 = arith.extf %385 : vector<8x8xbf16> to vector<8x8xf32>
    %388 = vector.broadcast %386 : vector<8x1xf32> to vector<8x8xf32>
    %389 = arith.mulf %387, %388 : vector<8x8xf32>
    %390 = arith.addf %383, %389 : vector<8x8xf32>
    %cst_84 = arith.constant 2.500000e-01 : f32
    %391 = vector.broadcast %cst_84 : f32 to vector<8x8xf32>
    %392 = arith.mulf %390, %391 : vector<8x8xf32>
    %393 = arith.addf %392, %6 : vector<8x8xf32>
    %cst_85 = arith.constant dense<0xFF800000> : vector<8xf32>
    %394 = vector.multi_reduction <maximumf>, %393, %cst_85 [1] : vector<8x8xf32> to vector<8xf32>
    %395 = vector.shape_cast %394 : vector<8xf32> to vector<8x1xf32>
    %396 = vector.broadcast %395 : vector<8x1xf32> to vector<8x8xf32>
    %397 = arith.subf %393, %396 : vector<8x8xf32>
    %398 = math.exp %397 : vector<8x8xf32>
    %cst_86 = arith.constant dense<0.000000e+00> : vector<8xf32>
    %399 = vector.multi_reduction <add>, %398, %cst_86 [1] : vector<8x8xf32> to vector<8xf32>
    %400 = vector.shape_cast %399 : vector<8xf32> to vector<8x1xf32>
    %401 = tpu.reciprocal %400 {approx = true} : vector<8x1xf32> -> vector<8x1xf32>
    %402 = arith.mulf %401, %12 : vector<8x1xf32>
    %403 = vector.broadcast %402 : vector<8x1xf32> to vector<8x8xf32>
    %404 = arith.mulf %398, %403 : vector<8x8xf32>
    %405 = vector.broadcast %28 : vector<1x32xf32> to vector<8x32xf32>
    %406 = arith.mulf %265, %405 : vector<8x32xf32>
    %cst_87 = arith.constant dense<0.000000e+00> : vector<8x32xf32>
    %407 = tpu.matmul %404, %406, %cst_87 {dimension_numbers = #tpu.dot_dimension_numbers<[1], [0], [0], [1], [0, 0, 1, 1], [], []>} : vector<8x8xf32>, vector<8x32xf32>, vector<8x32xf32> -> vector<8x32xf32>
    %408 = arith.addf %355, %407 : vector<8x32xf32>
    %409 = vector.extract_strided_slice %3 {offsets = [0, 0, 0], sizes = [1, 8, 8], strides = [1, 1, 1]} : vector<4x8x8xbf16> to vector<1x8x8xbf16>
    %410 = vector.shape_cast %409 : vector<1x8x8xbf16> to vector<8x8xbf16>
    %411 = arith.extf %410 : vector<8x8xbf16> to vector<8x8xf32>
    %412 = arith.mulf %404, %411 : vector<8x8xf32>
    %413 = vector.extract_strided_slice %360 {offsets = [0, 0], sizes = [1, 32], strides = [1, 1]} : vector<4x32xf32> to vector<1x32xf32>
    %414 = vector.shape_cast %413 : vector<1x32xf32> to vector<1x32xf32>
    %415 = vector.broadcast %414 : vector<1x32xf32> to vector<8x32xf32>
    %cst_88 = arith.constant dense<0.000000e+00> : vector<8x32xf32>
    %416 = tpu.matmul %412, %415, %cst_88 {dimension_numbers = #tpu.dot_dimension_numbers<[1], [0], [0], [1], [0, 0, 1, 1], [], []>} : vector<8x8xf32>, vector<8x32xf32>, vector<8x32xf32> -> vector<8x32xf32>
    %417 = arith.addf %408, %416 : vector<8x32xf32>
    %418 = vector.extract_strided_slice %3 {offsets = [1, 0, 0], sizes = [1, 8, 8], strides = [1, 1, 1]} : vector<4x8x8xbf16> to vector<1x8x8xbf16>
    %419 = vector.shape_cast %418 : vector<1x8x8xbf16> to vector<8x8xbf16>
    %420 = arith.extf %419 : vector<8x8xbf16> to vector<8x8xf32>
    %421 = arith.mulf %404, %420 : vector<8x8xf32>
    %422 = vector.extract_strided_slice %360 {offsets = [1, 0], sizes = [1, 32], strides = [1, 1]} : vector<4x32xf32> to vector<1x32xf32>
    %423 = vector.shape_cast %422 : vector<1x32xf32> to vector<1x32xf32>
    %424 = vector.broadcast %423 : vector<1x32xf32> to vector<8x32xf32>
    %cst_89 = arith.constant dense<0.000000e+00> : vector<8x32xf32>
    %425 = tpu.matmul %421, %424, %cst_89 {dimension_numbers = #tpu.dot_dimension_numbers<[1], [0], [0], [1], [0, 0, 1, 1], [], []>} : vector<8x8xf32>, vector<8x32xf32>, vector<8x32xf32> -> vector<8x32xf32>
    %426 = arith.addf %417, %425 : vector<8x32xf32>
    %427 = vector.extract_strided_slice %3 {offsets = [2, 0, 0], sizes = [1, 8, 8], strides = [1, 1, 1]} : vector<4x8x8xbf16> to vector<1x8x8xbf16>
    %428 = vector.shape_cast %427 : vector<1x8x8xbf16> to vector<8x8xbf16>
    %429 = arith.extf %428 : vector<8x8xbf16> to vector<8x8xf32>
    %430 = arith.mulf %404, %429 : vector<8x8xf32>
    %431 = vector.extract_strided_slice %360 {offsets = [2, 0], sizes = [1, 32], strides = [1, 1]} : vector<4x32xf32> to vector<1x32xf32>
    %432 = vector.shape_cast %431 : vector<1x32xf32> to vector<1x32xf32>
    %433 = vector.broadcast %432 : vector<1x32xf32> to vector<8x32xf32>
    %cst_90 = arith.constant dense<0.000000e+00> : vector<8x32xf32>
    %434 = tpu.matmul %430, %433, %cst_90 {dimension_numbers = #tpu.dot_dimension_numbers<[1], [0], [0], [1], [0, 0, 1, 1], [], []>} : vector<8x8xf32>, vector<8x32xf32>, vector<8x32xf32> -> vector<8x32xf32>
    %435 = arith.addf %426, %434 : vector<8x32xf32>
    %436 = vector.extract_strided_slice %3 {offsets = [3, 0, 0], sizes = [1, 8, 8], strides = [1, 1, 1]} : vector<4x8x8xbf16> to vector<1x8x8xbf16>
    %437 = vector.shape_cast %436 : vector<1x8x8xbf16> to vector<8x8xbf16>
    %438 = arith.extf %437 : vector<8x8xbf16> to vector<8x8xf32>
    %439 = arith.mulf %404, %438 : vector<8x8xf32>
    %440 = vector.extract_strided_slice %360 {offsets = [3, 0], sizes = [1, 32], strides = [1, 1]} : vector<4x32xf32> to vector<1x32xf32>
    %441 = vector.shape_cast %440 : vector<1x32xf32> to vector<1x32xf32>
    %442 = vector.broadcast %441 : vector<1x32xf32> to vector<8x32xf32>
    %cst_91 = arith.constant dense<0.000000e+00> : vector<8x32xf32>
    %443 = tpu.matmul %439, %442, %cst_91 {dimension_numbers = #tpu.dot_dimension_numbers<[1], [0], [0], [1], [0, 0, 1, 1], [], []>} : vector<8x8xf32>, vector<8x32xf32>, vector<8x32xf32> -> vector<8x32xf32>
    %444 = arith.addf %435, %443 : vector<8x32xf32>
    %cst_92 = arith.constant 0.000000e+00 : f32
    %445 = vector.broadcast %cst_92 : f32 to vector<8x32xf32>
    %446 = arith.cmpf ogt, %444, %445 : vector<8x32xf32>
    %cst_93 = arith.constant 0.000000e+00 : f32
    %447 = vector.broadcast %cst_93 : f32 to vector<8x32xf32>
    %448 = arith.minimumf %444, %447 : vector<8x32xf32>
    %449 = math.exp %448 : vector<8x32xf32>
    %cst_94 = arith.constant 1.000000e+00 : f32
    %450 = vector.broadcast %cst_94 : f32 to vector<8x32xf32>
    %451 = arith.subf %449, %450 : vector<8x32xf32>
    %452 = arith.select %446, %444, %451 : vector<8x32xi1>, vector<8x32xf32>
    %453 = arith.mulf %452, %452 : vector<8x32xf32>
    %454 = tpu.concatenate %452, %453 in 1 : vector<8x32xf32>, vector<8x32xf32> -> vector<8x64xf32>
    %cst_95 = arith.constant dense<0.000000e+00> : vector<1x64xf32>
    %455 = tpu.matmul %13, %454, %cst_95 {dimension_numbers = #tpu.dot_dimension_numbers<[1], [0], [0], [1], [0, 0, 1, 1], [], []>} : vector<1x8xf32>, vector<8x64xf32>, vector<1x64xf32> -> vector<1x64xf32>
    %cst_96 = arith.constant 1.250000e-01 : f32
    %456 = vector.broadcast %cst_96 : f32 to vector<1x64xf32>
    %457 = arith.mulf %455, %456 : vector<1x64xf32>
    %458 = vector.extract_strided_slice %457 {offsets = [0, 0], sizes = [1, 32], strides = [1, 1]} : vector<1x64xf32> to vector<1x32xf32>
    %459 = vector.extract_strided_slice %457 {offsets = [0, 32], sizes = [1, 32], strides = [1, 1]} : vector<1x64xf32> to vector<1x32xf32>
    %460 = arith.mulf %458, %458 : vector<1x32xf32>
    %461 = arith.subf %459, %460 : vector<1x32xf32>
    %cst_97 = arith.constant 0.000000e+00 : f32
    %462 = vector.broadcast %cst_97 : f32 to vector<1x32xf32>
    %463 = arith.maximumf %461, %462 : vector<1x32xf32>
    %c0_98 = arith.constant 0 : index
    %c1_99 = arith.constant 1 : index
    %c0_100 = arith.constant 0 : index
    %c0_101 = arith.constant 0 : index
    %464 = vector.load %arg8[%c0_98, %c1_99, %c0_100, %c0_101] : memref<1x3x1x32xf32, #tpu.memory_space<vmem>>, vector<1x1x1x32xf32>
    %465 = vector.shape_cast %464 : vector<1x1x1x32xf32> to vector<1x32xf32>
    %466 = vector.broadcast %458 : vector<1x32xf32> to vector<8x32xf32>
    %467 = arith.subf %452, %466 : vector<8x32xf32>
    %cst_102 = arith.constant 9.99999974E-6 : f32
    %468 = vector.broadcast %cst_102 : f32 to vector<1x32xf32>
    %469 = arith.addf %463, %468 : vector<1x32xf32>
    %470 = math.rsqrt %469 : vector<1x32xf32>
    %471 = vector.broadcast %470 : vector<1x32xf32> to vector<8x32xf32>
    %472 = arith.mulf %467, %471 : vector<8x32xf32>
    %473 = vector.broadcast %465 : vector<1x32xf32> to vector<8x32xf32>
    %474 = arith.mulf %473, %472 : vector<8x32xf32>
    %c0_103 = arith.constant 0 : index
    %c1_104 = arith.constant 1 : index
    %c0_105 = arith.constant 0 : index
    %c0_106 = arith.constant 0 : index
    %475 = vector.load %arg9[%c0_103, %c1_104, %c0_105, %c0_106] : memref<1x3x1x32xf32, #tpu.memory_space<vmem>>, vector<1x1x1x32xf32>
    %476 = vector.shape_cast %475 : vector<1x1x1x32xf32> to vector<1x32xf32>
    %477 = vector.broadcast %476 : vector<1x32xf32> to vector<8x32xf32>
    %478 = arith.addf %474, %477 : vector<8x32xf32>
    %c0_107 = arith.constant 0 : index
    %c2 = arith.constant 2 : index
    %c0_108 = arith.constant 0 : index
    %c0_109 = arith.constant 0 : index
    %479 = vector.load %arg5[%c0_107, %c2, %c0_108, %c0_109] : memref<1x3x32x128xf32, #tpu.memory_space<vmem>>, vector<1x1x32x128xf32>
    %480 = vector.shape_cast %479 : vector<1x1x32x128xf32> to vector<32x128xf32>
    %c0_110 = arith.constant 0 : index
    %c2_111 = arith.constant 2 : index
    %c0_112 = arith.constant 0 : index
    %c0_113 = arith.constant 0 : index
    %481 = vector.load %arg6[%c0_110, %c2_111, %c0_112, %c0_113] : memref<1x3x1x128xf32, #tpu.memory_space<vmem>>, vector<1x1x1x128xf32>
    %482 = vector.shape_cast %481 : vector<1x1x1x128xf32> to vector<1x128xf32>
    %c0_114 = arith.constant 0 : index
    %c2_115 = arith.constant 2 : index
    %c0_116 = arith.constant 0 : index
    %c0_117 = arith.constant 0 : index
    %483 = vector.load %arg7[%c0_114, %c2_115, %c0_116, %c0_117] : memref<1x3x4x32xf32, #tpu.memory_space<vmem>>, vector<1x1x4x32xf32>
    %484 = vector.shape_cast %483 : vector<1x1x4x32xf32> to vector<4x32xf32>
    %cst_118 = arith.constant dense<0.000000e+00> : vector<8x128xf32>
    %485 = tpu.matmul %478, %480, %cst_118 {dimension_numbers = #tpu.dot_dimension_numbers<[1], [0], [0], [1], [0, 0, 1, 1], [], []>} : vector<8x32xf32>, vector<32x128xf32>, vector<8x128xf32> -> vector<8x128xf32>
    %486 = vector.broadcast %482 : vector<1x128xf32> to vector<8x128xf32>
    %487 = arith.addf %485, %486 : vector<8x128xf32>
    %488 = vector.extract_strided_slice %487 {offsets = [0, 0], sizes = [8, 32], strides = [1, 1]} : vector<8x128xf32> to vector<8x32xf32>
    %489 = vector.extract_strided_slice %487 {offsets = [0, 32], sizes = [8, 32], strides = [1, 1]} : vector<8x128xf32> to vector<8x32xf32>
    %490 = vector.extract_strided_slice %487 {offsets = [0, 64], sizes = [8, 32], strides = [1, 1]} : vector<8x128xf32> to vector<8x32xf32>
    %491 = vector.extract_strided_slice %487 {offsets = [0, 96], sizes = [8, 32], strides = [1, 1]} : vector<8x128xf32> to vector<8x32xf32>
    %492 = vector.extract_strided_slice %488 {offsets = [0, 0], sizes = [8, 16], strides = [1, 1]} : vector<8x32xf32> to vector<8x16xf32>
    %493 = vector.extract_strided_slice %489 {offsets = [0, 0], sizes = [8, 16], strides = [1, 1]} : vector<8x32xf32> to vector<8x16xf32>
    %494 = vector.extract_strided_slice %484 {offsets = [0, 0], sizes = [4, 16], strides = [1, 1]} : vector<4x32xf32> to vector<4x16xf32>
    %495 = vector.broadcast %21 : vector<1x32xf32> to vector<4x32xf32>
    %496 = arith.mulf %484, %495 : vector<4x32xf32>
    %cst_119 = arith.constant dense<0.000000e+00> : vector<8x8xf32>
    %497 = tpu.matmul %492, %493, %cst_119 {dimension_numbers = #tpu.dot_dimension_numbers<[1], [1], [0], [0], [0, 0, 1, 0], [], []>} : vector<8x16xf32>, vector<8x16xf32>, vector<8x8xf32> -> vector<8x8xf32>
    %cst_120 = arith.constant dense<0.000000e+00> : vector<8x4xf32>
    %498 = tpu.matmul %492, %494, %cst_120 {dimension_numbers = #tpu.dot_dimension_numbers<[1], [1], [0], [0], [0, 0, 1, 0], [], []>} : vector<8x16xf32>, vector<4x16xf32>, vector<8x4xf32> -> vector<8x4xf32>
    %499 = vector.extract_strided_slice %3 {offsets = [0, 0, 0], sizes = [1, 8, 8], strides = [1, 1, 1]} : vector<4x8x8xbf16> to vector<1x8x8xbf16>
    %500 = vector.shape_cast %499 : vector<1x8x8xbf16> to vector<8x8xbf16>
    %501 = vector.extract_strided_slice %498 {offsets = [0, 0], sizes = [8, 1], strides = [1, 1]} : vector<8x4xf32> to vector<8x1xf32>
    %502 = arith.extf %500 : vector<8x8xbf16> to vector<8x8xf32>
    %503 = vector.broadcast %501 : vector<8x1xf32> to vector<8x8xf32>
    %504 = arith.mulf %502, %503 : vector<8x8xf32>
    %505 = arith.addf %497, %504 : vector<8x8xf32>
    %506 = vector.extract_strided_slice %3 {offsets = [1, 0, 0], sizes = [1, 8, 8], strides = [1, 1, 1]} : vector<4x8x8xbf16> to vector<1x8x8xbf16>
    %507 = vector.shape_cast %506 : vector<1x8x8xbf16> to vector<8x8xbf16>
    %508 = vector.extract_strided_slice %498 {offsets = [0, 1], sizes = [8, 1], strides = [1, 1]} : vector<8x4xf32> to vector<8x1xf32>
    %509 = arith.extf %507 : vector<8x8xbf16> to vector<8x8xf32>
    %510 = vector.broadcast %508 : vector<8x1xf32> to vector<8x8xf32>
    %511 = arith.mulf %509, %510 : vector<8x8xf32>
    %512 = arith.addf %505, %511 : vector<8x8xf32>
    %513 = vector.extract_strided_slice %3 {offsets = [2, 0, 0], sizes = [1, 8, 8], strides = [1, 1, 1]} : vector<4x8x8xbf16> to vector<1x8x8xbf16>
    %514 = vector.shape_cast %513 : vector<1x8x8xbf16> to vector<8x8xbf16>
    %515 = vector.extract_strided_slice %498 {offsets = [0, 2], sizes = [8, 1], strides = [1, 1]} : vector<8x4xf32> to vector<8x1xf32>
    %516 = arith.extf %514 : vector<8x8xbf16> to vector<8x8xf32>
    %517 = vector.broadcast %515 : vector<8x1xf32> to vector<8x8xf32>
    %518 = arith.mulf %516, %517 : vector<8x8xf32>
    %519 = arith.addf %512, %518 : vector<8x8xf32>
    %520 = vector.extract_strided_slice %3 {offsets = [3, 0, 0], sizes = [1, 8, 8], strides = [1, 1, 1]} : vector<4x8x8xbf16> to vector<1x8x8xbf16>
    %521 = vector.shape_cast %520 : vector<1x8x8xbf16> to vector<8x8xbf16>
    %522 = vector.extract_strided_slice %498 {offsets = [0, 3], sizes = [8, 1], strides = [1, 1]} : vector<8x4xf32> to vector<8x1xf32>
    %523 = arith.extf %521 : vector<8x8xbf16> to vector<8x8xf32>
    %524 = vector.broadcast %522 : vector<8x1xf32> to vector<8x8xf32>
    %525 = arith.mulf %523, %524 : vector<8x8xf32>
    %526 = arith.addf %519, %525 : vector<8x8xf32>
    %cst_121 = arith.constant 2.500000e-01 : f32
    %527 = vector.broadcast %cst_121 : f32 to vector<8x8xf32>
    %528 = arith.mulf %526, %527 : vector<8x8xf32>
    %529 = arith.addf %528, %6 : vector<8x8xf32>
    %cst_122 = arith.constant dense<0xFF800000> : vector<8xf32>
    %530 = vector.multi_reduction <maximumf>, %529, %cst_122 [1] : vector<8x8xf32> to vector<8xf32>
    %531 = vector.shape_cast %530 : vector<8xf32> to vector<8x1xf32>
    %532 = vector.broadcast %531 : vector<8x1xf32> to vector<8x8xf32>
    %533 = arith.subf %529, %532 : vector<8x8xf32>
    %534 = math.exp %533 : vector<8x8xf32>
    %cst_123 = arith.constant dense<0.000000e+00> : vector<8xf32>
    %535 = vector.multi_reduction <add>, %534, %cst_123 [1] : vector<8x8xf32> to vector<8xf32>
    %536 = vector.shape_cast %535 : vector<8xf32> to vector<8x1xf32>
    %537 = tpu.reciprocal %536 {approx = true} : vector<8x1xf32> -> vector<8x1xf32>
    %538 = arith.mulf %537, %12 : vector<8x1xf32>
    %539 = vector.broadcast %538 : vector<8x1xf32> to vector<8x8xf32>
    %540 = arith.mulf %534, %539 : vector<8x8xf32>
    %541 = vector.broadcast %21 : vector<1x32xf32> to vector<8x32xf32>
    %542 = arith.mulf %490, %541 : vector<8x32xf32>
    %cst_124 = arith.constant dense<0.000000e+00> : vector<8x32xf32>
    %543 = tpu.matmul %540, %542, %cst_124 {dimension_numbers = #tpu.dot_dimension_numbers<[1], [0], [0], [1], [0, 0, 1, 1], [], []>} : vector<8x8xf32>, vector<8x32xf32>, vector<8x32xf32> -> vector<8x32xf32>
    %544 = arith.addf %491, %543 : vector<8x32xf32>
    %545 = vector.extract_strided_slice %3 {offsets = [0, 0, 0], sizes = [1, 8, 8], strides = [1, 1, 1]} : vector<4x8x8xbf16> to vector<1x8x8xbf16>
    %546 = vector.shape_cast %545 : vector<1x8x8xbf16> to vector<8x8xbf16>
    %547 = arith.extf %546 : vector<8x8xbf16> to vector<8x8xf32>
    %548 = arith.mulf %540, %547 : vector<8x8xf32>
    %549 = vector.extract_strided_slice %496 {offsets = [0, 0], sizes = [1, 32], strides = [1, 1]} : vector<4x32xf32> to vector<1x32xf32>
    %550 = vector.shape_cast %549 : vector<1x32xf32> to vector<1x32xf32>
    %551 = vector.broadcast %550 : vector<1x32xf32> to vector<8x32xf32>
    %cst_125 = arith.constant dense<0.000000e+00> : vector<8x32xf32>
    %552 = tpu.matmul %548, %551, %cst_125 {dimension_numbers = #tpu.dot_dimension_numbers<[1], [0], [0], [1], [0, 0, 1, 1], [], []>} : vector<8x8xf32>, vector<8x32xf32>, vector<8x32xf32> -> vector<8x32xf32>
    %553 = arith.addf %544, %552 : vector<8x32xf32>
    %554 = vector.extract_strided_slice %3 {offsets = [1, 0, 0], sizes = [1, 8, 8], strides = [1, 1, 1]} : vector<4x8x8xbf16> to vector<1x8x8xbf16>
    %555 = vector.shape_cast %554 : vector<1x8x8xbf16> to vector<8x8xbf16>
    %556 = arith.extf %555 : vector<8x8xbf16> to vector<8x8xf32>
    %557 = arith.mulf %540, %556 : vector<8x8xf32>
    %558 = vector.extract_strided_slice %496 {offsets = [1, 0], sizes = [1, 32], strides = [1, 1]} : vector<4x32xf32> to vector<1x32xf32>
    %559 = vector.shape_cast %558 : vector<1x32xf32> to vector<1x32xf32>
    %560 = vector.broadcast %559 : vector<1x32xf32> to vector<8x32xf32>
    %cst_126 = arith.constant dense<0.000000e+00> : vector<8x32xf32>
    %561 = tpu.matmul %557, %560, %cst_126 {dimension_numbers = #tpu.dot_dimension_numbers<[1], [0], [0], [1], [0, 0, 1, 1], [], []>} : vector<8x8xf32>, vector<8x32xf32>, vector<8x32xf32> -> vector<8x32xf32>
    %562 = arith.addf %553, %561 : vector<8x32xf32>
    %563 = vector.extract_strided_slice %3 {offsets = [2, 0, 0], sizes = [1, 8, 8], strides = [1, 1, 1]} : vector<4x8x8xbf16> to vector<1x8x8xbf16>
    %564 = vector.shape_cast %563 : vector<1x8x8xbf16> to vector<8x8xbf16>
    %565 = arith.extf %564 : vector<8x8xbf16> to vector<8x8xf32>
    %566 = arith.mulf %540, %565 : vector<8x8xf32>
    %567 = vector.extract_strided_slice %496 {offsets = [2, 0], sizes = [1, 32], strides = [1, 1]} : vector<4x32xf32> to vector<1x32xf32>
    %568 = vector.shape_cast %567 : vector<1x32xf32> to vector<1x32xf32>
    %569 = vector.broadcast %568 : vector<1x32xf32> to vector<8x32xf32>
    %cst_127 = arith.constant dense<0.000000e+00> : vector<8x32xf32>
    %570 = tpu.matmul %566, %569, %cst_127 {dimension_numbers = #tpu.dot_dimension_numbers<[1], [0], [0], [1], [0, 0, 1, 1], [], []>} : vector<8x8xf32>, vector<8x32xf32>, vector<8x32xf32> -> vector<8x32xf32>
    %571 = arith.addf %562, %570 : vector<8x32xf32>
    %572 = vector.extract_strided_slice %3 {offsets = [3, 0, 0], sizes = [1, 8, 8], strides = [1, 1, 1]} : vector<4x8x8xbf16> to vector<1x8x8xbf16>
    %573 = vector.shape_cast %572 : vector<1x8x8xbf16> to vector<8x8xbf16>
    %574 = arith.extf %573 : vector<8x8xbf16> to vector<8x8xf32>
    %575 = arith.mulf %540, %574 : vector<8x8xf32>
    %576 = vector.extract_strided_slice %496 {offsets = [3, 0], sizes = [1, 32], strides = [1, 1]} : vector<4x32xf32> to vector<1x32xf32>
    %577 = vector.shape_cast %576 : vector<1x32xf32> to vector<1x32xf32>
    %578 = vector.broadcast %577 : vector<1x32xf32> to vector<8x32xf32>
    %cst_128 = arith.constant dense<0.000000e+00> : vector<8x32xf32>
    %579 = tpu.matmul %575, %578, %cst_128 {dimension_numbers = #tpu.dot_dimension_numbers<[1], [0], [0], [1], [0, 0, 1, 1], [], []>} : vector<8x8xf32>, vector<8x32xf32>, vector<8x32xf32> -> vector<8x32xf32>
    %580 = arith.addf %571, %579 : vector<8x32xf32>
    %581 = vector.extract_strided_slice %488 {offsets = [0, 16], sizes = [8, 16], strides = [1, 1]} : vector<8x32xf32> to vector<8x16xf32>
    %582 = vector.extract_strided_slice %489 {offsets = [0, 16], sizes = [8, 16], strides = [1, 1]} : vector<8x32xf32> to vector<8x16xf32>
    %583 = vector.extract_strided_slice %484 {offsets = [0, 16], sizes = [4, 16], strides = [1, 1]} : vector<4x32xf32> to vector<4x16xf32>
    %584 = vector.broadcast %28 : vector<1x32xf32> to vector<4x32xf32>
    %585 = arith.mulf %484, %584 : vector<4x32xf32>
    %cst_129 = arith.constant dense<0.000000e+00> : vector<8x8xf32>
    %586 = tpu.matmul %581, %582, %cst_129 {dimension_numbers = #tpu.dot_dimension_numbers<[1], [1], [0], [0], [0, 0, 1, 0], [], []>} : vector<8x16xf32>, vector<8x16xf32>, vector<8x8xf32> -> vector<8x8xf32>
    %cst_130 = arith.constant dense<0.000000e+00> : vector<8x4xf32>
    %587 = tpu.matmul %581, %583, %cst_130 {dimension_numbers = #tpu.dot_dimension_numbers<[1], [1], [0], [0], [0, 0, 1, 0], [], []>} : vector<8x16xf32>, vector<4x16xf32>, vector<8x4xf32> -> vector<8x4xf32>
    %588 = vector.extract_strided_slice %3 {offsets = [0, 0, 0], sizes = [1, 8, 8], strides = [1, 1, 1]} : vector<4x8x8xbf16> to vector<1x8x8xbf16>
    %589 = vector.shape_cast %588 : vector<1x8x8xbf16> to vector<8x8xbf16>
    %590 = vector.extract_strided_slice %587 {offsets = [0, 0], sizes = [8, 1], strides = [1, 1]} : vector<8x4xf32> to vector<8x1xf32>
    %591 = arith.extf %589 : vector<8x8xbf16> to vector<8x8xf32>
    %592 = vector.broadcast %590 : vector<8x1xf32> to vector<8x8xf32>
    %593 = arith.mulf %591, %592 : vector<8x8xf32>
    %594 = arith.addf %586, %593 : vector<8x8xf32>
    %595 = vector.extract_strided_slice %3 {offsets = [1, 0, 0], sizes = [1, 8, 8], strides = [1, 1, 1]} : vector<4x8x8xbf16> to vector<1x8x8xbf16>
    %596 = vector.shape_cast %595 : vector<1x8x8xbf16> to vector<8x8xbf16>
    %597 = vector.extract_strided_slice %587 {offsets = [0, 1], sizes = [8, 1], strides = [1, 1]} : vector<8x4xf32> to vector<8x1xf32>
    %598 = arith.extf %596 : vector<8x8xbf16> to vector<8x8xf32>
    %599 = vector.broadcast %597 : vector<8x1xf32> to vector<8x8xf32>
    %600 = arith.mulf %598, %599 : vector<8x8xf32>
    %601 = arith.addf %594, %600 : vector<8x8xf32>
    %602 = vector.extract_strided_slice %3 {offsets = [2, 0, 0], sizes = [1, 8, 8], strides = [1, 1, 1]} : vector<4x8x8xbf16> to vector<1x8x8xbf16>
    %603 = vector.shape_cast %602 : vector<1x8x8xbf16> to vector<8x8xbf16>
    %604 = vector.extract_strided_slice %587 {offsets = [0, 2], sizes = [8, 1], strides = [1, 1]} : vector<8x4xf32> to vector<8x1xf32>
    %605 = arith.extf %603 : vector<8x8xbf16> to vector<8x8xf32>
    %606 = vector.broadcast %604 : vector<8x1xf32> to vector<8x8xf32>
    %607 = arith.mulf %605, %606 : vector<8x8xf32>
    %608 = arith.addf %601, %607 : vector<8x8xf32>
    %609 = vector.extract_strided_slice %3 {offsets = [3, 0, 0], sizes = [1, 8, 8], strides = [1, 1, 1]} : vector<4x8x8xbf16> to vector<1x8x8xbf16>
    %610 = vector.shape_cast %609 : vector<1x8x8xbf16> to vector<8x8xbf16>
    %611 = vector.extract_strided_slice %587 {offsets = [0, 3], sizes = [8, 1], strides = [1, 1]} : vector<8x4xf32> to vector<8x1xf32>
    %612 = arith.extf %610 : vector<8x8xbf16> to vector<8x8xf32>
    %613 = vector.broadcast %611 : vector<8x1xf32> to vector<8x8xf32>
    %614 = arith.mulf %612, %613 : vector<8x8xf32>
    %615 = arith.addf %608, %614 : vector<8x8xf32>
    %cst_131 = arith.constant 2.500000e-01 : f32
    %616 = vector.broadcast %cst_131 : f32 to vector<8x8xf32>
    %617 = arith.mulf %615, %616 : vector<8x8xf32>
    %618 = arith.addf %617, %6 : vector<8x8xf32>
    %cst_132 = arith.constant dense<0xFF800000> : vector<8xf32>
    %619 = vector.multi_reduction <maximumf>, %618, %cst_132 [1] : vector<8x8xf32> to vector<8xf32>
    %620 = vector.shape_cast %619 : vector<8xf32> to vector<8x1xf32>
    %621 = vector.broadcast %620 : vector<8x1xf32> to vector<8x8xf32>
    %622 = arith.subf %618, %621 : vector<8x8xf32>
    %623 = math.exp %622 : vector<8x8xf32>
    %cst_133 = arith.constant dense<0.000000e+00> : vector<8xf32>
    %624 = vector.multi_reduction <add>, %623, %cst_133 [1] : vector<8x8xf32> to vector<8xf32>
    %625 = vector.shape_cast %624 : vector<8xf32> to vector<8x1xf32>
    %626 = tpu.reciprocal %625 {approx = true} : vector<8x1xf32> -> vector<8x1xf32>
    %627 = arith.mulf %626, %12 : vector<8x1xf32>
    %628 = vector.broadcast %627 : vector<8x1xf32> to vector<8x8xf32>
    %629 = arith.mulf %623, %628 : vector<8x8xf32>
    %630 = vector.broadcast %28 : vector<1x32xf32> to vector<8x32xf32>
    %631 = arith.mulf %490, %630 : vector<8x32xf32>
    %cst_134 = arith.constant dense<0.000000e+00> : vector<8x32xf32>
    %632 = tpu.matmul %629, %631, %cst_134 {dimension_numbers = #tpu.dot_dimension_numbers<[1], [0], [0], [1], [0, 0, 1, 1], [], []>} : vector<8x8xf32>, vector<8x32xf32>, vector<8x32xf32> -> vector<8x32xf32>
    %633 = arith.addf %580, %632 : vector<8x32xf32>
    %634 = vector.extract_strided_slice %3 {offsets = [0, 0, 0], sizes = [1, 8, 8], strides = [1, 1, 1]} : vector<4x8x8xbf16> to vector<1x8x8xbf16>
    %635 = vector.shape_cast %634 : vector<1x8x8xbf16> to vector<8x8xbf16>
    %636 = arith.extf %635 : vector<8x8xbf16> to vector<8x8xf32>
    %637 = arith.mulf %629, %636 : vector<8x8xf32>
    %638 = vector.extract_strided_slice %585 {offsets = [0, 0], sizes = [1, 32], strides = [1, 1]} : vector<4x32xf32> to vector<1x32xf32>
    %639 = vector.shape_cast %638 : vector<1x32xf32> to vector<1x32xf32>
    %640 = vector.broadcast %639 : vector<1x32xf32> to vector<8x32xf32>
    %cst_135 = arith.constant dense<0.000000e+00> : vector<8x32xf32>
    %641 = tpu.matmul %637, %640, %cst_135 {dimension_numbers = #tpu.dot_dimension_numbers<[1], [0], [0], [1], [0, 0, 1, 1], [], []>} : vector<8x8xf32>, vector<8x32xf32>, vector<8x32xf32> -> vector<8x32xf32>
    %642 = arith.addf %633, %641 : vector<8x32xf32>
    %643 = vector.extract_strided_slice %3 {offsets = [1, 0, 0], sizes = [1, 8, 8], strides = [1, 1, 1]} : vector<4x8x8xbf16> to vector<1x8x8xbf16>
    %644 = vector.shape_cast %643 : vector<1x8x8xbf16> to vector<8x8xbf16>
    %645 = arith.extf %644 : vector<8x8xbf16> to vector<8x8xf32>
    %646 = arith.mulf %629, %645 : vector<8x8xf32>
    %647 = vector.extract_strided_slice %585 {offsets = [1, 0], sizes = [1, 32], strides = [1, 1]} : vector<4x32xf32> to vector<1x32xf32>
    %648 = vector.shape_cast %647 : vector<1x32xf32> to vector<1x32xf32>
    %649 = vector.broadcast %648 : vector<1x32xf32> to vector<8x32xf32>
    %cst_136 = arith.constant dense<0.000000e+00> : vector<8x32xf32>
    %650 = tpu.matmul %646, %649, %cst_136 {dimension_numbers = #tpu.dot_dimension_numbers<[1], [0], [0], [1], [0, 0, 1, 1], [], []>} : vector<8x8xf32>, vector<8x32xf32>, vector<8x32xf32> -> vector<8x32xf32>
    %651 = arith.addf %642, %650 : vector<8x32xf32>
    %652 = vector.extract_strided_slice %3 {offsets = [2, 0, 0], sizes = [1, 8, 8], strides = [1, 1, 1]} : vector<4x8x8xbf16> to vector<1x8x8xbf16>
    %653 = vector.shape_cast %652 : vector<1x8x8xbf16> to vector<8x8xbf16>
    %654 = arith.extf %653 : vector<8x8xbf16> to vector<8x8xf32>
    %655 = arith.mulf %629, %654 : vector<8x8xf32>
    %656 = vector.extract_strided_slice %585 {offsets = [2, 0], sizes = [1, 32], strides = [1, 1]} : vector<4x32xf32> to vector<1x32xf32>
    %657 = vector.shape_cast %656 : vector<1x32xf32> to vector<1x32xf32>
    %658 = vector.broadcast %657 : vector<1x32xf32> to vector<8x32xf32>
    %cst_137 = arith.constant dense<0.000000e+00> : vector<8x32xf32>
    %659 = tpu.matmul %655, %658, %cst_137 {dimension_numbers = #tpu.dot_dimension_numbers<[1], [0], [0], [1], [0, 0, 1, 1], [], []>} : vector<8x8xf32>, vector<8x32xf32>, vector<8x32xf32> -> vector<8x32xf32>
    %660 = arith.addf %651, %659 : vector<8x32xf32>
    %661 = vector.extract_strided_slice %3 {offsets = [3, 0, 0], sizes = [1, 8, 8], strides = [1, 1, 1]} : vector<4x8x8xbf16> to vector<1x8x8xbf16>
    %662 = vector.shape_cast %661 : vector<1x8x8xbf16> to vector<8x8xbf16>
    %663 = arith.extf %662 : vector<8x8xbf16> to vector<8x8xf32>
    %664 = arith.mulf %629, %663 : vector<8x8xf32>
    %665 = vector.extract_strided_slice %585 {offsets = [3, 0], sizes = [1, 32], strides = [1, 1]} : vector<4x32xf32> to vector<1x32xf32>
    %666 = vector.shape_cast %665 : vector<1x32xf32> to vector<1x32xf32>
    %667 = vector.broadcast %666 : vector<1x32xf32> to vector<8x32xf32>
    %cst_138 = arith.constant dense<0.000000e+00> : vector<8x32xf32>
    %668 = tpu.matmul %664, %667, %cst_138 {dimension_numbers = #tpu.dot_dimension_numbers<[1], [0], [0], [1], [0, 0, 1, 1], [], []>} : vector<8x8xf32>, vector<8x32xf32>, vector<8x32xf32> -> vector<8x32xf32>
    %669 = arith.addf %660, %668 : vector<8x32xf32>
    %cst_139 = arith.constant 0.000000e+00 : f32
    %670 = vector.broadcast %cst_139 : f32 to vector<8x32xf32>
    %671 = arith.cmpf ogt, %669, %670 : vector<8x32xf32>
    %cst_140 = arith.constant 0.000000e+00 : f32
    %672 = vector.broadcast %cst_140 : f32 to vector<8x32xf32>
    %673 = arith.minimumf %669, %672 : vector<8x32xf32>
    %674 = math.exp %673 : vector<8x32xf32>
    %cst_141 = arith.constant 1.000000e+00 : f32
    %675 = vector.broadcast %cst_141 : f32 to vector<8x32xf32>
    %676 = arith.subf %674, %675 : vector<8x32xf32>
    %677 = arith.select %671, %669, %676 : vector<8x32xi1>, vector<8x32xf32>
    %678 = arith.mulf %677, %677 : vector<8x32xf32>
    %679 = tpu.concatenate %677, %678 in 1 : vector<8x32xf32>, vector<8x32xf32> -> vector<8x64xf32>
    %cst_142 = arith.constant dense<0.000000e+00> : vector<1x64xf32>
    %680 = tpu.matmul %13, %679, %cst_142 {dimension_numbers = #tpu.dot_dimension_numbers<[1], [0], [0], [1], [0, 0, 1, 1], [], []>} : vector<1x8xf32>, vector<8x64xf32>, vector<1x64xf32> -> vector<1x64xf32>
    %cst_143 = arith.constant 1.250000e-01 : f32
    %681 = vector.broadcast %cst_143 : f32 to vector<1x64xf32>
    %682 = arith.mulf %680, %681 : vector<1x64xf32>
    %683 = vector.extract_strided_slice %682 {offsets = [0, 0], sizes = [1, 32], strides = [1, 1]} : vector<1x64xf32> to vector<1x32xf32>
    %684 = vector.extract_strided_slice %682 {offsets = [0, 32], sizes = [1, 32], strides = [1, 1]} : vector<1x64xf32> to vector<1x32xf32>
    %685 = arith.mulf %683, %683 : vector<1x32xf32>
    %686 = arith.subf %684, %685 : vector<1x32xf32>
    %cst_144 = arith.constant 0.000000e+00 : f32
    %687 = vector.broadcast %cst_144 : f32 to vector<1x32xf32>
    %688 = arith.maximumf %686, %687 : vector<1x32xf32>
    %c0_145 = arith.constant 0 : index
    %c2_146 = arith.constant 2 : index
    %c0_147 = arith.constant 0 : index
    %c0_148 = arith.constant 0 : index
    %689 = vector.load %arg8[%c0_145, %c2_146, %c0_147, %c0_148] : memref<1x3x1x32xf32, #tpu.memory_space<vmem>>, vector<1x1x1x32xf32>
    %690 = vector.shape_cast %689 : vector<1x1x1x32xf32> to vector<1x32xf32>
    %691 = vector.broadcast %683 : vector<1x32xf32> to vector<8x32xf32>
    %692 = arith.subf %677, %691 : vector<8x32xf32>
    %cst_149 = arith.constant 9.99999974E-6 : f32
    %693 = vector.broadcast %cst_149 : f32 to vector<1x32xf32>
    %694 = arith.addf %688, %693 : vector<1x32xf32>
    %695 = math.rsqrt %694 : vector<1x32xf32>
    %696 = vector.broadcast %695 : vector<1x32xf32> to vector<8x32xf32>
    %697 = arith.mulf %692, %696 : vector<8x32xf32>
    %698 = vector.broadcast %690 : vector<1x32xf32> to vector<8x32xf32>
    %699 = arith.mulf %698, %697 : vector<8x32xf32>
    %c0_150 = arith.constant 0 : index
    %c2_151 = arith.constant 2 : index
    %c0_152 = arith.constant 0 : index
    %c0_153 = arith.constant 0 : index
    %700 = vector.load %arg9[%c0_150, %c2_151, %c0_152, %c0_153] : memref<1x3x1x32xf32, #tpu.memory_space<vmem>>, vector<1x1x1x32xf32>
    %701 = vector.shape_cast %700 : vector<1x1x1x32xf32> to vector<1x32xf32>
    %702 = vector.broadcast %701 : vector<1x32xf32> to vector<8x32xf32>
    %703 = arith.addf %699, %702 : vector<8x32xf32>
    %c0_154 = arith.constant 0 : index
    %c0_155 = arith.constant 0 : index
    %c0_156 = arith.constant 0 : index
    %704 = vector.load %arg4[%c0_154, %c0_155, %c0_156] : memref<1x2x8xf32, #tpu.memory_space<vmem>>, vector<1x2x8xf32>
    %705 = vector.shape_cast %704 : vector<1x2x8xf32> to vector<2x8xf32>
    %cst_157 = arith.constant dense<0.000000e+00> : vector<2x32xf32>
    %706 = tpu.matmul %705, %703, %cst_157 {dimension_numbers = #tpu.dot_dimension_numbers<[1], [0], [0], [1], [0, 0, 1, 1], [], []>} : vector<2x8xf32>, vector<8x32xf32>, vector<2x32xf32> -> vector<2x32xf32>
    %c0_158 = arith.constant 0 : index
    %c0_159 = arith.constant 0 : index
    %c0_160 = arith.constant 0 : index
    %707 = vector.load %arg10[%c0_158, %c0_159, %c0_160] : memref<1x2x32xf32, #tpu.memory_space<vmem>>, vector<1x2x32xf32>
    %708 = vector.shape_cast %707 : vector<1x2x32xf32> to vector<2x32xf32>
    %709 = vector.shape_cast %706 : vector<2x32xf32> to vector<1x2x32xf32>
    tpu.vector_store %arg10[%c0_158, %c0_159, %c0_160], %709 {strides = array<i32>} : memref<1x2x32xf32, #tpu.memory_space<vmem>>, vector<1x2x32xf32>,
    return
  }
  func.func @transform_0(%arg0: i32) -> (i32, i32, i32) {
    %c0_i32 = arith.constant 0 : i32
    %c0_i32_0 = arith.constant 0 : i32
    %c0_i32_1 = arith.constant 0 : i32
    return %arg0, %c0_i32, %c0_i32_0 : i32, i32, i32
  }
  func.func @transform_1(%arg0: i32) -> (i32, i32, i32, i32) {
    %c0_i32 = arith.constant 0 : i32
    %c0_i32_0 = arith.constant 0 : i32
    %c0_i32_1 = arith.constant 0 : i32
    %c0_i32_2 = arith.constant 0 : i32
    return %arg0, %c0_i32, %c0_i32_0, %c0_i32_1 : i32, i32, i32, i32
  }
  func.func @transform_2(%arg0: i32) -> (i32, i32, i32) {
    %c0_i32 = arith.constant 0 : i32
    %c0_i32_0 = arith.constant 0 : i32
    %c0_i32_1 = arith.constant 0 : i32
    return %arg0, %c0_i32, %c0_i32_0 : i32, i32, i32
  }
  func.func @transform_3(%arg0: i32) -> (i32, i32, i32) {
    %c0_i32 = arith.constant 0 : i32
    %c0_i32_0 = arith.constant 0 : i32
    %c0_i32_1 = arith.constant 0 : i32
    return %arg0, %c0_i32, %c0_i32_0 : i32, i32, i32
  }
  func.func @transform_4(%arg0: i32) -> (i32, i32, i32, i32) {
    %c0_i32 = arith.constant 0 : i32
    %c0_i32_0 = arith.constant 0 : i32
    %c0_i32_1 = arith.constant 0 : i32
    %c0_i32_2 = arith.constant 0 : i32
    return %arg0, %c0_i32, %c0_i32_0, %c0_i32_1 : i32, i32, i32, i32
  }
  func.func @transform_5(%arg0: i32) -> (i32, i32, i32, i32) {
    %c0_i32 = arith.constant 0 : i32
    %c0_i32_0 = arith.constant 0 : i32
    %c0_i32_1 = arith.constant 0 : i32
    %c0_i32_2 = arith.constant 0 : i32
    return %arg0, %c0_i32, %c0_i32_0, %c0_i32_1 : i32, i32, i32, i32
  }
  func.func @transform_6(%arg0: i32) -> (i32, i32, i32, i32) {
    %c0_i32 = arith.constant 0 : i32
    %c0_i32_0 = arith.constant 0 : i32
    %c0_i32_1 = arith.constant 0 : i32
    %c0_i32_2 = arith.constant 0 : i32
    return %arg0, %c0_i32, %c0_i32_0, %c0_i32_1 : i32, i32, i32, i32
  }
  func.func @transform_7(%arg0: i32) -> (i32, i32, i32, i32) {
    %c0_i32 = arith.constant 0 : i32
    %c0_i32_0 = arith.constant 0 : i32
    %c0_i32_1 = arith.constant 0 : i32
    %c0_i32_2 = arith.constant 0 : i32
    return %arg0, %c0_i32, %c0_i32_0, %c0_i32_1 : i32, i32, i32, i32
  }
  func.func @transform_8(%arg0: i32) -> (i32, i32, i32, i32) {
    %c0_i32 = arith.constant 0 : i32
    %c0_i32_0 = arith.constant 0 : i32
    %c0_i32_1 = arith.constant 0 : i32
    %c0_i32_2 = arith.constant 0 : i32
    return %arg0, %c0_i32, %c0_i32_0, %c0_i32_1 : i32, i32, i32, i32
  }
  func.func @transform_9(%arg0: i32) -> (i32, i32, i32) {
    %c0_i32 = arith.constant 0 : i32
    %c0_i32_0 = arith.constant 0 : i32
    %c0_i32_1 = arith.constant 0 : i32
    return %arg0, %c0_i32, %c0_i32_0 : i32, i32, i32
  }
}

</mosaic_0001>

<bundles_post_ra>
// kernel: transformer4_forward.1
= control target key start
LH: loop header
LB: loop body
LE: loop exit
PB: predicated region body
PF: predicated region fallthrough
CT: control target
= control target key end

     0   :  { %s5697_s30 = smov 0   ;;  %s6296_s0 = inlined_call_operand.vmem [shape: f32[2,8,32], index: 0, kind: input, shape index: {}]   ;;  %s6297_s1 = inlined_call_operand.vmem [shape: bf16[2,4,8,8], index: 1, kind: input, shape index: {}]   ;;  %s6298_s2 = inlined_call_operand.vmem [shape: bf16[2,8,8], index: 2, kind: input, shape index: {}]   ;;  %s6299_s3 = inlined_call_operand.vmem [shape: f32[2,2,8], index: 3, kind: input, shape index: {}]   ;;  %s6300_s4 = inlined_call_operand.vmem [shape: f32[2,3,32,128], index: 4, kind: input, shape index: {}]   ;;  %s6301_s5 = inlined_call_operand.vmem [shape: f32[2,3,1,128], index: 5, kind: input, shape index: {}]   ;;  %s6302_s6 = inlined_call_operand.vmem [shape: f32[2,3,4,32], index: 6, kind: input, shape index: {}]   ;;  %s6303_s7 = inlined_call_operand.vmem [shape: f32[2,3,1,32], index: 7, kind: input, shape index: {}]   ;;  %s6304_s8 = inlined_call_operand.vmem [shape: f32[2,3,1,32], index: 8, kind: input, shape index: {}]   ;;  %s6305_s9 = inlined_call_operand.vmem [shape: f32[2,2,32], index: 9, kind: output, shape index: {}]  }
   0x1 LB: > { %s5038_s10 = sadd.s32 4294967295, %s5632_s30   ;;  %p5042_p0 = scmp.ge.s32.totalorder %s5632_s30, 1  ;;  %s5632_s30 = sphi %s5697_s30, %s19_s30  }
   0x2   : > { %p361_p1 = scmp.lt.s32.totalorder %s5632_s30, 3 }
   0x4   : > { %p362_p2 = pnand %p5042_p0, %p361_p1 }
   0x5   : > { %p430_p3 = scmp.lt.s32.totalorder (!%p362_p2), %s5038_s10, 1  ;;  %v5634_v0 = vmov (!%p362_p2), 0.0|0.0   ;;  %vm5635_vm0 = vmmov (!%p362_p2), 0   ;;  %v5636_v1 = vmov (!%p362_p2), 0.0   ;;  %vm511_vm1 = vcmask (!%p362_p2), 261120   ;;  %s5639_s27 = smov (!%p362_p2), 96  }
   0x6   : > { %365 = sbr.rel (%p362_p2) target bundleno = 8131 (0x1fc3), region = 56  ;;  %5525 = vmatprep.subr.bf16.mxu0 (!%p362_p2), %v5634_v0  ;;  %5270 = vmatprep.mubr.msk.f32.mxu0 (!%p362_p2), %vm5635_vm0, %v5636_v1  ;;  %vm586_vm2 = vcmask (!%p362_p2), 130048   ;;  %v5637_v10 = vmov (!%p362_p2), 1   ;;  %v5638_v11 = vmov (!%p362_p2), 0   ;;  %v5640_v19 = vmov (!%p362_p2), 2   ;;  %s5644_s20 = smov (!%p362_p2), 80  }
   0x7   : > { %5273 = vmatprep.subr.mxu1 (!%p362_p2), %v5636_v1  ;;  %5275 = vmatprep.mubr.msk.f32.mxu1 (!%p362_p2), %vm5635_vm0, %v5636_v1  ;;  %v5641_v20 = vmov (!%p362_p2), 3   ;;  %vm480_vm3 = vcmask (!%p362_p2), 64512   ;;  %v487_v47 = vlaneseq (!%p362_p2)  ;;  %s5645_s21 = smov (!%p362_p2), 32   ;;  %vm4887_vm12 = vcmask (!%p362_p2), 254976  }
   0x8   : > { %5568 = vset.pattern.permute.xlu1 (!%p362_p2), %v5637_v10  ;;  %5567 = vset.pattern.permute.xlu0 (!%p362_p2), %v5638_v11 }
   0x9   : > { %v5799_v48 = vand.u32 (!%p362_p2), 127, %v487_v47  ;;  %v868_v58 = vshrl.u32 (!%p362_p2), %v487_v47, 7 }
   0xb   : > { %vm490_vm4 = vcmp.lt.s32.totalorder (!%p362_p2), %v5799_v48, 16  ;;  %v5819_v60 = vsub.s32 (!%p362_p2), 0, %v868_v58  ;;  %vm494_vm6 = vcmp.ge.s32.totalorder (!%p362_p2), %v5799_v48, 16  ;;  %vm495_vm7 = vcmp.lt.s32.totalorder (!%p362_p2), %v5799_v48, 32 }
   0xc   : > { %v5803_v49 = vsel (!%p362_p2), %vm490_vm4, 1.0, %v5636_v1  ;;  %vm496_vm8 = vmand (!%p362_p2), %vm494_vm6, %vm495_vm7 }
   0xd   : > { %s6307_s10 = smov (!%p430_p3, %s5038_s10), 1 }
   0xe   : > { %s5543_s11 = smul.u32 96, %s6307_s10  ;;  %s5043_s15 = sshll.u32 %s6307_s10, 3 }
   0xf   : > { %s433_s18 = scalar_lea.vmem %s6296_s0, %s5043_s15  ;;  %s5545_s19 = smul.u32 12, %s6307_s10 }
  0x10   : > { %s5717_s14 = scalar_lea.vmem %s6300_s4, %s5543_s11  ;;  %v473_v8 = vld [vmem:[%s433_s18] sm:$0xff]  ;;  %s5745_s23 = smul.u32 3, %s6307_s10 }
  0x11   : > { %v499_v2 = vld [vmem:[%s5717_s14] sm:$0xff]  ;;  %v500_v3 = vld [vmem:[%s5717_s14 + $0x8] sm:$0xff]  ;;  %v501_v4 = vld [vmem:[%s5717_s14 + $0x10] sm:$0xff]  ;;  %s5736_s22 = scalar_lea.vmem %s6302_s6, %s5545_s19  ;;  %s5145_s28 = sshll.u32 %s6307_s10, 4 }
  0x12   : > { %v5526_v5 = vpack.c.bf16 %v500_v3, %v499_v2  ;;  %v502_v6 = vld [vmem:[%s5717_s14 + $0x18] sm:$0xff]  ;;  %v5739_v9 = vld [vmem:[%s5736_s22] sm:$0xf]  ;;  %s5753_s26 = scalar_lea.vmem %s6301_s5, %s5745_s23  ;;  %s438_s12 = scalar_lea.vmem %s6297_s1, %s5145_s28  ;;  %v5826_v2 = vsub.s32 1, %v868_v58 }
  0x13   : > { %v5529_v7 = vpack.c.bf16 %v502_v6, %v501_v4  ;;  %5274 = vmatpush3.xpose.msk.msra.mxu1 %vm586_vm2, %v5739_v9  ;;  %v5054_v12 = vld [vmem:[%s5753_s26] ss:$0 sm:$0xff]  ;;  %v5154_v27 = vld [vmem:[%s438_s12 + $0x8] sm:$0xff]   ;;  %s5046_s13 = sshll.u32 %s6307_s10, 2  ;;  %s5642_s18 = smov 64   ;;  %v585_v59 = vmul.f32 %v5803_v49, %v5739_v9 }
  0x14   : > { %5527 = vmatpush3.bf16.msra.mxu0 %v5526_v5  ;;  %5278 = vmatprep.subr.mxu1 %v5636_v1  ;;  %v5147_v23 = vld [vmem:[%s438_s12] sm:$0xff]   ;;  %v5782_v31 = vunpack.c.l.bf16 %v5154_v27  ;;  %v5787_v36 = vunpack.c.h.bf16 %v5154_v27  ;;  %s442_s17 = scalar_lea.vmem %s6298_s2, %s5046_s13  ;;  %s5643_s19 = smov 112   ;;  %v5831_v5 = vsub.s32 2, %v868_v58 }
  0x15   : > { %5528 = vmatprep.subr.bf16.mxu0 %v5634_v0  ;;  %v5777_v24 = vunpack.c.l.bf16 %v5147_v23  ;;  %v5779_v28 = vunpack.c.h.bf16 %v5147_v23  ;;  %v478_v38 = vld [vmem:[%s442_s17] sm:$0xf]  ;;  %v870_v61 = vrot.slane %v585_v59, %v5819_v60  ;;  %s5960_s28 = scalar_lea.vmem %s6303_s7, %s5745_s23  ;;  %s5966_s12 = scalar_lea.vmem %s6304_s8, %s5745_s23 }
  0x16   : > { %v5793_v42 = vunpack.c.l.bf16 %v478_v38 }
  0x18   : > { %5530 = vmatpush3.bf16.msra.mxu0 %v5529_v7  ;;  %v481_v46 = vsel %vm480_vm3, %v5793_v42, -inf  ;;  %v5834_v7 = vsub.s32 3, %v868_v58 }
  0x19   : > { %5283 = vmatprep.subr.mxu0 %v5636_v1 }
  0x1b   : > { %5271 = vmatmul.mubr.msk.f32.vlgmr.msra.gmra.mrb[0].mxu0 %vm511_vm1, %v473_v8  ;;  %v953_v8 = vrot.slane %v585_v59, %v5826_v2 }
  0x1c   : > { %5285 = vmatprep.mubr.msk.f32.mxu0 %vm5635_vm0, %v5636_v1 }
  0xee   : > { %v581_v13 = vpop.f32.mrb[0].mxu0 }
  0xef   : > { %v5756_v14 = vadd.f32 %v5054_v12, %v581_v13  ;;  %v5272_v15 = vpop.f32.mrb[1].mxu0 }
  0xf0   : > { %v1036_v15 = vrot.slane %v585_v59, %v5831_v5 }
  0xf1   : > { %670 = vrot.lane.b32.xlu0 %v5756_v14, %s5639_s27  ;;  %5276 = vmatmul.mubr.msk.f32.vlgmr.msra.gmra.mrb[0].mxu1 %vm586_vm2, %v5756_v14 }
  0xf2   : > { %5280 = vmatprep.mubr.msk.f32.mxu1 %vm5635_vm0, %v5636_v1 }
 0x163   : > { %v671_v16 = vpop.permute.xlu0 %670 }
 0x164   : > { %5279 = vmatpush3.xpose.msk.msra.mxu1 %vm586_vm2, %v671_v16 }
 0x165   : > { %5288 = vmatprep.subr.mxu1 %v5636_v1 }
 0x167   : > { %5281 = vmatmul.mubr.msk.f32.vlgmr.msra.gmra.mrb[2].mxu1 %vm586_vm2, %v5756_v14 }
 0x168   : > { %5290 = vmatprep.mubr.msk.f32.mxu1 %vm5635_vm0, %v5636_v1  ;;  %5289 = vmatpush3.msra.mxu1 %v870_v61 }
 0x169   : > { %5298 = vmatprep.subr.mxu1 %v5636_v1 }
 0x1c4   : > { %v659_v17 = vpop.f32.mrb[0].mxu1 }
 0x1c5   : > { %746 = vperm.xlu1 %5568, %v659_v17   ;;  %666 = vperm.xlu0 %5567, %v659_v17   ;;  %v5277_v18 = vpop.f32.mrb[1].mxu1 }
 0x1c9   : > { %5569 = vset.pattern.permute.xlu1 %v5640_v19 }
 0x1ca   : > { %753 = vperm.xlu1 %5569, %v659_v17  }
 0x1ce   : > { %5570 = vset.pattern.permute.xlu1 %v5641_v20 }
 0x1cf   : > { %760 = vperm.xlu1 %5570, %v659_v17   ;;  %v1119_v17 = vrot.slane %v585_v59, %v5834_v7 }
 0x1d3   : > { %5571 = vset.pattern.permute.xlu1 %v5637_v10 }
 0x23a   : > { %v740_v21 = vpop.f32.mrb[2].mxu1 }
 0x23b   : > { %v5282_v22 = vpop.f32.mrb[3].mxu1 }
 0x244   : > { %v747_v25 = vpop.permute.xlu1 %746  ;;  %v667_v26 = vpop.permute.xlu0 %666 }
 0x245   : > { %v669_v29 = vmul.f32 %v5777_v24, %v667_v26  ;;  %v749_v32 = vmul.f32 %v5779_v28, %v747_v25 }
 0x247   : > { %v741_v30 = vadd.f32 %v740_v21, %v669_v29 }
 0x249   : > { %v754_v33 = vpop.permute.xlu1 %753  ;;  %v750_v34 = vadd.f32 %v749_v32, %v741_v30 }
 0x24a   : > { %v756_v35 = vmul.f32 %v5782_v31, %v754_v33 }
 0x24c   : > { %v757_v39 = vadd.f32 %v756_v35, %v750_v34 }
 0x24e   : > { %v761_v37 = vpop.permute.xlu1 %760 }
 0x24f   : > { %v763_v40 = vmul.f32 %v5787_v36, %v761_v37 }
 0x251   : > { %v764_v41 = vadd.f32 %v763_v40, %v757_v39 }
 0x253   : > { %v765_v43 = vmul.f32 0.25, %v764_v41 }
 0x255   : > { %v766_v44 = vadd.f32 %v765_v43, %v5793_v42 }
 0x257   : > { %v767_v45 = vsel %vm480_vm3, %v766_v44, -inf }
 0x258   : > { %768 = vmax.xlane.f32.xlu0 %v767_v45 }
 0x25c   : > { %482 = vmax.xlane.f32.xlu0 %v481_v46 }
 0x272   : > { %780 = vrot.lane.b32.xlu0 %v5803_v49, %s5642_s18 }
 0x2e5   : > { %v769_v50 = vpop.xlane.xlu0 %768 }
 0x2e6   : > { %v770_v51 = vsub.f32 %v766_v44, %v769_v50  ;;  %v5876_v44 = vsel %vm496_vm8, 1.0, %v5636_v1 }
 0x2e8   : > { %v771_v52 = vmul.f32 1.442695, %v770_v51 }
 0x2e9   : > { %v483_v53 = vpop.xlane.xlu0 %482 }
 0x2ea   : > { %5590 = vpow2.f32 %v771_v52  ;;  %vm484_vm5 = vcmp.gt.f32.partialorder %v483_v53, -0.5 }
 0x2eb   : > { %v5829_v3 = vsel %vm484_vm5, 1.0, %v5636_v1 }
 0x2ed   : > { %v5807_v54 = vpop.permute.xlu0 %780 }
 0x2ee   : > { %v783_v55 = vmul.f32 %v5807_v54, %v5756_v14 }
 0x2f0   : > { %785 = vrot.lane.b32.xlu0 %v783_v55, %s5642_s18 }
 0x2f4   : > { %v5591_v56 = vpop.eup %5590 }
 0x2f5   : > { %v773_v57 = vsel %vm480_vm3, %v5591_v56, 0.0 }
 0x2f6   : > { %774 = vadd.xlane.f32.xlu1 %v773_v57 }
 0x307   : > { %1201 = vrot.lane.b32.xlu1 %v5739_v9, %s5643_s19 }
 0x30b   : > { %1199 = vrot.lane.b32.xlu1 %v5756_v14, %s5643_s19 }
 0x30f   : > { %1283 = vrot.lane.b32.xlu1 %v5756_v14, %s5644_s20 }
 0x362   : > { %v786_v62 = vpop.permute.xlu0 %785 }
 0x363   : > { %5284 = vmatpush3.msra.mxu0 %v786_v62 }
 0x364   : > { %5293 = vmatprep.subr.mxu0 %v5636_v1 }
 0x383   : > { %v775_v63 = vpop.xlane.xlu1 %774 }
 0x384   : > { %5592 = vrcp.f32 %v775_v63 }
 0x387   : > { %v1202_v13 = vpop.permute.xlu1 %1201 }
 0x38b   : > { %v1200_v22 = vpop.permute.xlu1 %1199 }
 0x38e   : > { %v5593_v4 = vpop.eup %5592 }
 0x38f   : > { %v777_v6 = vmul.f32 %v5593_v4, %v5829_v3  ;;  %v1284_v25 = vpop.permute.xlu1 %1283 }
 0x391   : > { %v778_v12 = vmul.f32 %v5591_v56, %v777_v6 }
 0x393   : > { %5286 = vmatmul.mubr.msk.f32.vlgmr.msra.gmra.mrb[2].mxu0 %vm480_vm3, %v778_v12  ;;  %v866_v16 = vmul.f32 %v5777_v24, %v778_v12  ;;  %v949_v18 = vmul.f32 %v5779_v28, %v778_v12  ;;  %v1032_v21 = vmul.f32 %v5782_v31, %v778_v12  ;;  %v1115_v23 = vmul.f32 %v5787_v36, %v778_v12 }
 0x394   : > { %5294 = vmatpush3.msra.mxu0 %v953_v8  ;;  %5295 = vmatprep.mubr.msk.f32.mxu0 %vm5635_vm0, %v5636_v1 }
 0x395   : > { %5291 = vmatmul.mubr.msk.f32.vlgmr.msra.gmra.mrb[4].mxu1 %vm480_vm3, %v866_v16  ;;  %5303 = vmatprep.subr.mxu0 %v5636_v1 }
 0x396   : > { %5299 = vmatpush3.msra.mxu1 %v1036_v15  ;;  %5300 = vmatprep.mubr.msk.f32.mxu1 %vm5635_vm0, %v5636_v1 }
 0x397   : > { %5296 = vmatmul.mubr.msk.f32.vlgmr.msra.gmra.mrb[4].mxu0 %vm480_vm3, %v949_v18  ;;  %5308 = vmatprep.subr.mxu1 %v5636_v1 }
 0x398   : > { %5304 = vmatpush3.msra.mxu0 %v1119_v17  ;;  %5305 = vmatprep.mubr.msk.f32.mxu0 %vm5635_vm0, %v5636_v1  ;;  %v1198_v17 = vmul.f32 %v5876_v44, %v5739_v9 }
 0x399   : > { %5301 = vmatmul.mubr.msk.f32.vlgmr.msra.gmra.mrb[6].mxu1 %vm480_vm3, %v1032_v21  ;;  %5313 = vmatprep.subr.mxu0 %v5636_v1 }
 0x39a   : > { %5310 = vmatprep.mubr.msk.f32.mxu1 %vm5635_vm0, %v5636_v1  ;;  %v1480_v18 = vrot.slane %v1198_v17, %v5819_v60 }
 0x39b   : > { %5306 = vmatmul.mubr.msk.f32.vlgmr.msra.gmra.mrb[6].mxu0 %vm480_vm3, %v1115_v23 }
 0x39c   : > { %5315 = vmatprep.mubr.msk.f32.mxu0 %vm5635_vm0, %v5636_v1 }
 0x39d   : > { %5309 = vmatpush3.xpose.msk.msra.mxu1 %vm586_vm2, %v1202_v13 }
 0x39e   : > { %5318 = vmatprep.subr.mxu1 %v5636_v1 }
 0x39f   : > { %5314 = vmatpush3.xpose.msk.msra.mxu0 %vm586_vm2, %v1284_v25  ;;  %v1563_v25 = vrot.slane %v1198_v17, %v5826_v2 }
 0x3a0   : > { %5311 = vmatmul.mubr.msk.f32.vlgmr.msra.gmra.mrb[8].mxu1 %vm586_vm2, %v1200_v22  ;;  %5323 = vmatprep.subr.mxu0 %v5636_v1 }
 0x3a1   : > { %5320 = vmatprep.mubr.msk.f32.mxu1 %vm5635_vm0, %v5636_v1 }
 0x3a2   : > { %5316 = vmatmul.mubr.msk.f32.vlgmr.msra.gmra.mrb[8].mxu0 %vm586_vm2, %v1200_v22 }
 0x3a3   : > { %5325 = vmatprep.mubr.msk.f32.mxu0 %vm5635_vm0, %v5636_v1  ;;  %5324 = vmatpush3.msra.mxu0 %v1480_v18 }
 0x3a4   : > { %5333 = vmatprep.subr.mxu0 %v5636_v1 }
 0x466   : > { %v857_v26 = vpop.f32.mrb[2].mxu0 }
 0x467   : > { %v5287_v27 = vpop.f32.mrb[3].mxu0 }
 0x468   : > { %v940_v29 = vpop.f32.mrb[4].mxu1 }
 0x469   : > { %v5292_v30 = vpop.f32.mrb[5].mxu1 }
 0x46a   : > { %v1023_v32 = vpop.f32.mrb[4].mxu0 }
 0x46b   : > { %v5297_v33 = vpop.f32.mrb[5].mxu0 }
 0x46c   : > { %v1106_v34 = vpop.f32.mrb[6].mxu1 }
 0x46d   : > { %v5302_v35 = vpop.f32.mrb[7].mxu1 }
 0x46e   : > { %v1189_v37 = vpop.f32.mrb[6].mxu0 }
 0x46f   : > { %v5307_v38 = vpop.f32.mrb[7].mxu0 }
 0x473   : > { %v1273_v39 = vpop.f32.mrb[8].mxu1 }
 0x474   : > { %1358 = vperm.xlu1 %5571, %v1273_v39   ;;  %1279 = vperm.xlu0 %5567, %v1273_v39   ;;  %v5312_v40 = vpop.f32.mrb[9].mxu1 }
 0x475   : > { %v1353_v41 = vpop.f32.mrb[8].mxu0 }
 0x476   : > { %v5317_v43 = vpop.f32.mrb[9].mxu0 }
 0x478   : > { %5573 = vset.pattern.permute.xlu1 %v5641_v20  ;;  %5572 = vset.pattern.permute.xlu0 %v5640_v19 }
 0x479   : > { %1370 = vperm.xlu1 %5573, %v1273_v39   ;;  %1364 = vperm.xlu0 %5572, %v1273_v39  }
 0x47d   : > { %1390 = vrot.lane.b32.xlu0 %v5876_v44, %s5642_s18  ;;  %5575 = vset.pattern.permute.xlu1 %v5637_v10 }
 0x47e   : > { %5574 = vset.pattern.permute.xlu0 %v5638_v11 }
 0x4f3   : > { %v1359_v45 = vpop.permute.xlu1 %1358  ;;  %v1280_v46 = vpop.permute.xlu0 %1279 }
 0x4f4   : > { %v1282_v47 = vmul.f32 %v5777_v24, %v1280_v46  ;;  %v1361_v48 = vmul.f32 %v5779_v28, %v1359_v45 }
 0x4f6   : > { %v1354_v50 = vadd.f32 %v1353_v41, %v1282_v47 }
 0x4f8   : > { %v1371_v51 = vpop.permute.xlu1 %1370  ;;  %v1365_v52 = vpop.permute.xlu0 %1364  ;;  %v1362_v53 = vadd.f32 %v1361_v48, %v1354_v50 }
 0x4f9   : > { %v1367_v55 = vmul.f32 %v5782_v31, %v1365_v52  ;;  %v1373_v56 = vmul.f32 %v5787_v36, %v1371_v51 }
 0x4fb   : > { %v1368_v57 = vadd.f32 %v1367_v55, %v1362_v53 }
 0x4fc   : > { %v5888_v63 = vpop.permute.xlu0 %1390 }
 0x4fd   : > { %v1374_v58 = vadd.f32 %v1373_v56, %v1368_v57  ;;  %v1393_v4 = vmul.f32 %v5888_v63, %v5756_v14 }
 0x4ff   : > { %v1375_v59 = vmul.f32 0.25, %v1374_v58 }
 0x501   : > { %v1376_v61 = vadd.f32 %v1375_v59, %v5793_v42 }
 0x503   : > { %v1377_v62 = vsel %vm480_vm3, %v1376_v61, -inf }
 0x504   : > { %1378 = vmax.xlane.f32.xlu1 %v1377_v62 }
 0x515   : > { %1395 = vrot.lane.b32.xlu1 %v1393_v4, %s5642_s18 }
 0x519   : > { %945 = vrot.lane.b32.xlu1 %v940_v29, %s5639_s27  ;;  %v1729_v29 = vrot.slane %v1198_v17, %v5834_v7 }
 0x51d   : > { %1028 = vrot.lane.b32.xlu1 %v1023_v32, %s5639_s27 }
 0x521   : > { %1194 = vrot.lane.b32.xlu1 %v1189_v37, %s5639_s27 }
 0x591   : > { %v1379_v6 = vpop.xlane.xlu1 %1378 }
 0x592   : > { %v1380_v8 = vsub.f32 %v1376_v61, %v1379_v6 }
 0x594   : > { %v1381_v12 = vmul.f32 1.442695, %v1380_v8 }
 0x595   : > { %v1396_v13 = vpop.permute.xlu1 %1395 }
 0x596   : > { %5594 = vpow2.f32 %v1381_v12  ;;  %5319 = vmatpush3.msra.mxu1 %v1396_v13 }
 0x597   : > { %5328 = vmatprep.subr.mxu1 %v5636_v1 }
 0x599   : > { %v946_v50 = vpop.permute.xlu1 %945 }
 0x59d   : > { %v1029_v52 = vpop.permute.xlu1 %1028 }
 0x5a0   : > { %v5595_v15 = vpop.eup %5594 }
 0x5a1   : > { %v1383_v16 = vsel %vm480_vm3, %v5595_v15, 0.0  ;;  %v1195_v57 = vpop.permute.xlu1 %1194 }
 0x5a2   : > { %1384 = vadd.xlane.f32.xlu0 %v1383_v16 }
 0x5b8   : > { %862 = vrot.lane.b32.xlu0 %v857_v26, %s5639_s27  ;;  %v1646_v26 = vrot.slane %v1198_v17, %v5831_v5 }
 0x5bc   : > { %1111 = vrot.lane.b32.xlu0 %v1106_v34, %s5639_s27 }
 0x62f   : > { %v1385_v21 = vpop.xlane.xlu0 %1384 }
 0x630   : > { %5596 = vrcp.f32 %v1385_v21 }
 0x633   : > { %v863_v47 = vpop.permute.xlu0 %862 }
 0x634   : > { %v865_v48 = vadd.f32 %v863_v47, %v5756_v14  ;;  %v5080_v47 = vld [vmem:[%s5717_s14 + $0x30] sm:$0xff] }
 0x636   : > { %v948_v51 = vadd.f32 %v946_v50, %v865_v48  ;;  %v5081_v48 = vld [vmem:[%s5717_s14 + $0x38] sm:$0xff] }
 0x637   : > { %v1112_v55 = vpop.permute.xlu0 %1111  ;;  %v5535_v50 = vpack.c.bf16 %v5081_v48, %v5080_v47 }
 0x638   : > { %v1031_v53 = vadd.f32 %v1029_v52, %v948_v51 }
 0x63a   : > { %v5597_v22 = vpop.eup %5596  ;;  %v1114_v56 = vadd.f32 %v1112_v55, %v1031_v53 }
 0x63b   : > { %v1387_v23 = vmul.f32 %v5597_v22, %v5829_v3 }
 0x63c   : > { %v1197_v58 = vadd.f32 %v1195_v57, %v1114_v56  ;;  %v5076_v56 = vld [vmem:[%s5960_s28] ss:$0 sm:$0xff] }
 0x63d   : > { %v1388_v27 = vmul.f32 %v5595_v15, %v1387_v23  ;;  %v5077_v57 = vld [vmem:[%s5966_s12] ss:$0 sm:$0xff] }
 0x63f   : > { %5321 = vmatmul.mubr.msk.f32.vlgmr.msra.gmra.mrb[10].mxu1 %vm480_vm3, %v1388_v27  ;;  %v1476_v9 = vmul.f32 %v5777_v24, %v1388_v27  ;;  %v1559_v30 = vmul.f32 %v5779_v28, %v1388_v27  ;;  %v1642_v32 = vmul.f32 %v5782_v31, %v1388_v27  ;;  %v1725_v33 = vmul.f32 %v5787_v36, %v1388_v27 }
 0x640   : > { %5329 = vmatpush3.msra.mxu1 %v1563_v25  ;;  %5330 = vmatprep.mubr.msk.f32.mxu1 %vm5635_vm0, %v5636_v1 }
 0x641   : > { %5326 = vmatmul.mubr.msk.f32.vlgmr.msra.gmra.mrb[10].mxu0 %vm480_vm3, %v1476_v9  ;;  %5338 = vmatprep.subr.mxu1 %v5636_v1  ;;  %v5646_v9 = vmov 1.0  }
 0x642   : > { %5334 = vmatpush3.msra.mxu0 %v1646_v26  ;;  %5335 = vmatprep.mubr.msk.f32.mxu0 %vm5635_vm0, %v5636_v1 }
 0x643   : > { %5331 = vmatmul.mubr.msk.f32.vlgmr.msra.gmra.mrb[12].mxu1 %vm480_vm3, %v1559_v30  ;;  %5343 = vmatprep.subr.mxu0 %v5636_v1 }
 0x644   : > { %5339 = vmatpush3.msra.mxu1 %v1729_v29  ;;  %5340 = vmatprep.mubr.msk.f32.mxu1 %vm5635_vm0, %v5636_v1 }
 0x645   : > { %5336 = vmatmul.mubr.msk.f32.vlgmr.msra.gmra.mrb[12].mxu0 %vm480_vm3, %v1642_v32  ;;  %5531 = vmatprep.subr.bf16.mxu1 %v5634_v0 }
 0x646   : > { %5345 = vmatprep.mubr.msk.f32.mxu0 %vm5635_vm0, %v5636_v1 }
 0x647   : > { %5341 = vmatmul.mubr.msk.f32.vlgmr.msra.gmra.mrb[14].mxu1 %vm480_vm3, %v1725_v33 }
 0x648   : > { %5356 = vmatprep.mubr.msk.f32.mxu1 %vm5635_vm0, %v5636_v1 }
 0x712   : > { %v1467_v34 = vpop.f32.mrb[10].mxu1 }
 0x713   : > { %1472 = vrot.lane.b32.xlu0 %v1467_v34, %s5639_s27  ;;  %v5322_v35 = vpop.f32.mrb[11].mxu1 }
 0x714   : > { %v1550_v37 = vpop.f32.mrb[10].mxu0 }
 0x715   : > { %1555 = vrot.lane.b32.xlu1 %v1550_v37, %s5639_s27  ;;  %v5327_v38 = vpop.f32.mrb[11].mxu0 }
 0x716   : > { %v1633_v39 = vpop.f32.mrb[12].mxu1 }
 0x717   : > { %1638 = vrot.lane.b32.xlu0 %v1633_v39, %s5639_s27  ;;  %v5332_v40 = vpop.f32.mrb[13].mxu1 }
 0x718   : > { %v1716_v41 = vpop.f32.mrb[12].mxu0  ;;  %v5078_v40 = vld [vmem:[%s5717_s14 + $0x20] sm:$0xff] }
 0x719   : > { %1721 = vrot.lane.b32.xlu1 %v1716_v41, %s5639_s27  ;;  %v5337_v43 = vpop.f32.mrb[13].mxu0  ;;  %v5079_v41 = vld [vmem:[%s5717_s14 + $0x28] sm:$0xff] }
 0x71a   : > { %v1799_v45 = vpop.f32.mrb[14].mxu1  ;;  %v5532_v43 = vpack.c.bf16 %v5079_v41, %v5078_v40 }
 0x71b   : > { %1804 = vrot.lane.b32.xlu0 %v1799_v45, %s5639_s27  ;;  %v5342_v46 = vpop.f32.mrb[15].mxu1 }
 0x71c   : > { %5533 = vmatpush3.bf16.msra.mxu1 %v5532_v43 }
 0x71d   : > { %5534 = vmatprep.subr.bf16.mxu1 %v5634_v0 }
 0x720   : > { %5536 = vmatpush3.bf16.msra.mxu1 %v5535_v50 }
 0x721   : > { %5369 = vmatprep.subr.mxu1 %v5636_v1 }
 0x785   : > { %v1473_v59 = vpop.permute.xlu0 %1472 }
 0x786   : > { %v1475_v61 = vadd.f32 %v1473_v59, %v1197_v58 }
 0x787   : > { %v1556_v62 = vpop.permute.xlu1 %1555 }
 0x788   : > { %v1558_v4 = vadd.f32 %v1556_v62, %v1475_v61  ;;  %v5974_v62 = vld [vmem:[%s5736_s22 + $0x4] sm:$0xf] }
 0x789   : > { %v1639_v6 = vpop.permute.xlu0 %1638  ;;  %v2033_v50 = vmul.f32 %v5974_v62, %v5803_v49 }
 0x78a   : > { %v1641_v8 = vadd.f32 %v1639_v6, %v1558_v4  ;;  %v5084_v4 = vld [vmem:[%s5753_s26 + $0x1] ss:$0 sm:$0xff] }
 0x78b   : > { %v1722_v12 = vpop.permute.xlu1 %1721 }
 0x78c   : > { %v1724_v13 = vadd.f32 %v1722_v12, %v1641_v8 }
 0x78d   : > { %v1805_v15 = vpop.permute.xlu0 %1804 }
 0x78e   : > { %v1807_v16 = vadd.f32 %v1805_v15, %v1724_v13 }
 0x790   : > { %v1809_v17 = vmin.f32 %v1807_v16, 0.0  ;;  %vm1808_vm9 = vcmp.gt.f32.partialorder %v1807_v16, 0.0 }
 0x792   : > { %v1810_v14 = vmul.f32 1.442695, %v1809_v17 }
 0x794   : > { %5598 = vpow2.f32 %v1810_v14 }
 0x79e   : > { %v5599_v18 = vpop.eup %5598 }
 0x79f   : > { %v5074_v21 = vadd.f32 -1.0, %v5599_v18 }
 0x7a1   : > { %v1813_v22 = vsel %vm1808_vm9, %v1807_v16, %v5074_v21 }
 0x7a2   : > { %1816 = vrot.lane.b32.xlu1 %v1813_v22, %s5645_s21  ;;  %v1814_v23 = vmul.f32 %v1813_v22, %v1813_v22 }
 0x7a4   : > { %1820 = vrot.lane.b32.xlu0 %v1814_v23, %s5642_s18 }
 0x814   : > { %v1817_v25 = vpop.permute.xlu1 %1816 }
 0x816   : > { %v1821_v27 = vpop.permute.xlu0 %1820 }
 0x817   : > { %v1823_v26 = vsel %vm511_vm1, %v1817_v25, %v1821_v27 }
 0x818   : > { %5344 = vmatpush3.msra.mxu0 %v1823_v26 }
 0x819   : > { %5346 = vmatmul.mubr.msk.f32.vlgmr.msra.gmra.mrb[14].mxu0 %vm480_vm3, %v5646_v9  ;;  %5359 = vmatprep.subr.mxu0 %v5636_v1 }
 0x81a   : > { %5361 = vmatprep.mubr.msk.f32.mxu0 %vm5635_vm0, %v5636_v1 }
 0x81f   : > { %5360 = vmatpush3.xpose.msk.msra.mxu0 %vm586_vm2, %v5974_v62 }
 0x820   : > { %5364 = vmatprep.subr.mxu0 %v5636_v1 }
 0x8ec   : > { %v1893_v29 = vpop.f32.mrb[14].mxu0 }
 0x8ed   : > { %v1897_v30 = vmul.f32 0.125, %v1893_v29  ;;  %v5347_v32 = vpop.f32.mrb[15].mxu0 }
 0x8ef   : > { %v1909_v33 = vrot.slane %v1897_v30, %v5819_v60  ;;  %v1898_v34 = vmul.f32 %v1897_v30, %v1897_v30 }
 0x8f1   : > { %1911 = vrot.lane.b32.xlu0 %v1909_v33, %s5639_s27  ;;  %1900 = vrot.lane.b32.xlu1 %v1898_v34, %s5645_s21 }
 0x963   : > { %v1901_v35 = vpop.permute.xlu1 %1900  ;;  %v1912_v51 = vpop.permute.xlu0 %1911 }
 0x964   : > { %v1903_v37 = vsub.f32 %v1897_v30, %v1901_v35  ;;  %v1914_v52 = vsub.f32 %v1813_v22, %v1912_v51  ;;  %v2309_v51 = vrot.slane %v2033_v50, %v5819_v60 }
 0x966   : > { %v1904_v38 = vmax.f32 %v1903_v37, 0.0 }
 0x968   : > { %v1915_v39 = vadd.f32 1e-05, %v1904_v38 }
 0x96a   : > { %5600 = vrsqrt.f32 %v1915_v39 }
 0x974   : > { %v5601_v45 = vpop.eup %5600 }
 0x975   : > { %v1920_v46 = vrot.slane %v5601_v45, %v5819_v60 }
 0x977   : > { %1922 = vrot.lane.b32.xlu1 %v1920_v46, %s5642_s18 }
 0x9e9   : > { %v1923_v53 = vpop.permute.xlu1 %1922 }
 0x9ea   : > { %v1925_v55 = vmul.f32 %v1923_v53, %v1914_v52 }
 0x9ec   : > { %1933 = vrot.lane.b32.xlu0 %v1925_v55, %s5645_s21 }
 0xa5e   : > { %v1934_v58 = vpop.permute.xlu0 %1933 }
 0xa5f   : > { %v1936_v59 = vmul.f32 %v5076_v56, %v1934_v58  ;;  %v2392_v56 = vrot.slane %v2033_v50, %v5826_v2  ;;  %v2475_v58 = vrot.slane %v2033_v50, %v5831_v5 }
 0xa61   : > { %v1944_v61 = vadd.f32 %v5077_v57, %v1936_v59 }
 0xa63   : > { %5357 = vmatmul.mubr.msk.f32.vlgmr.msra.gmra.mrb[16].mxu1 %vm511_vm1, %v1944_v61  ;;  %v2558_v61 = vrot.slane %v2033_v50, %v5834_v7 }
 0xa64   : > { %5371 = vmatprep.mubr.msk.f32.mxu1 %vm5635_vm0, %v5636_v1 }
 0xb36   : > { %v2029_v6 = vpop.f32.mrb[16].mxu1 }
 0xb37   : > { %v5980_v8 = vadd.f32 %v5084_v4, %v2029_v6  ;;  %v5358_v12 = vpop.f32.mrb[17].mxu1 }
 0xb39   : > { %2116 = vrot.lane.b32.xlu1 %v5980_v8, %s5639_s27  ;;  %5362 = vmatmul.mubr.msk.f32.vlgmr.msra.gmra.mrb[16].mxu0 %vm586_vm2, %v5980_v8  ;;  %v2222_v39 = vmul.f32 %v5980_v8, %v5807_v54 }
 0xb3a   : > { %5366 = vmatprep.mubr.msk.f32.mxu0 %vm5635_vm0, %v5636_v1 }
 0xbab   : > { %v2117_v13 = vpop.permute.xlu1 %2116 }
 0xbac   : > { %5365 = vmatpush3.xpose.msk.msra.mxu0 %vm586_vm2, %v2117_v13 }
 0xbad   : > { %5374 = vmatprep.subr.mxu0 %v5636_v1 }
 0xbaf   : > { %5367 = vmatmul.mubr.msk.f32.vlgmr.msra.gmra.mrb[18].mxu0 %vm586_vm2, %v5980_v8 }
 0xbb0   : > { %5376 = vmatprep.mubr.msk.f32.mxu0 %vm5635_vm0, %v5636_v1  ;;  %5375 = vmatpush3.msra.mxu0 %v2309_v51 }
 0xbb1   : > { %5384 = vmatprep.subr.mxu0 %v5636_v1 }
 0xc0c   : > { %v2106_v15 = vpop.f32.mrb[16].mxu0 }
 0xc0d   : > { %2191 = vperm.xlu1 %5575, %v2106_v15   ;;  %2112 = vperm.xlu0 %5574, %v2106_v15   ;;  %v5363_v16 = vpop.f32.mrb[17].mxu0 }
 0xc11   : > { %5576 = vset.pattern.permute.xlu1 %v5640_v19  ;;  %5577 = vset.pattern.permute.xlu0 %v5641_v20 }
 0xc12   : > { %2197 = vperm.xlu1 %5576, %v2106_v15   ;;  %2203 = vperm.xlu0 %5577, %v2106_v15  }
 0xc16   : > { %5579 = vset.pattern.permute.xlu1 %v5637_v10  ;;  %5578 = vset.pattern.permute.xlu0 %v5638_v11 }
 0xc82   : > { %v2186_v17 = vpop.f32.mrb[18].mxu0 }
 0xc83   : > { %v5368_v14 = vpop.f32.mrb[19].mxu0 }
 0xc8c   : > { %v2192_v18 = vpop.permute.xlu1 %2191  ;;  %v2113_v21 = vpop.permute.xlu0 %2112 }
 0xc8d   : > { %v2115_v22 = vmul.f32 %v5777_v24, %v2113_v21  ;;  %v2194_v23 = vmul.f32 %v5779_v28, %v2192_v18 }
 0xc8f   : > { %v2187_v25 = vadd.f32 %v2186_v17, %v2115_v22 }
 0xc91   : > { %v2198_v27 = vpop.permute.xlu1 %2197  ;;  %v2195_v26 = vadd.f32 %v2194_v23, %v2187_v25  ;;  %v2204_v29 = vpop.permute.xlu0 %2203 }
 0xc92   : > { %v2200_v30 = vmul.f32 %v5782_v31, %v2198_v27  ;;  %v2206_v33 = vmul.f32 %v5787_v36, %v2204_v29 }
 0xc94   : > { %v2201_v32 = vadd.f32 %v2200_v30, %v2195_v26 }
 0xc96   : > { %v2207_v34 = vadd.f32 %v2206_v33, %v2201_v32 }
 0xc98   : > { %v2208_v35 = vmul.f32 0.25, %v2207_v34 }
 0xc9a   : > { %v2209_v37 = vadd.f32 %v2208_v35, %v5793_v42 }
 0xc9c   : > { %v2210_v38 = vsel %vm480_vm3, %v2209_v37, -inf }
 0xc9d   : > { %2211 = vmax.xlane.f32.xlu1 %v2210_v38 }
 0xcae   : > { %2640 = vrot.lane.b32.xlu1 %v5974_v62, %s5643_s19 }
 0xcb2   : > { %2224 = vrot.lane.b32.xlu1 %v2222_v39, %s5642_s18 }
 0xcb6   : > { %2722 = vrot.lane.b32.xlu1 %v5980_v8, %s5644_s20 }
 0xd2a   : > { %v2212_v40 = vpop.xlane.xlu1 %2211 }
 0xd2b   : > { %v2213_v41 = vsub.f32 %v2209_v37, %v2212_v40 }
 0xd2d   : > { %v2214_v43 = vmul.f32 1.442695, %v2213_v41 }
 0xd2e   : > { %v2641_v45 = vpop.permute.xlu1 %2640 }
 0xd2f   : > { %5602 = vpow2.f32 %v2214_v43 }
 0xd32   : > { %v2225_v46 = vpop.permute.xlu1 %2224 }
 0xd33   : > { %5370 = vmatpush3.msra.mxu1 %v2225_v46 }
 0xd34   : > { %5379 = vmatprep.subr.mxu1 %v5636_v1 }
 0xd36   : > { %v2723_v13 = vpop.permute.xlu1 %2722 }
 0xd39   : > { %v5603_v47 = vpop.eup %5602 }
 0xd3a   : > { %v2216_v48 = vsel %vm480_vm3, %v5603_v47, 0.0 }
 0xd3b   : > { %2217 = vadd.xlane.f32.xlu0 %v2216_v48 }
 0xd51   : > { %2638 = vrot.lane.b32.xlu0 %v5980_v8, %s5643_s19 }
 0xdc8   : > { %v2218_v52 = vpop.xlane.xlu0 %2217 }
 0xdc9   : > { %5604 = vrcp.f32 %v2218_v52 }
 0xdcc   : > { %v2639_v15 = vpop.permute.xlu0 %2638 }
 0xdd3   : > { %v5605_v53 = vpop.eup %5604 }
 0xdd4   : > { %v2220_v55 = vmul.f32 %v5605_v53, %v5829_v3  ;;  %v2828_v53 = vmul.f32 %v5980_v8, %v5888_v63 }
 0xdd6   : > { %v2221_v57 = vmul.f32 %v5603_v47, %v2220_v55 }
 0xdd8   : > { %5372 = vmatmul.mubr.msk.f32.vlgmr.msra.gmra.mrb[18].mxu1 %vm480_vm3, %v2221_v57  ;;  %v2305_v59 = vmul.f32 %v5777_v24, %v2221_v57  ;;  %v2388_v4 = vmul.f32 %v5779_v28, %v2221_v57  ;;  %v2471_v6 = vmul.f32 %v5782_v31, %v2221_v57  ;;  %v2554_v12 = vmul.f32 %v5787_v36, %v2221_v57 }
 0xdd9   : > { %5380 = vmatpush3.msra.mxu1 %v2392_v56  ;;  %5381 = vmatprep.mubr.msk.f32.mxu1 %vm5635_vm0, %v5636_v1 }
 0xdda   : > { %5377 = vmatmul.mubr.msk.f32.vlgmr.msra.gmra.mrb[20].mxu0 %vm480_vm3, %v2305_v59  ;;  %5389 = vmatprep.subr.mxu1 %v5636_v1 }
 0xddb   : > { %5385 = vmatpush3.msra.mxu0 %v2475_v58  ;;  %5386 = vmatprep.mubr.msk.f32.mxu0 %vm5635_vm0, %v5636_v1 }
 0xddc   : > { %5382 = vmatmul.mubr.msk.f32.vlgmr.msra.gmra.mrb[20].mxu1 %vm480_vm3, %v2388_v4  ;;  %5394 = vmatprep.subr.mxu0 %v5636_v1  ;;  %v2637_v4 = vmul.f32 %v5974_v62, %v5876_v44 }
 0xddd   : > { %5390 = vmatpush3.msra.mxu1 %v2558_v61  ;;  %5391 = vmatprep.mubr.msk.f32.mxu1 %vm5635_vm0, %v5636_v1 }
 0xdde   : > { %5387 = vmatmul.mubr.msk.f32.vlgmr.msra.gmra.mrb[22].mxu0 %vm480_vm3, %v2471_v6  ;;  %5399 = vmatprep.subr.mxu1 %v5636_v1  ;;  %v2915_v6 = vrot.slane %v2637_v4, %v5819_v60 }
 0xddf   : > { %5396 = vmatprep.mubr.msk.f32.mxu0 %vm5635_vm0, %v5636_v1 }
 0xde0   : > { %5392 = vmatmul.mubr.msk.f32.vlgmr.msra.gmra.mrb[22].mxu1 %vm480_vm3, %v2554_v12 }
 0xde1   : > { %5401 = vmatprep.mubr.msk.f32.mxu1 %vm5635_vm0, %v5636_v1 }
 0xde2   : > { %5395 = vmatpush3.xpose.msk.msra.mxu0 %vm586_vm2, %v2641_v45 }
 0xde3   : > { %5404 = vmatprep.subr.mxu0 %v5636_v1 }
 0xde4   : > { %5400 = vmatpush3.xpose.msk.msra.mxu1 %vm586_vm2, %v2723_v13 }
 0xde5   : > { %5397 = vmatmul.mubr.msk.f32.vlgmr.msra.gmra.mrb[24].mxu0 %vm586_vm2, %v2639_v15  ;;  %5409 = vmatprep.subr.mxu1 %v5636_v1 }
 0xde6   : > { %5406 = vmatprep.mubr.msk.f32.mxu0 %vm5635_vm0, %v5636_v1 }
 0xde7   : > { %5402 = vmatmul.mubr.msk.f32.vlgmr.msra.gmra.mrb[24].mxu1 %vm586_vm2, %v2639_v15 }
 0xde8   : > { %5411 = vmatprep.mubr.msk.f32.mxu1 %vm5635_vm0, %v5636_v1  ;;  %5410 = vmatpush3.msra.mxu1 %v2915_v6 }
 0xde9   : > { %5419 = vmatprep.subr.mxu1 %v5636_v1 }
 0xeab   : > { %v2296_v16 = vpop.f32.mrb[18].mxu1 }
 0xeac   : > { %v5373_v17 = vpop.f32.mrb[19].mxu1 }
 0xead   : > { %v2379_v14 = vpop.f32.mrb[20].mxu0  ;;  %v2998_v17 = vrot.slane %v2637_v4, %v5826_v2 }
 0xeae   : > { %v5378_v18 = vpop.f32.mrb[21].mxu0 }
 0xeaf   : > { %v2462_v21 = vpop.f32.mrb[20].mxu1  ;;  %v3164_v18 = vrot.slane %v2637_v4, %v5834_v7 }
 0xeb0   : > { %v5383_v22 = vpop.f32.mrb[21].mxu1 }
 0xeb1   : > { %v2545_v23 = vpop.f32.mrb[22].mxu0 }
 0xeb2   : > { %v5388_v25 = vpop.f32.mrb[23].mxu0 }
 0xeb3   : > { %v2628_v27 = vpop.f32.mrb[22].mxu1 }
 0xeb4   : > { %v5393_v26 = vpop.f32.mrb[23].mxu1 }
 0xeb8   : > { %v2712_v29 = vpop.f32.mrb[24].mxu0 }
 0xeb9   : > { %2797 = vperm.xlu1 %5579, %v2712_v29   ;;  %2718 = vperm.xlu0 %5578, %v2712_v29   ;;  %v5398_v30 = vpop.f32.mrb[25].mxu0 }
 0xeba   : > { %v2792_v32 = vpop.f32.mrb[24].mxu1 }
 0xebb   : > { %v5403_v33 = vpop.f32.mrb[25].mxu1 }
 0xebd   : > { %5580 = vset.pattern.permute.xlu1 %v5640_v19  ;;  %5581 = vset.pattern.permute.xlu0 %v5641_v20 }
 0xebe   : > { %2803 = vperm.xlu1 %5580, %v2712_v29   ;;  %2809 = vperm.xlu0 %5581, %v2712_v29  }
 0xec2   : > { %5583 = vset.pattern.permute.xlu1 %v5637_v10  ;;  %5582 = vset.pattern.permute.xlu0 %v5638_v11 }
 0xf38   : > { %v2798_v34 = vpop.permute.xlu1 %2797  ;;  %v2719_v35 = vpop.permute.xlu0 %2718 }
 0xf39   : > { %v2721_v37 = vmul.f32 %v5777_v24, %v2719_v35  ;;  %v2800_v38 = vmul.f32 %v5779_v28, %v2798_v34 }
 0xf3b   : > { %v2793_v39 = vadd.f32 %v2792_v32, %v2721_v37 }
 0xf3d   : > { %v2804_v40 = vpop.permute.xlu1 %2803  ;;  %v2801_v41 = vadd.f32 %v2800_v38, %v2793_v39  ;;  %v2810_v43 = vpop.permute.xlu0 %2809 }
 0xf3e   : > { %v2806_v45 = vmul.f32 %v5782_v31, %v2804_v40  ;;  %v2812_v47 = vmul.f32 %v5787_v36, %v2810_v43 }
 0xf40   : > { %v2807_v46 = vadd.f32 %v2806_v45, %v2801_v41 }
 0xf42   : > { %v2813_v48 = vadd.f32 %v2812_v47, %v2807_v46 }
 0xf44   : > { %v2814_v50 = vmul.f32 0.25, %v2813_v48 }
 0xf46   : > { %v2815_v51 = vadd.f32 %v2814_v50, %v5793_v42 }
 0xf48   : > { %v2816_v52 = vsel %vm480_vm3, %v2815_v51, -inf }
 0xf49   : > { %2817 = vmax.xlane.f32.xlu1 %v2816_v52 }
 0xf5a   : > { %2830 = vrot.lane.b32.xlu1 %v2828_v53, %s5642_s18 }
 0xf5e   : > { %2384 = vrot.lane.b32.xlu1 %v2379_v14, %s5639_s27 }
 0xf62   : > { %2467 = vrot.lane.b32.xlu1 %v2462_v21, %s5639_s27 }
 0xf66   : > { %2633 = vrot.lane.b32.xlu1 %v2628_v27, %s5639_s27 }
 0xfd6   : > { %v2818_v55 = vpop.xlane.xlu1 %2817 }
 0xfd7   : > { %v2819_v56 = vsub.f32 %v2815_v51, %v2818_v55 }
 0xfd9   : > { %v2820_v57 = vmul.f32 1.442695, %v2819_v56 }
 0xfda   : > { %v2831_v58 = vpop.permute.xlu1 %2830 }
 0xfdb   : > { %5606 = vpow2.f32 %v2820_v57  ;;  %5405 = vmatpush3.msra.mxu0 %v2831_v58 }
 0xfdc   : > { %5414 = vmatprep.subr.mxu0 %v5636_v1 }
 0xfde   : > { %v2385_v40 = vpop.permute.xlu1 %2384 }
 0xfe2   : > { %v2468_v43 = vpop.permute.xlu1 %2467 }
 0xfe5   : > { %v5607_v59 = vpop.eup %5606 }
 0xfe6   : > { %v2822_v61 = vsel %vm480_vm3, %v5607_v59, 0.0  ;;  %v2634_v48 = vpop.permute.xlu1 %2633 }
 0xfe7   : > { %2823 = vadd.xlane.f32.xlu0 %v2822_v61 }
 0xffd   : > { %2301 = vrot.lane.b32.xlu0 %v2296_v16, %s5639_s27  ;;  %v3081_v16 = vrot.slane %v2637_v4, %v5831_v5 }
0x1001   : > { %2550 = vrot.lane.b32.xlu0 %v2545_v23, %s5639_s27 }
0x1074   : > { %v2824_v12 = vpop.xlane.xlu0 %2823 }
0x1075   : > { %5608 = vrcp.f32 %v2824_v12 }
0x1078   : > { %v2302_v38 = vpop.permute.xlu0 %2301 }
0x1079   : > { %v2304_v39 = vadd.f32 %v2302_v38, %v5980_v8  ;;  %v5112_v38 = vld [vmem:[%s5717_s14 + $0x50] sm:$0xff] }
0x107b   : > { %v2387_v41 = vadd.f32 %v2385_v40, %v2304_v39  ;;  %v5113_v39 = vld [vmem:[%s5717_s14 + $0x58] sm:$0xff] }
0x107c   : > { %v2551_v46 = vpop.permute.xlu0 %2550  ;;  %v5541_v40 = vpack.c.bf16 %v5113_v39, %v5112_v38 }
0x107d   : > { %v2470_v45 = vadd.f32 %v2468_v43, %v2387_v41 }
0x107f   : > { %v5609_v13 = vpop.eup %5608  ;;  %v2553_v47 = vadd.f32 %v2551_v46, %v2470_v45 }
0x1080   : > { %v2826_v15 = vmul.f32 %v5609_v13, %v5829_v3 }
0x1081   : > { %v2636_v50 = vadd.f32 %v2634_v48, %v2553_v47  ;;  %v5109_v47 = vld [vmem:[%s5966_s12 + $0x1] ss:$0 sm:$0xff] }
0x1082   : > { %v2827_v14 = vmul.f32 %v5607_v59, %v2826_v15 }
0x1084   : > { %5407 = vmatmul.mubr.msk.f32.vlgmr.msra.gmra.mrb[26].mxu0 %vm480_vm3, %v2827_v14  ;;  %v2911_v62 = vmul.f32 %v5777_v24, %v2827_v14  ;;  %v2994_v21 = vmul.f32 %v5779_v28, %v2827_v14  ;;  %v3077_v22 = vmul.f32 %v5782_v31, %v2827_v14  ;;  %v3160_v23 = vmul.f32 %v5787_v36, %v2827_v14 }
0x1085   : > { %5415 = vmatpush3.msra.mxu0 %v2998_v17  ;;  %5416 = vmatprep.mubr.msk.f32.mxu0 %vm5635_vm0, %v5636_v1 }
0x1086   : > { %5412 = vmatmul.mubr.msk.f32.vlgmr.msra.gmra.mrb[26].mxu1 %vm480_vm3, %v2911_v62  ;;  %5424 = vmatprep.subr.mxu0 %v5636_v1 }
0x1087   : > { %5420 = vmatpush3.msra.mxu1 %v3081_v16  ;;  %5421 = vmatprep.mubr.msk.f32.mxu1 %vm5635_vm0, %v5636_v1 }
0x1088   : > { %5417 = vmatmul.mubr.msk.f32.vlgmr.msra.gmra.mrb[28].mxu0 %vm480_vm3, %v2994_v21  ;;  %5429 = vmatprep.subr.mxu1 %v5636_v1 }
0x1089   : > { %5425 = vmatpush3.msra.mxu0 %v3164_v18  ;;  %5426 = vmatprep.mubr.msk.f32.mxu0 %vm5635_vm0, %v5636_v1 }
0x108a   : > { %5422 = vmatmul.mubr.msk.f32.vlgmr.msra.gmra.mrb[28].mxu1 %vm480_vm3, %v3077_v22  ;;  %5537 = vmatprep.subr.bf16.mxu0 %v5634_v0 }
0x108b   : > { %5431 = vmatprep.mubr.msk.f32.mxu1 %vm5635_vm0, %v5636_v1 }
0x108c   : > { %5427 = vmatmul.mubr.msk.f32.vlgmr.msra.gmra.mrb[30].mxu0 %vm480_vm3, %v3160_v23 }
0x108d   : > { %5442 = vmatprep.mubr.msk.f32.mxu0 %vm5635_vm0, %v5636_v1 }
0x1157   : > { %v2902_v25 = vpop.f32.mrb[26].mxu0 }
0x1158   : > { %2907 = vrot.lane.b32.xlu0 %v2902_v25, %s5639_s27  ;;  %v5408_v27 = vpop.f32.mrb[27].mxu0 }
0x1159   : > { %v2985_v26 = vpop.f32.mrb[26].mxu1 }
0x115a   : > { %2990 = vrot.lane.b32.xlu1 %v2985_v26, %s5639_s27  ;;  %v5413_v29 = vpop.f32.mrb[27].mxu1 }
0x115b   : > { %v3068_v30 = vpop.f32.mrb[28].mxu0 }
0x115c   : > { %3073 = vrot.lane.b32.xlu0 %v3068_v30, %s5639_s27  ;;  %v5418_v32 = vpop.f32.mrb[29].mxu0 }
0x115d   : > { %v3151_v33 = vpop.f32.mrb[28].mxu1  ;;  %v5110_v32 = vld [vmem:[%s5717_s14 + $0x40] sm:$0xff] }
0x115e   : > { %3156 = vrot.lane.b32.xlu1 %v3151_v33, %s5639_s27  ;;  %v5423_v34 = vpop.f32.mrb[29].mxu1  ;;  %v5111_v33 = vld [vmem:[%s5717_s14 + $0x48] sm:$0xff]  ;;  %s5047_s14 = sshll.u32 %s6307_s10, 1 }
0x115f   : > { %v3234_v35 = vpop.f32.mrb[30].mxu0  ;;  %v5538_v34 = vpack.c.bf16 %v5111_v33, %v5110_v32  ;;  %s472_s15 = scalar_lea.vmem %s6305_s9, %s5047_s14 }
0x1160   : > { %3239 = vrot.lane.b32.xlu0 %v3234_v35, %s5639_s27  ;;  %v5428_v37 = vpop.f32.mrb[31].mxu0 }
0x1161   : > { %5539 = vmatpush3.bf16.msra.mxu0 %v5538_v34 }
0x1162   : > { %5540 = vmatprep.subr.bf16.mxu0 %v5634_v0  ;;  %v5107_v0 = vld [vmem:[%s5960_s28 + $0x1] ss:$0 sm:$0xff] }
0x1165   : > { %5542 = vmatpush3.bf16.msra.mxu0 %v5541_v40 }
0x1166   : > { %5455 = vmatprep.subr.mxu0 %v5636_v1 }
0x11ca   : > { %v2908_v51 = vpop.permute.xlu0 %2907 }
0x11cb   : > { %v2910_v52 = vadd.f32 %v2908_v51, %v2636_v50 }
0x11cc   : > { %v2991_v53 = vpop.permute.xlu1 %2990 }
0x11cd   : > { %v2993_v55 = vadd.f32 %v2991_v53, %v2910_v52  ;;  %v6137_v52 = vld [vmem:[%s5736_s22 + $0x8] sm:$0xf]  ;;  %v5116_v53 = vld [vmem:[%s5753_s26 + $0x2] ss:$0 sm:$0xff]  ;;  %s446_s26 = scalar_lea.vmem %s6299_s3, %s5047_s14 }
0x11ce   : > { %v3074_v56 = vpop.permute.xlu0 %3073 }
0x11cf   : > { %v3076_v57 = vadd.f32 %v3074_v56, %v2993_v55 }
0x11d0   : > { %v3157_v58 = vpop.permute.xlu1 %3156 }
0x11d1   : > { %v3159_v59 = vadd.f32 %v3157_v58, %v3076_v57 }
0x11d2   : > { %v3240_v61 = vpop.permute.xlu0 %3239 }
0x11d3   : > { %v3242_v4 = vadd.f32 %v3240_v61, %v3159_v59 }
0x11d5   : > { %v3244_v6 = vmin.f32 %v3242_v4, 0.0  ;;  %vm3243_vm10 = vcmp.gt.f32.partialorder %v3242_v4, 0.0 }
0x11d7   : > { %v3245_v8 = vmul.f32 1.442695, %v3244_v6 }
0x11d9   : > { %5610 = vpow2.f32 %v3245_v8 }
0x11e3   : > { %v5611_v12 = vpop.eup %5610 }
0x11e4   : > { %v5104_v13 = vadd.f32 -1.0, %v5611_v12 }
0x11e6   : > { %v3248_v15 = vsel %vm3243_vm10, %v3242_v4, %v5104_v13 }
0x11e7   : > { %3251 = vrot.lane.b32.xlu1 %v3248_v15, %s5645_s21  ;;  %v3249_v17 = vmul.f32 %v3248_v15, %v3248_v15 }
0x11e9   : > { %3255 = vrot.lane.b32.xlu0 %v3249_v17, %s5642_s18 }
0x1259   : > { %v3252_v14 = vpop.permute.xlu1 %3251 }
0x125b   : > { %v3256_v16 = vpop.permute.xlu0 %3255 }
0x125c   : > { %v3258_v62 = vsel %vm511_vm1, %v3252_v14, %v3256_v16 }
0x125d   : > { %5430 = vmatpush3.msra.mxu1 %v3258_v62 }
0x125e   : > { %5432 = vmatmul.mubr.msk.f32.vlgmr.msra.gmra.mrb[30].mxu1 %vm480_vm3, %v5646_v9  ;;  %5445 = vmatprep.subr.mxu1 %v5636_v1 }
0x125f   : > { %5447 = vmatprep.mubr.msk.f32.mxu1 %vm5635_vm0, %v5636_v1 }
0x1264   : > { %5446 = vmatpush3.xpose.msk.msra.mxu1 %vm586_vm2, %v6137_v52 }
0x1265   : > { %5450 = vmatprep.subr.mxu1 %v5636_v1 }
0x1331   : > { %v3325_v18 = vpop.f32.mrb[30].mxu1 }
0x1332   : > { %v3329_v21 = vmul.f32 0.125, %v3325_v18  ;;  %v5433_v22 = vpop.f32.mrb[31].mxu1 }
0x1334   : > { %v3342_v23 = vrot.slane %v3329_v21, %v5819_v60  ;;  %v3330_v25 = vmul.f32 %v3329_v21, %v3329_v21 }
0x1336   : > { %3344 = vrot.lane.b32.xlu0 %v3342_v23, %s5639_s27  ;;  %3332 = vrot.lane.b32.xlu1 %v3330_v25, %s5645_s21 }
0x13a8   : > { %v3333_v27 = vpop.permute.xlu1 %3332  ;;  %v3345_v41 = vpop.permute.xlu0 %3344 }
0x13a9   : > { %v3335_v26 = vsub.f32 %v3329_v21, %v3333_v27  ;;  %v3347_v43 = vsub.f32 %v3248_v15, %v3345_v41 }
0x13ab   : > { %v3336_v29 = vmax.f32 %v3335_v26, 0.0 }
0x13ad   : > { %v3348_v30 = vadd.f32 1e-05, %v3336_v29 }
0x13af   : > { %5612 = vrsqrt.f32 %v3348_v30 }
0x13b9   : > { %v5613_v35 = vpop.eup %5612 }
0x13ba   : > { %v3353_v37 = vrot.slane %v5613_v35, %v5819_v60 }
0x13bc   : > { %3355 = vrot.lane.b32.xlu1 %v3353_v37, %s5642_s18 }
0x142e   : > { %v3356_v45 = vpop.permute.xlu1 %3355 }
0x142f   : > { %v3358_v46 = vmul.f32 %v3356_v45, %v3347_v43 }
0x1431   : > { %3366 = vrot.lane.b32.xlu0 %v3358_v46, %s5645_s21 }
0x14a3   : > { %v3367_v48 = vpop.permute.xlu0 %3366 }
0x14a4   : > { %v3369_v50 = vmul.f32 %v5107_v0, %v3367_v48 }
0x14a6   : > { %v3378_v51 = vadd.f32 %v5109_v47, %v3369_v50 }
0x14a8   : > { %5443 = vmatmul.mubr.msk.f32.vlgmr.msra.gmra.mrb[32].mxu0 %vm511_vm1, %v3378_v51 }
0x14a9   : > { %5457 = vmatprep.mubr.msk.f32.mxu0 %vm5635_vm0, %v5636_v1 }
0x157b   : > { %v3463_v55 = vpop.f32.mrb[32].mxu0 }
0x157c   : > { %v6143_v56 = vadd.f32 %v5116_v53, %v3463_v55  ;;  %v5444_v57 = vpop.f32.mrb[33].mxu0 }
0x157e   : > { %3550 = vrot.lane.b32.xlu1 %v6143_v56, %s5639_s27  ;;  %5448 = vmatmul.mubr.msk.f32.vlgmr.msra.gmra.mrb[32].mxu1 %vm586_vm2, %v6143_v56  ;;  %v3656_v27 = vmul.f32 %v6143_v56, %v5807_v54  ;;  %v3467_v54 = vmul.f32 %v6137_v52, %v5803_v49 }
0x157f   : > { %5452 = vmatprep.mubr.msk.f32.mxu1 %vm5635_vm0, %v5636_v1 }
0x1580   : > { %v3743_v37 = vrot.slane %v3467_v54, %v5819_v60  ;;  %v3826_v41 = vrot.slane %v3467_v54, %v5826_v2  ;;  %v3909_v45 = vrot.slane %v3467_v54, %v5831_v5  ;;  %v3992_v49 = vrot.slane %v3467_v54, %v5834_v7 }
0x15f0   : > { %v3551_v58 = vpop.permute.xlu1 %3550 }
0x15f1   : > { %5451 = vmatpush3.xpose.msk.msra.mxu1 %vm586_vm2, %v3551_v58 }
0x15f2   : > { %5460 = vmatprep.subr.mxu1 %v5636_v1 }
0x15f4   : > { %5453 = vmatmul.mubr.msk.f32.vlgmr.msra.gmra.mrb[34].mxu1 %vm586_vm2, %v6143_v56 }
0x15f5   : > { %5462 = vmatprep.mubr.msk.f32.mxu1 %vm5635_vm0, %v5636_v1  ;;  %5461 = vmatpush3.msra.mxu1 %v3743_v37 }
0x15f6   : > { %5470 = vmatprep.subr.mxu1 %v5636_v1 }
0x1651   : > { %v3540_v59 = vpop.f32.mrb[32].mxu1 }
0x1652   : > { %3625 = vperm.xlu1 %5583, %v3540_v59   ;;  %3546 = vperm.xlu0 %5582, %v3540_v59   ;;  %v5449_v61 = vpop.f32.mrb[33].mxu1 }
0x1656   : > { %5584 = vset.pattern.permute.xlu1 %v5640_v19  ;;  %5585 = vset.pattern.permute.xlu0 %v5641_v20 }
0x1657   : > { %3631 = vperm.xlu1 %5584, %v3540_v59   ;;  %3637 = vperm.xlu0 %5585, %v3540_v59  }
0x165b   : > { %5587 = vset.pattern.permute.xlu1 %v5637_v10  ;;  %5586 = vset.pattern.permute.xlu0 %v5638_v11 }
0x16c7   : > { %v3620_v4 = vpop.f32.mrb[34].mxu1 }
0x16c8   : > { %v5454_v6 = vpop.f32.mrb[35].mxu1 }
0x16d1   : > { %v3626_v8 = vpop.permute.xlu1 %3625  ;;  %v3547_v12 = vpop.permute.xlu0 %3546 }
0x16d2   : > { %v3549_v13 = vmul.f32 %v5777_v24, %v3547_v12  ;;  %v3628_v15 = vmul.f32 %v5779_v28, %v3626_v8 }
0x16d4   : > { %v3621_v17 = vadd.f32 %v3620_v4, %v3549_v13 }
0x16d6   : > { %v3632_v14 = vpop.permute.xlu1 %3631  ;;  %v3629_v16 = vadd.f32 %v3628_v15, %v3621_v17  ;;  %v3638_v62 = vpop.permute.xlu0 %3637 }
0x16d7   : > { %v3634_v18 = vmul.f32 %v5782_v31, %v3632_v14  ;;  %v3640_v22 = vmul.f32 %v5787_v36, %v3638_v62 }
0x16d9   : > { %v3635_v21 = vadd.f32 %v3634_v18, %v3629_v16 }
0x16db   : > { %v3641_v10 = vadd.f32 %v3640_v22, %v3635_v21 }
0x16dd   : > { %v3642_v23 = vmul.f32 0.25, %v3641_v10 }
0x16df   : > { %v3643_v11 = vadd.f32 %v3642_v23, %v5793_v42 }
0x16e1   : > { %v3644_v25 = vsel %vm480_vm3, %v3643_v11, -inf }
0x16e2   : > { %3645 = vmax.xlane.f32.xlu1 %v3644_v25 }
0x16f3   : > { %4074 = vrot.lane.b32.xlu1 %v6137_v52, %s5643_s19 }
0x16f7   : > { %3658 = vrot.lane.b32.xlu1 %v3656_v27, %s5642_s18 }
0x16fb   : > { %4156 = vrot.lane.b32.xlu1 %v6143_v56, %s5644_s20 }
0x176f   : > { %v3646_v26 = vpop.xlane.xlu1 %3645 }
0x1770   : > { %v3647_v29 = vsub.f32 %v3643_v11, %v3646_v26 }
0x1772   : > { %v3648_v30 = vmul.f32 1.442695, %v3647_v29 }
0x1773   : > { %v4075_v32 = vpop.permute.xlu1 %4074 }
0x1774   : > { %5614 = vpow2.f32 %v3648_v30 }
0x1777   : > { %v3659_v33 = vpop.permute.xlu1 %3658 }
0x1778   : > { %5456 = vmatpush3.msra.mxu0 %v3659_v33 }
0x1779   : > { %5465 = vmatprep.subr.mxu0 %v5636_v1 }
0x177b   : > { %v4157_v50 = vpop.permute.xlu1 %4156 }
0x177e   : > { %v5615_v34 = vpop.eup %5614 }
0x177f   : > { %v3650_v35 = vsel %vm480_vm3, %v5615_v34, 0.0 }
0x1780   : > { %3651 = vadd.xlane.f32.xlu0 %v3650_v35 }
0x1796   : > { %4072 = vrot.lane.b32.xlu0 %v6143_v56, %s5643_s19 }
0x180d   : > { %v3652_v38 = vpop.xlane.xlu0 %3651 }
0x180e   : > { %5616 = vrcp.f32 %v3652_v38 }
0x1811   : > { %v4073_v51 = vpop.permute.xlu0 %4072 }
0x1818   : > { %v5617_v39 = vpop.eup %5616 }
0x1819   : > { %v3654_v40 = vmul.f32 %v5617_v39, %v5829_v3 }
0x181b   : > { %v3655_v43 = vmul.f32 %v5615_v34, %v3654_v40 }
0x181d   : > { %5458 = vmatmul.mubr.msk.f32.vlgmr.msra.gmra.mrb[34].mxu0 %vm480_vm3, %v3655_v43  ;;  %v3739_v46 = vmul.f32 %v5777_v24, %v3655_v43  ;;  %v3822_v0 = vmul.f32 %v5779_v28, %v3655_v43  ;;  %v3905_v47 = vmul.f32 %v5782_v31, %v3655_v43  ;;  %v3988_v48 = vmul.f32 %v5787_v36, %v3655_v43 }
0x181e   : > { %5466 = vmatpush3.msra.mxu0 %v3826_v41  ;;  %5467 = vmatprep.mubr.msk.f32.mxu0 %vm5635_vm0, %v5636_v1 }
0x181f   : > { %5463 = vmatmul.mubr.msk.f32.vlgmr.msra.gmra.mrb[36].mxu1 %vm480_vm3, %v3739_v46  ;;  %5475 = vmatprep.subr.mxu0 %v5636_v1 }
0x1820   : > { %5471 = vmatpush3.msra.mxu1 %v3909_v45  ;;  %5472 = vmatprep.mubr.msk.f32.mxu1 %vm5635_vm0, %v5636_v1 }
0x1821   : > { %5468 = vmatmul.mubr.msk.f32.vlgmr.msra.gmra.mrb[36].mxu0 %vm480_vm3, %v3822_v0  ;;  %5480 = vmatprep.subr.mxu1 %v5636_v1 }
0x1822   : > { %5476 = vmatpush3.msra.mxu0 %v3992_v49  ;;  %5477 = vmatprep.mubr.msk.f32.mxu0 %vm5635_vm0, %v5636_v1 }
0x1823   : > { %5473 = vmatmul.mubr.msk.f32.vlgmr.msra.gmra.mrb[38].mxu1 %vm480_vm3, %v3905_v47  ;;  %5485 = vmatprep.subr.mxu0 %v5636_v1 }
0x1824   : > { %5482 = vmatprep.mubr.msk.f32.mxu1 %vm5635_vm0, %v5636_v1 }
0x1825   : > { %5478 = vmatmul.mubr.msk.f32.vlgmr.msra.gmra.mrb[38].mxu0 %vm480_vm3, %v3988_v48 }
0x1826   : > { %5487 = vmatprep.mubr.msk.f32.mxu0 %vm5635_vm0, %v5636_v1 }
0x1827   : > { %5481 = vmatpush3.xpose.msk.msra.mxu1 %vm586_vm2, %v4075_v32  ;;  %v4262_v32 = vmul.f32 %v6143_v56, %v5888_v63  ;;  %v4071_v63 = vmul.f32 %v6137_v52, %v5876_v44 }
0x1828   : > { %5490 = vmatprep.subr.mxu1 %v5636_v1 }
0x1829   : > { %5486 = vmatpush3.xpose.msk.msra.mxu0 %vm586_vm2, %v4157_v50  ;;  %v4349_v38 = vrot.slane %v4071_v63, %v5819_v60  ;;  %v4432_v43 = vrot.slane %v4071_v63, %v5826_v2  ;;  %v4515_v46 = vrot.slane %v4071_v63, %v5831_v5  ;;  %v4598_v52 = vrot.slane %v4071_v63, %v5834_v7 }
0x182a   : > { %5483 = vmatmul.mubr.msk.f32.vlgmr.msra.gmra.mrb[40].mxu1 %vm586_vm2, %v4073_v51  ;;  %5495 = vmatprep.subr.mxu0 %v5636_v1 }
0x182b   : > { %5492 = vmatprep.mubr.msk.f32.mxu1 %vm5635_vm0, %v5636_v1 }
0x182c   : > { %5488 = vmatmul.mubr.msk.f32.vlgmr.msra.gmra.mrb[40].mxu0 %vm586_vm2, %v4073_v51 }
0x182d   : > { %5497 = vmatprep.mubr.msk.f32.mxu0 %vm5635_vm0, %v5636_v1  ;;  %5496 = vmatpush3.msra.mxu0 %v4349_v38 }
0x182e   : > { %5505 = vmatprep.subr.mxu0 %v5636_v1 }
0x18f0   : > { %v3730_v53 = vpop.f32.mrb[34].mxu0 }
0x18f1   : > { %v5459_v55 = vpop.f32.mrb[35].mxu0 }
0x18f2   : > { %v3813_v57 = vpop.f32.mrb[36].mxu1 }
0x18f3   : > { %v5464_v58 = vpop.f32.mrb[37].mxu1 }
0x18f4   : > { %v3896_v59 = vpop.f32.mrb[36].mxu0 }
0x18f5   : > { %v5469_v61 = vpop.f32.mrb[37].mxu0 }
0x18f6   : > { %v3979_v4 = vpop.f32.mrb[38].mxu1 }
0x18f7   : > { %v5474_v6 = vpop.f32.mrb[39].mxu1 }
0x18f8   : > { %v4062_v8 = vpop.f32.mrb[38].mxu0 }
0x18f9   : > { %v5479_v12 = vpop.f32.mrb[39].mxu0 }
0x18fd   : > { %v4146_v13 = vpop.f32.mrb[40].mxu1 }
0x18fe   : > { %4231 = vperm.xlu1 %5587, %v4146_v13   ;;  %4152 = vperm.xlu0 %5586, %v4146_v13   ;;  %v5484_v15 = vpop.f32.mrb[41].mxu1 }
0x18ff   : > { %v4226_v17 = vpop.f32.mrb[40].mxu0 }
0x1900   : > { %v5489_v14 = vpop.f32.mrb[41].mxu0 }
0x1902   : > { %5588 = vset.pattern.permute.xlu1 %v5640_v19  ;;  %5589 = vset.pattern.permute.xlu0 %v5641_v20 }
0x1903   : > { %4237 = vperm.xlu1 %5588, %v4146_v13   ;;  %4243 = vperm.xlu0 %5589, %v4146_v13  }
0x197d   : > { %v4232_v16 = vpop.permute.xlu1 %4231  ;;  %v4153_v62 = vpop.permute.xlu0 %4152 }
0x197e   : > { %v4155_v18 = vmul.f32 %v5777_v24, %v4153_v62  ;;  %v4234_v21 = vmul.f32 %v5779_v28, %v4232_v16 }
0x1980   : > { %v4227_v22 = vadd.f32 %v4226_v17, %v4155_v18 }
0x1982   : > { %v4238_v10 = vpop.permute.xlu1 %4237  ;;  %v4235_v23 = vadd.f32 %v4234_v21, %v4227_v22  ;;  %v4244_v11 = vpop.permute.xlu0 %4243 }
0x1983   : > { %v4240_v25 = vmul.f32 %v5782_v31, %v4238_v10  ;;  %v4246_v26 = vmul.f32 %v5787_v36, %v4244_v11 }
0x1985   : > { %v4241_v27 = vadd.f32 %v4240_v25, %v4235_v23 }
0x1987   : > { %v4247_v19 = vadd.f32 %v4246_v26, %v4241_v27 }
0x1989   : > { %v4248_v29 = vmul.f32 0.25, %v4247_v19 }
0x198b   : > { %v4249_v20 = vadd.f32 %v4248_v29, %v5793_v42 }
0x198d   : > { %v4250_v30 = vsel %vm480_vm3, %v4249_v20, -inf }
0x198e   : > { %4251 = vmax.xlane.f32.xlu1 %v4250_v30 }
0x199f   : > { %4264 = vrot.lane.b32.xlu1 %v4262_v32, %s5642_s18 }
0x19a3   : > { %3818 = vrot.lane.b32.xlu1 %v3813_v57, %s5639_s27 }
0x19a7   : > { %3901 = vrot.lane.b32.xlu1 %v3896_v59, %s5639_s27 }
0x19ab   : > { %4067 = vrot.lane.b32.xlu1 %v4062_v8, %s5639_s27 }
0x1a1b   : > { %v4252_v33 = vpop.xlane.xlu1 %4251 }
0x1a1c   : > { %v4253_v34 = vsub.f32 %v4249_v20, %v4252_v33 }
0x1a1e   : > { %v4254_v35 = vmul.f32 1.442695, %v4253_v34 }
0x1a1f   : > { %v4265_v54 = vpop.permute.xlu1 %4264 }
0x1a20   : > { %5618 = vpow2.f32 %v4254_v35  ;;  %5491 = vmatpush3.msra.mxu1 %v4265_v54 }
0x1a21   : > { %5500 = vmatprep.subr.mxu1 %v5636_v1 }
0x1a2a   : > { %v5619_v42 = vpop.eup %5618 }
0x1a2b   : > { %v4256_v37 = vsel %vm480_vm3, %v5619_v42, 0.0 }
0x1a2c   : > { %4257 = vadd.xlane.f32.xlu0 %v4256_v37 }
0x1a42   : > { %3735 = vrot.lane.b32.xlu0 %v3730_v53, %s5639_s27  ;;  %v3819_v53 = vpop.permute.xlu1 %3818 }
0x1a46   : > { %3984 = vrot.lane.b32.xlu0 %v3979_v4, %s5639_s27  ;;  %v3902_v57 = vpop.permute.xlu1 %3901 }
0x1a4a   : > { %v4068_v4 = vpop.permute.xlu1 %4067 }
0x1ab9   : > { %v4258_v39 = vpop.xlane.xlu0 %4257 }
0x1aba   : > { %5620 = vrcp.f32 %v4258_v39 }
0x1abd   : > { %v3736_v50 = vpop.permute.xlu0 %3735 }
0x1abe   : > { %v3738_v51 = vadd.f32 %v3736_v50, %v6143_v56 }
0x1ac0   : > { %v3821_v55 = vadd.f32 %v3819_v53, %v3738_v51 }
0x1ac1   : > { %v3985_v59 = vpop.permute.xlu0 %3984 }
0x1ac2   : > { %v3904_v58 = vadd.f32 %v3902_v57, %v3821_v55 }
0x1ac4   : > { %v5621_v40 = vpop.eup %5620  ;;  %v3987_v61 = vadd.f32 %v3985_v59, %v3904_v58 }
0x1ac5   : > { %v4260_v41 = vmul.f32 %v5621_v40, %v5829_v3 }
0x1ac6   : > { %v4070_v6 = vadd.f32 %v4068_v4, %v3987_v61 }
0x1ac7   : > { %v4261_v45 = vmul.f32 %v5619_v42, %v4260_v41  ;;  %v5139_v41 = vld [vmem:[%s5960_s28 + $0x2] ss:$0 sm:$0xff] }
0x1ac9   : > { %5493 = vmatmul.mubr.msk.f32.vlgmr.msra.gmra.mrb[42].mxu1 %vm480_vm3, %v4261_v45  ;;  %v4345_v44 = vmul.f32 %v5777_v24, %v4261_v45  ;;  %v4428_v49 = vmul.f32 %v5779_v28, %v4261_v45  ;;  %v4511_v24 = vmul.f32 %v5782_v31, %v4261_v45  ;;  %v4594_v28 = vmul.f32 %v5787_v36, %v4261_v45 }
0x1aca   : > { %5501 = vmatpush3.msra.mxu1 %v4432_v43  ;;  %5502 = vmatprep.mubr.msk.f32.mxu1 %vm5635_vm0, %v5636_v1  ;;  %v5141_v43 = vld [vmem:[%s5966_s12 + $0x2] ss:$0 sm:$0xff] }
0x1acb   : > { %5498 = vmatmul.mubr.msk.f32.vlgmr.msra.gmra.mrb[42].mxu0 %vm480_vm3, %v4345_v44  ;;  %5510 = vmatprep.subr.mxu1 %v5636_v1 }
0x1acc   : > { %5506 = vmatpush3.msra.mxu0 %v4515_v46  ;;  %5507 = vmatprep.mubr.msk.f32.mxu0 %vm5635_vm0, %v5636_v1 }
0x1acd   : > { %5503 = vmatmul.mubr.msk.f32.vlgmr.msra.gmra.mrb[44].mxu1 %vm480_vm3, %v4428_v49  ;;  %5515 = vmatprep.subr.mxu0 %v5636_v1 }
0x1ace   : > { %5511 = vmatpush3.msra.mxu1 %v4598_v52  ;;  %5512 = vmatprep.mubr.msk.f32.mxu1 %vm5635_vm0, %v5636_v1  ;;  %v4813_v52 = vld [vmem:[%s446_s26] sm:$0x3] }
0x1acf   : > { %5508 = vmatmul.mubr.msk.f32.vlgmr.msra.gmra.mrb[44].mxu0 %vm480_vm3, %v4511_v24  ;;  %5520 = vmatprep.subr.mxu1 %v5636_v1 }
0x1ad0   : > { %5517 = vmatprep.mubr.msk.f32.mxu0 %vm5635_vm0, %v5636_v1 }
0x1ad1   : > { %5513 = vmatmul.mubr.msk.f32.vlgmr.msra.gmra.mrb[46].mxu1 %vm480_vm3, %v4594_v28 }
0x1ad2   : > { %5522 = vmatprep.mubr.msk.f32.mxu1 %vm5635_vm0, %v5636_v1 }
0x1b9c   : > { %v4336_v31 = vpop.f32.mrb[42].mxu1 }
0x1b9d   : > { %4341 = vrot.lane.b32.xlu0 %v4336_v31, %s5639_s27  ;;  %v5494_v2 = vpop.f32.mrb[43].mxu1 }
0x1b9e   : > { %v4419_v3 = vpop.f32.mrb[42].mxu0 }
0x1b9f   : > { %4424 = vrot.lane.b32.xlu1 %v4419_v3, %s5639_s27  ;;  %v5499_v5 = vpop.f32.mrb[43].mxu0 }
0x1ba0   : > { %v4502_v7 = vpop.f32.mrb[44].mxu1 }
0x1ba1   : > { %4507 = vrot.lane.b32.xlu0 %v4502_v7, %s5639_s27  ;;  %v5504_v36 = vpop.f32.mrb[45].mxu1 }
0x1ba2   : > { %v4585_v0 = vpop.f32.mrb[44].mxu0 }
0x1ba3   : > { %4590 = vrot.lane.b32.xlu1 %v4585_v0, %s5639_s27  ;;  %v5509_v47 = vpop.f32.mrb[45].mxu0 }
0x1ba4   : > { %v4668_v48 = vpop.f32.mrb[46].mxu1 }
0x1ba5   : > { %4673 = vrot.lane.b32.xlu0 %v4668_v48, %s5639_s27  ;;  %v5514_v1 = vpop.f32.mrb[47].mxu1 }
0x1c0f   : > { %v4342_v8 = vpop.permute.xlu0 %4341 }
0x1c10   : > { %v4344_v12 = vadd.f32 %v4342_v8, %v4070_v6 }
0x1c11   : > { %v4425_v13 = vpop.permute.xlu1 %4424 }
0x1c12   : > { %v4427_v15 = vadd.f32 %v4425_v13, %v4344_v12 }
0x1c13   : > { %v4508_v17 = vpop.permute.xlu0 %4507 }
0x1c14   : > { %v4510_v14 = vadd.f32 %v4508_v17, %v4427_v15 }
0x1c15   : > { %v4591_v16 = vpop.permute.xlu1 %4590 }
0x1c16   : > { %v4593_v62 = vadd.f32 %v4591_v16, %v4510_v14 }
0x1c17   : > { %v4674_v18 = vpop.permute.xlu0 %4673 }
0x1c18   : > { %v4676_v21 = vadd.f32 %v4674_v18, %v4593_v62 }
0x1c1a   : > { %v4678_v22 = vmin.f32 %v4676_v21, 0.0  ;;  %vm4677_vm11 = vcmp.gt.f32.partialorder %v4676_v21, 0.0 }
0x1c1c   : > { %v4679_v56 = vmul.f32 1.442695, %v4678_v22 }
0x1c1e   : > { %5622 = vpow2.f32 %v4679_v56 }
0x1c28   : > { %v5623_v10 = vpop.eup %5622 }
0x1c29   : > { %v5136_v23 = vadd.f32 -1.0, %v5623_v10 }
0x1c2b   : > { %v4682_v11 = vsel %vm4677_vm11, %v4676_v21, %v5136_v23 }
0x1c2c   : > { %4685 = vrot.lane.b32.xlu1 %v4682_v11, %s5645_s21  ;;  %v4683_v25 = vmul.f32 %v4682_v11, %v4682_v11 }
0x1c2e   : > { %4689 = vrot.lane.b32.xlu0 %v4683_v25, %s5642_s18 }
0x1c9e   : > { %v4686_v27 = vpop.permute.xlu1 %4685 }
0x1ca0   : > { %v4690_v26 = vpop.permute.xlu0 %4689 }
0x1ca1   : > { %v4692_v19 = vsel %vm511_vm1, %v4686_v27, %v4690_v26 }
0x1ca2   : > { %5516 = vmatpush3.msra.mxu0 %v4692_v19 }
0x1ca3   : > { %5518 = vmatmul.mubr.msk.f32.vlgmr.msra.gmra.mrb[46].mxu0 %vm480_vm3, %v5646_v9 }
0x1d76   : > { %v4759_v29 = vpop.f32.mrb[46].mxu0 }
0x1d77   : > { %v4763_v20 = vmul.f32 0.125, %v4759_v29  ;;  %v5519_v30 = vpop.f32.mrb[47].mxu0 }
0x1d79   : > { %v4764_v32 = vmul.f32 %v4763_v20, %v4763_v20  ;;  %v4776_v33 = vrot.slane %v4763_v20, %v5819_v60 }
0x1d7b   : > { %4778 = vrot.lane.b32.xlu0 %v4776_v33, %s5639_s27  ;;  %4766 = vrot.lane.b32.xlu1 %v4764_v32, %s5645_s21 }
0x1ded   : > { %v4767_v34 = vpop.permute.xlu1 %4766  ;;  %v4779_v63 = vpop.permute.xlu0 %4778 }
0x1dee   : > { %v4769_v35 = vsub.f32 %v4763_v20, %v4767_v34  ;;  %v4781_v38 = vsub.f32 %v4682_v11, %v4779_v63 }
0x1df0   : > { %v4770_v54 = vmax.f32 %v4769_v35, 0.0 }
0x1df2   : > { %v4782_v42 = vadd.f32 1e-05, %v4770_v54 }
0x1df4   : > { %5624 = vrsqrt.f32 %v4782_v42 }
0x1dfe   : > { %v5625_v37 = vpop.eup %5624 }
0x1dff   : > { %v4787_v9 = vrot.slane %v5625_v37, %v5819_v60 }
0x1e01   : > { %4789 = vrot.lane.b32.xlu1 %v4787_v9, %s5642_s18 }
0x1e73   : > { %v4790_v39 = vpop.permute.xlu1 %4789 }
0x1e74   : > { %v4792_v40 = vmul.f32 %v4790_v39, %v4781_v38 }
0x1e76   : > { %4800 = vrot.lane.b32.xlu0 %v4792_v40, %s5645_s21 }
0x1ee8   : > { %v4801_v45 = vpop.permute.xlu0 %4800 }
0x1ee9   : > { %v4803_v46 = vmul.f32 %v5139_v41, %v4801_v45 }
0x1eeb   : > { %v4812_v44 = vadd.f32 %v5141_v43, %v4803_v46 }
0x1eed   : > { %5521 = vmatpush3.msra.mxu1 %v4812_v44 }
0x1eee   : > { %5523 = vmatmul.mubr.msk.f32.vlgmr.msra.gmra.mrb[48].mxu1 %vm480_vm3, %v4813_v52 }
0x1fc1   : > { %v4883_v60 = vpop.f32.mrb[48].mxu1 }
0x1fc2   : > { %4888 = vst.msk [vmem:[%s472_s15] sm:$0x3] %vm4887_vm12, %v4883_v60  ;;  %v5524_v49 = vpop.f32.mrb[49].mxu1 }
0x1fc3 PF: > { %s19_s30 = sadd.s32 1, %s5632_s30  }
0x1fc4   : > { %p16_p4 = scmp.ge.s32.totalorder %s19_s30, 4  }
0x1fc6   :  { %18 = sbr.rel (!%p16_p4) target bundleno = 1 (0x1), region = 120 }

</bundles_post_ra>
